<compile_context>
chip_gen: v7x
topology: tpu7x:2x2x1
jax: 0.10.0
libtpu: 0.0.40
codegen_flags: <defaults>
</compile_context>

<pallas_src>
import functools

import jax
import jax.numpy as jnp
from jax.experimental import pallas as pl
from jax.experimental.pallas import tpu as pltpu

_LANE = 128


def _round_up(x, m):
    return (x + m - 1) // m * m


def _pad_to(a, shape):
    pads = [(0, t - s) for s, t in zip(a.shape, shape)]
    return jnp.pad(a, pads)


def _const_spec(shape):
    """Grid-invariant operand: constant index_map and, when supported, a
    single VMEM buffer (no pointless double-buffering)."""
    nd = len(shape)
    idx = lambda i, _nd=nd: (0,) * _nd
    try:
        return pl.BlockSpec(shape, idx, pipeline_mode=pl.Buffered(1))
    except Exception:  # older jax without pipeline_mode / Buffered(1)
        return pl.BlockSpec(shape, idx)


# ------------------------------ Fused kernel ------------------------------- #

def _bottleneck_kernel(x_ref, w1_ref, s1_ref, b1_ref, w2_ref, s2_ref, b2_ref,
                       w3_ref, s3_ref, b3_ref, o_ref, xpad_sc, *,
                       h, w, dilation, wp, coff, row_tile):
    cin_p = x_ref.shape[-1]
    mid_p = w1_ref.shape[-1]
    cout_p = w3_ref.shape[-1]
    d = dilation
    p = d                                    # 3x3 conv, padding == dilation
    nrows = xpad_sc.shape[0]

    def flat(y, x):                          # padded (row, col) -> flat row
        return y * wp + x + coff

    # ---- zero ONLY the halo / gap / tail rows of the flat padded buffer --- #
    head = flat(p, p)
    xpad_sc[pl.ds(0, head), :] = jnp.zeros((head, mid_p), jnp.bfloat16)
    gap = wp - w                             # right halo + next row's left halo
    gap_zeros = jnp.zeros((gap, mid_p), jnp.bfloat16)   # hoisted constant
    for yr in range(h - 1):
        xpad_sc[pl.ds(flat(p + yr, p + w), gap), :] = gap_zeros
    tail = flat(p + h - 1, p + w)
    xpad_sc[pl.ds(tail, nrows - tail), :] = jnp.zeros(
        (nrows - tail, mid_p), jnp.bfloat16)

    # ---- conv1 (1x1) + bn1 + relu, written straight into the padded buffer - #
    for r0 in range(0, h, row_tile):
        tr = min(row_tile, h - r0)
        x2d = x_ref[pl.ds(r0, tr), :, :].reshape(tr * w, cin_p)        # bf16
        h1 = jnp.dot(x2d, w1_ref[...], preferred_element_type=jnp.float32)
        h1 = jnp.maximum(h1 * s1_ref[...] + b1_ref[...], 0.0).astype(jnp.bfloat16)
        h1 = h1.reshape(tr, w, mid_p)
        for yr in range(tr):                 # coff keeps these stores aligned
            xpad_sc[pl.ds(flat(p + r0 + yr, p), w), :] = h1[yr]

    # ---- conv2 (3x3 dilated) + bn2 + relu + conv3 (1x1) + bn3 + add + relu - #
    # Per row tile: the 9 taps are plain flat row offsets into the padded
    # buffer and are accumulated in a value (vreg/compiler managed), then the
    # full epilogue runs on the tile before its rows are stored.
    for r0 in range(0, h, row_tile):
        tr = min(row_tile, h - r0)
        m = tr * wp
        acc = None
        for ky in range(3):
            for kx in range(3):
                patch = xpad_sc[pl.ds(flat(r0 + ky * d, kx * d), m), :]
                contrib = jnp.dot(patch, w2_ref[ky * 3 + kx],
                                  preferred_element_type=jnp.float32)
                acc = contrib if acc is None else acc + contrib
        h2 = jnp.maximum(acc * s2_ref[...] + b2_ref[...], 0.0).astype(jnp.bfloat16)
        # Drop the wp-w junk columns (halo + rounding) before conv3.
        h2 = h2.reshape(tr, wp, mid_p)[:, :w, :].reshape(tr * w, mid_p)
        out = jnp.dot(h2, w3_ref[...], preferred_element_type=jnp.float32)
        out = out * s3_ref[...] + b3_ref[...]
        # Identity residual re-sliced from the VMEM-resident input block.
        res = x_ref[pl.ds(r0, tr), :, :].reshape(tr * w, cin_p)
        out = jnp.maximum(out + res.astype(jnp.float32), 0.0)
        o_ref[pl.ds(r0, tr), :, :] = out.reshape(tr, w, cout_p).astype(o_ref.dtype)


def _bottleneck_fused(x_p, w1, s1, b1, w2, s2, b2, w3, s3, b3, *, dilation):
    n, h, w, cin_p = x_p.shape
    mid_p = w1.shape[1]
    cout_p = w3.shape[1]
    d = dilation
    p = d
    hp = h + 2 * p
    wp = _round_up(w + 2 * p, 8)             # padded-row width (sublane multiple)
    coff = (8 - (p % 8)) % 8                 # aligns the per-row conv1 stores
    nrows = _round_up(hp * wp + 2 * p + coff, 8)
    row_tile = max(1, min(h, max(1, 512 // w)))   # ~256-512 matmul rows / tile

    kernel = functools.partial(_bottleneck_kernel, h=h, w=w, dilation=d,
                               wp=wp, coff=coff, row_tile=row_tile)

    # VMEM budget from actual sizes (double-buffered activations, single
    # weight buffers, padded-mid scratch) plus headroom for temporaries.
    act_bytes = 2 * 2 * (h * w * cin_p + h * w * cout_p)              # bf16
    wgt_bytes = 2 * (cin_p * mid_p + 9 * mid_p * mid_p + mid_p * cout_p)
    sc_bytes = 2 * nrows * mid_p
    vmem_limit = int(min(112 * 2**20,
                         max(4 * (act_bytes + wgt_bytes + sc_bytes) + (8 << 20),
                             32 * 2**20)))

    grid_spec = pltpu.PrefetchScalarGridSpec(
        num_scalar_prefetch=0,
        grid=(n,),
        in_specs=[
            pl.BlockSpec((None, h, w, cin_p), lambda i: (i, 0, 0, 0)),
            _const_spec((cin_p, mid_p)),
            _const_spec((1, mid_p)),
            _const_spec((1, mid_p)),
            _const_spec((9, mid_p, mid_p)),
            _const_spec((1, mid_p)),
            _const_spec((1, mid_p)),
            _const_spec((mid_p, cout_p)),
            _const_spec((1, cout_p)),
            _const_spec((1, cout_p)),
        ],
        out_specs=pl.BlockSpec((None, h, w, cout_p), lambda i: (i, 0, 0, 0)),
        scratch_shapes=[pltpu.VMEM((nrows, mid_p), jnp.bfloat16)],
    )

    return pl.pallas_call(
        kernel,
        out_shape=jax.ShapeDtypeStruct((n, h, w, cout_p), jnp.bfloat16),
        grid_spec=grid_spec,
        compiler_params=pltpu.CompilerParams(
            dimension_semantics=("parallel",),
            vmem_limit_bytes=vmem_limit),
    )(x_p, w1, s1, b1, w2, s2, b2, w3, s3, b3)


# ------------------------------ Module wrapper ------------------------------ #

class BottleneckPallas:
    expansion = 4

    def __init__(self, in_channels, out_channels, stride=1, dilation=1,
                 downsample=None, *, key):
        assert out_channels % self.expansion == 0
        if downsample is not None:
            raise NotImplementedError(
                "TODO(synk): downsample branch not translated")
        # Identity residual requires these (the common non-downsample block).
        assert stride == 1 and in_channels == out_channels, (
            "downsample=None requires stride==1 and in_channels==out_channels")

        self.in_channels = in_channels
        self.out_channels = out_channels
        self.mid_channels = out_channels // self.expansion
        self.stride = stride
        self.dilation = dilation
        self.downsample = downsample

        eps = 1e-5
        mid = self.mid_channels
        ks = jax.random.split(key, 15)

        # Conv weights (1x1 as [Cin, Cout]; 3x3 as HWIO [3, 3, Cin, Cout]).
        self.w1 = 0.1 * jax.random.normal(ks[0], (in_channels, mid), jnp.float32)
        self.w2 = 0.1 * jax.random.normal(ks[1], (3, 3, mid, mid), jnp.float32)
        self.w3 = 0.1 * jax.random.normal(ks[2], (mid, out_channels), jnp.float32)

        def bn_fold(kg, kb, km, kv, c):
            gamma = 1.0 + 0.1 * jax.random.normal(kg, (c,), jnp.float32)
            beta = 0.1 * jax.random.normal(kb, (c,), jnp.float32)
            mean = 0.1 * jax.random.normal(km, (c,), jnp.float32)
            var = jnp.abs(jax.random.normal(kv, (c,), jnp.float32)) + 0.5
            scale = gamma / jnp.sqrt(var + eps)
            bias = beta - mean * scale
            return scale, bias

        self.s1, self.b1 = bn_fold(ks[3], ks[4], ks[5], ks[6], mid)
        self.s2, self.b2 = bn_fold(ks[7], ks[8], ks[9], ks[10], mid)
        self.s3, self.b3 = bn_fold(ks[11], ks[12], ks[13], ks[14], out_channels)

        # Lane-dense (multiple-of-128) padded copies for the kernel.
        self.cin_p = _round_up(in_channels, _LANE)
        self.mid_p = _round_up(mid, _LANE)
        self.cout_p = _round_up(out_channels, _LANE)

        self.w1p = _pad_to(self.w1, (self.cin_p, self.mid_p)).astype(jnp.bfloat16)
        self.w2p = _pad_to(self.w2.reshape(9, mid, mid),
                           (9, self.mid_p, self.mid_p)).astype(jnp.bfloat16)
        self.w3p = _pad_to(self.w3, (self.mid_p, self.cout_p)).astype(jnp.bfloat16)

        self.s1p = _pad_to(self.s1, (self.mid_p,)).reshape(1, -1)
        self.b1p = _pad_to(self.b1, (self.mid_p,)).reshape(1, -1)
        self.s2p = _pad_to(self.s2, (self.mid_p,)).reshape(1, -1)
        self.b2p = _pad_to(self.b2, (self.mid_p,)).reshape(1, -1)
        self.s3p = _pad_to(self.s3, (self.cout_p,)).reshape(1, -1)
        self.b3p = _pad_to(self.b3, (self.cout_p,)).reshape(1, -1)

    def forward_nhwc(self, x_nhwc):
        """Fast path: NHWC, bf16, channels padded to cin_p; returns NHWC bf16
        with cout_p channels.  Chained blocks should use this to keep
        activations lane-dense bf16 end-to-end (no HBM round trips)."""
        assert x_nhwc.dtype == jnp.bfloat16 and x_nhwc.shape[-1] == self.cin_p
        return _bottleneck_fused(
            x_nhwc, self.w1p, self.s1p, self.b1p,
            self.w2p, self.s2p, self.b2p,
            self.w3p, self.s3p, self.b3p,
            dilation=self.dilation)

    def __call__(self, x_nchw):
        # PyTorch-interface shim (NCHW f32).  The transpose/pad/cast below are
        # extra HBM round trips; use forward_nhwc directly between blocks.
        n, c, h, w = x_nchw.shape
        assert c == self.in_channels
        x = jnp.transpose(x_nchw, (0, 2, 3, 1))                   # NCHW -> NHWC
        x_p = _pad_to(x, (n, h, w, self.cin_p)).astype(jnp.bfloat16)
        out_p = self.forward_nhwc(x_p)
        out = out_p[..., :self.out_channels].astype(jnp.float32)
        return jnp.transpose(out, (0, 3, 1, 2))                   # NHWC -> NCHW


# ------------------------------ Pure-JAX reference -------------------------- #

def _ref_forward(block, x_nchw):
    """Reference with the same numerics (bf16 MXU operands, f32 accumulate)."""
    x = jnp.transpose(x_nchw, (0, 2, 3, 1)).astype(jnp.bfloat16)

    def conv(inp, w_hwio, dilation=1, pad=0):
        return jax.lax.conv_general_dilated(
            inp.astype(jnp.bfloat16), w_hwio.astype(jnp.bfloat16),
            window_strides=(1, 1), padding=((pad, pad), (pad, pad)),
            rhs_dilation=(dilation, dilation),
            dimension_numbers=("NHWC", "HWIO", "NHWC"),
            preferred_element_type=jnp.float32)

    mid, cin, cout = block.mid_channels, block.in_channels, block.out_channels
    out = conv(x, block.w1.reshape(1, 1, cin, mid)) * block.s1 + block.b1
    out = jnp.maximum(out, 0.0)
    out = conv(out, block.w2, dilation=block.dilation,
               pad=block.dilation) * block.s2 + block.b2
    out = jnp.maximum(out, 0.0)
    out = conv(out, block.w3.reshape(1, 1, mid, cout)) * block.s3 + block.b3
    out = jnp.maximum(out + x.astype(jnp.float32), 0.0)
    return jnp.transpose(out, (0, 3, 1, 2))


if __name__ == "__main__":
    key = jax.random.PRNGKey(0)
    kx, kp = jax.random.split(key)

    N, C, H, W = 2, 16, 16, 16              # out_channels=16 -> mid_channels=4
    x = jax.random.normal(kx, (N, C, H, W), jnp.float32)

    block = BottleneckPallas(in_channels=C, out_channels=C,
                             stride=1, dilation=1, downsample=None, key=kp)

    forward = jax.jit(block.__call__)
    y = jax.block_until_ready(forward(x))
    y_ref = _ref_forward(block, x)

    assert y.shape == (N, C, H, W), y.shape
    max_err = float(jnp.max(jnp.abs(y - y_ref)))
    # bf16 output writeback -> compare at bf16 resolution.
    assert jnp.allclose(y, y_ref, atol=3e-2, rtol=3e-2), max_err
    print("KERNEL_OK")
</pallas_src>

<mosaic_0001>
module attributes {stable_mosaic.version = 11 : i64} {
  func.func @_bottleneck_kernel(%arg0: i32, %arg1: memref<1x16x16x128xbf16, #tpu.memory_space<vmem>>, %arg2: memref<128x128xbf16, #tpu.memory_space<vmem>>, %arg3: memref<1x128xf32, #tpu.memory_space<vmem>>, %arg4: memref<1x128xf32, #tpu.memory_space<vmem>>, %arg5: memref<9x128x128xbf16, #tpu.memory_space<vmem>>, %arg6: memref<1x128xf32, #tpu.memory_space<vmem>>, %arg7: memref<1x128xf32, #tpu.memory_space<vmem>>, %arg8: memref<128x128xbf16, #tpu.memory_space<vmem>>, %arg9: memref<1x128xf32, #tpu.memory_space<vmem>>, %arg10: memref<1x128xf32, #tpu.memory_space<vmem>>, %arg11: memref<1x16x16x128xbf16, #tpu.memory_space<vmem>>, %arg12: memref<448x128xbf16, #tpu.memory_space<vmem>>) attributes {dimension_semantics = [#tpu.dimension_semantics<parallel>], iteration_bounds = array<i64: 2>, scalar_prefetch = 0 : i64, scratch_operands = 1 : i64, tpu.core_type = #tpu.core_type<tc>, window_params = [{transform_indices = @transform_0, window_bounds = array<i64: 1, 16, 16, 128>}, {pipeline_mode = #tpu.pipeline_mode<synchronous>, transform_indices = @transform_1, window_bounds = array<i64: 128, 128>}, {pipeline_mode = #tpu.pipeline_mode<synchronous>, transform_indices = @transform_2, window_bounds = array<i64: 1, 128>}, {pipeline_mode = #tpu.pipeline_mode<synchronous>, transform_indices = @transform_3, window_bounds = array<i64: 1, 128>}, {pipeline_mode = #tpu.pipeline_mode<synchronous>, transform_indices = @transform_4, window_bounds = array<i64: 9, 128, 128>}, {pipeline_mode = #tpu.pipeline_mode<synchronous>, transform_indices = @transform_5, window_bounds = array<i64: 1, 128>}, {pipeline_mode = #tpu.pipeline_mode<synchronous>, transform_indices = @transform_6, window_bounds = array<i64: 1, 128>}, {pipeline_mode = #tpu.pipeline_mode<synchronous>, transform_indices = @transform_7, window_bounds = array<i64: 128, 128>}, {pipeline_mode = #tpu.pipeline_mode<synchronous>, transform_indices = @transform_8, window_bounds = array<i64: 1, 128>}, {pipeline_mode = #tpu.pipeline_mode<synchronous>, transform_indices = @transform_9, window_bounds = array<i64: 1, 128>}, {transform_indices = @transform_10, window_bounds = array<i64: 1, 16, 16, 128>}]} {
    %cst = arith.constant 0.000000e+00 : bf16
    %0 = vector.broadcast %cst : bf16 to vector<32x128xbf16>
    %c0 = arith.constant 0 : index
    %c0_0 = arith.constant 0 : index
    %1 = vector.load %arg12[%c0, %c0_0] : memref<448x128xbf16, #tpu.memory_space<vmem>>, vector<32x128xbf16>
    tpu.vector_store %arg12[%c0, %c0_0], %0 {strides = array<i32>} : memref<448x128xbf16, #tpu.memory_space<vmem>>, vector<32x128xbf16>,
    %cst_1 = arith.constant 0.000000e+00 : bf16
    %2 = vector.broadcast %cst_1 : bf16 to vector<8x128xbf16>
    %c48 = arith.constant 48 : index
    %c0_2 = arith.constant 0 : index
    %3 = vector.load %arg12[%c48, %c0_2] : memref<448x128xbf16, #tpu.memory_space<vmem>>, vector<8x128xbf16>
    tpu.vector_store %arg12[%c48, %c0_2], %2 {strides = array<i32>} : memref<448x128xbf16, #tpu.memory_space<vmem>>, vector<8x128xbf16>,
    %c72 = arith.constant 72 : index
    %c0_3 = arith.constant 0 : index
    %4 = vector.load %arg12[%c72, %c0_3] : memref<448x128xbf16, #tpu.memory_space<vmem>>, vector<8x128xbf16>
    tpu.vector_store %arg12[%c72, %c0_3], %2 {strides = array<i32>} : memref<448x128xbf16, #tpu.memory_space<vmem>>, vector<8x128xbf16>,
    %c96 = arith.constant 96 : index
    %c0_4 = arith.constant 0 : index
    %5 = vector.load %arg12[%c96, %c0_4] : memref<448x128xbf16, #tpu.memory_space<vmem>>, vector<8x128xbf16>
    tpu.vector_store %arg12[%c96, %c0_4], %2 {strides = array<i32>} : memref<448x128xbf16, #tpu.memory_space<vmem>>, vector<8x128xbf16>,
    %c120 = arith.constant 120 : index
    %c0_5 = arith.constant 0 : index
    %6 = vector.load %arg12[%c120, %c0_5] : memref<448x128xbf16, #tpu.memory_space<vmem>>, vector<8x128xbf16>
    tpu.vector_store %arg12[%c120, %c0_5], %2 {strides = array<i32>} : memref<448x128xbf16, #tpu.memory_space<vmem>>, vector<8x128xbf16>,
    %c144 = arith.constant 144 : index
    %c0_6 = arith.constant 0 : index
    %7 = vector.load %arg12[%c144, %c0_6] : memref<448x128xbf16, #tpu.memory_space<vmem>>, vector<8x128xbf16>
    tpu.vector_store %arg12[%c144, %c0_6], %2 {strides = array<i32>} : memref<448x128xbf16, #tpu.memory_space<vmem>>, vector<8x128xbf16>,
    %c168 = arith.constant 168 : index
    %c0_7 = arith.constant 0 : index
    %8 = vector.load %arg12[%c168, %c0_7] : memref<448x128xbf16, #tpu.memory_space<vmem>>, vector<8x128xbf16>
    tpu.vector_store %arg12[%c168, %c0_7], %2 {strides = array<i32>} : memref<448x128xbf16, #tpu.memory_space<vmem>>, vector<8x128xbf16>,
    %c192 = arith.constant 192 : index
    %c0_8 = arith.constant 0 : index
    %9 = vector.load %arg12[%c192, %c0_8] : memref<448x128xbf16, #tpu.memory_space<vmem>>, vector<8x128xbf16>
    tpu.vector_store %arg12[%c192, %c0_8], %2 {strides = array<i32>} : memref<448x128xbf16, #tpu.memory_space<vmem>>, vector<8x128xbf16>,
    %c216 = arith.constant 216 : index
    %c0_9 = arith.constant 0 : index
    %10 = vector.load %arg12[%c216, %c0_9] : memref<448x128xbf16, #tpu.memory_space<vmem>>, vector<8x128xbf16>
    tpu.vector_store %arg12[%c216, %c0_9], %2 {strides = array<i32>} : memref<448x128xbf16, #tpu.memory_space<vmem>>, vector<8x128xbf16>,
    %c240 = arith.constant 240 : index
    %c0_10 = arith.constant 0 : index
    %11 = vector.load %arg12[%c240, %c0_10] : memref<448x128xbf16, #tpu.memory_space<vmem>>, vector<8x128xbf16>
    tpu.vector_store %arg12[%c240, %c0_10], %2 {strides = array<i32>} : memref<448x128xbf16, #tpu.memory_space<vmem>>, vector<8x128xbf16>,
    %c264 = arith.constant 264 : index
    %c0_11 = arith.constant 0 : index
    %12 = vector.load %arg12[%c264, %c0_11] : memref<448x128xbf16, #tpu.memory_space<vmem>>, vector<8x128xbf16>
    tpu.vector_store %arg12[%c264, %c0_11], %2 {strides = array<i32>} : memref<448x128xbf16, #tpu.memory_space<vmem>>, vector<8x128xbf16>,
    %c288 = arith.constant 288 : index
    %c0_12 = arith.constant 0 : index
    %13 = vector.load %arg12[%c288, %c0_12] : memref<448x128xbf16, #tpu.memory_space<vmem>>, vector<8x128xbf16>
    tpu.vector_store %arg12[%c288, %c0_12], %2 {strides = array<i32>} : memref<448x128xbf16, #tpu.memory_space<vmem>>, vector<8x128xbf16>,
    %c312 = arith.constant 312 : index
    %c0_13 = arith.constant 0 : index
    %14 = vector.load %arg12[%c312, %c0_13] : memref<448x128xbf16, #tpu.memory_space<vmem>>, vector<8x128xbf16>
    tpu.vector_store %arg12[%c312, %c0_13], %2 {strides = array<i32>} : memref<448x128xbf16, #tpu.memory_space<vmem>>, vector<8x128xbf16>,
    %c336 = arith.constant 336 : index
    %c0_14 = arith.constant 0 : index
    %15 = vector.load %arg12[%c336, %c0_14] : memref<448x128xbf16, #tpu.memory_space<vmem>>, vector<8x128xbf16>
    tpu.vector_store %arg12[%c336, %c0_14], %2 {strides = array<i32>} : memref<448x128xbf16, #tpu.memory_space<vmem>>, vector<8x128xbf16>,
    %c360 = arith.constant 360 : index
    %c0_15 = arith.constant 0 : index
    %16 = vector.load %arg12[%c360, %c0_15] : memref<448x128xbf16, #tpu.memory_space<vmem>>, vector<8x128xbf16>
    tpu.vector_store %arg12[%c360, %c0_15], %2 {strides = array<i32>} : memref<448x128xbf16, #tpu.memory_space<vmem>>, vector<8x128xbf16>,
    %c384 = arith.constant 384 : index
    %c0_16 = arith.constant 0 : index
    %17 = vector.load %arg12[%c384, %c0_16] : memref<448x128xbf16, #tpu.memory_space<vmem>>, vector<8x128xbf16>
    tpu.vector_store %arg12[%c384, %c0_16], %2 {strides = array<i32>} : memref<448x128xbf16, #tpu.memory_space<vmem>>, vector<8x128xbf16>,
    %cst_17 = arith.constant 0.000000e+00 : bf16
    %18 = vector.broadcast %cst_17 : bf16 to vector<40x128xbf16>
    %c408 = arith.constant 408 : index
    %c0_18 = arith.constant 0 : index
    %19 = vector.load %arg12[%c408, %c0_18] : memref<448x128xbf16, #tpu.memory_space<vmem>>, vector<40x128xbf16>
    tpu.vector_store %arg12[%c408, %c0_18], %18 {strides = array<i32>} : memref<448x128xbf16, #tpu.memory_space<vmem>>, vector<40x128xbf16>,
    %c0_19 = arith.constant 0 : index
    %c0_20 = arith.constant 0 : index
    %c0_21 = arith.constant 0 : index
    %c0_22 = arith.constant 0 : index
    %20 = vector.load %arg1[%c0_19, %c0_20, %c0_21, %c0_22] : memref<1x16x16x128xbf16, #tpu.memory_space<vmem>>, vector<1x16x16x128xbf16>
    %21 = vector.shape_cast %20 : vector<1x16x16x128xbf16> to vector<16x16x128xbf16>
    %22 = vector.shape_cast %21 : vector<16x16x128xbf16> to vector<256x128xbf16>
    %c0_23 = arith.constant 0 : index
    %c0_24 = arith.constant 0 : index
    %23 = vector.load %arg2[%c0_23, %c0_24] : memref<128x128xbf16, #tpu.memory_space<vmem>>, vector<128x128xbf16>
    %cst_25 = arith.constant dense<0.000000e+00> : vector<256x128xf32>
    %24 = tpu.matmul %22, %23, %cst_25 {dimension_numbers = #tpu.dot_dimension_numbers<[1], [0], [0], [1], [0, 0, 1, 1], [], []>} : vector<256x128xbf16>, vector<128x128xbf16>, vector<256x128xf32> -> vector<256x128xf32>
    %c0_26 = arith.constant 0 : index
    %c0_27 = arith.constant 0 : index
    %25 = vector.load %arg3[%c0_26, %c0_27] : memref<1x128xf32, #tpu.memory_space<vmem>>, vector<1x128xf32>
    %26 = vector.broadcast %25 : vector<1x128xf32> to vector<256x128xf32>
    %27 = arith.mulf %24, %26 : vector<256x128xf32>
    %c0_28 = arith.constant 0 : index
    %c0_29 = arith.constant 0 : index
    %28 = vector.load %arg4[%c0_28, %c0_29] : memref<1x128xf32, #tpu.memory_space<vmem>>, vector<1x128xf32>
    %29 = vector.broadcast %28 : vector<1x128xf32> to vector<256x128xf32>
    %30 = arith.addf %27, %29 : vector<256x128xf32>
    %cst_30 = arith.constant 0.000000e+00 : f32
    %31 = vector.broadcast %cst_30 : f32 to vector<256x128xf32>
    %32 = arith.maximumf %30, %31 : vector<256x128xf32>
    %33 = arith.truncf %32 : vector<256x128xf32> to vector<256x128xbf16>
    %34 = vector.shape_cast %33 : vector<256x128xbf16> to vector<16x16x128xbf16>
    %35 = vector.extract_strided_slice %34 {offsets = [0, 0, 0], sizes = [1, 16, 128], strides = [1, 1, 1]} : vector<16x16x128xbf16> to vector<1x16x128xbf16>
    %36 = vector.shape_cast %35 : vector<1x16x128xbf16> to vector<16x128xbf16>
    %c32 = arith.constant 32 : index
    %c0_31 = arith.constant 0 : index
    %37 = vector.load %arg12[%c32, %c0_31] : memref<448x128xbf16, #tpu.memory_space<vmem>>, vector<16x128xbf16>
    tpu.vector_store %arg12[%c32, %c0_31], %36 {strides = array<i32>} : memref<448x128xbf16, #tpu.memory_space<vmem>>, vector<16x128xbf16>,
    %38 = vector.extract_strided_slice %34 {offsets = [1, 0, 0], sizes = [1, 16, 128], strides = [1, 1, 1]} : vector<16x16x128xbf16> to vector<1x16x128xbf16>
    %39 = vector.shape_cast %38 : vector<1x16x128xbf16> to vector<16x128xbf16>
    %c56 = arith.constant 56 : index
    %c0_32 = arith.constant 0 : index
    %40 = vector.load %arg12[%c56, %c0_32] : memref<448x128xbf16, #tpu.memory_space<vmem>>, vector<16x128xbf16>
    tpu.vector_store %arg12[%c56, %c0_32], %39 {strides = array<i32>} : memref<448x128xbf16, #tpu.memory_space<vmem>>, vector<16x128xbf16>,
    %41 = vector.extract_strided_slice %34 {offsets = [2, 0, 0], sizes = [1, 16, 128], strides = [1, 1, 1]} : vector<16x16x128xbf16> to vector<1x16x128xbf16>
    %42 = vector.shape_cast %41 : vector<1x16x128xbf16> to vector<16x128xbf16>
    %c80 = arith.constant 80 : index
    %c0_33 = arith.constant 0 : index
    %43 = vector.load %arg12[%c80, %c0_33] : memref<448x128xbf16, #tpu.memory_space<vmem>>, vector<16x128xbf16>
    tpu.vector_store %arg12[%c80, %c0_33], %42 {strides = array<i32>} : memref<448x128xbf16, #tpu.memory_space<vmem>>, vector<16x128xbf16>,
    %44 = vector.extract_strided_slice %34 {offsets = [3, 0, 0], sizes = [1, 16, 128], strides = [1, 1, 1]} : vector<16x16x128xbf16> to vector<1x16x128xbf16>
    %45 = vector.shape_cast %44 : vector<1x16x128xbf16> to vector<16x128xbf16>
    %c104 = arith.constant 104 : index
    %c0_34 = arith.constant 0 : index
    %46 = vector.load %arg12[%c104, %c0_34] : memref<448x128xbf16, #tpu.memory_space<vmem>>, vector<16x128xbf16>
    tpu.vector_store %arg12[%c104, %c0_34], %45 {strides = array<i32>} : memref<448x128xbf16, #tpu.memory_space<vmem>>, vector<16x128xbf16>,
    %47 = vector.extract_strided_slice %34 {offsets = [4, 0, 0], sizes = [1, 16, 128], strides = [1, 1, 1]} : vector<16x16x128xbf16> to vector<1x16x128xbf16>
    %48 = vector.shape_cast %47 : vector<1x16x128xbf16> to vector<16x128xbf16>
    %c128 = arith.constant 128 : index
    %c0_35 = arith.constant 0 : index
    %49 = vector.load %arg12[%c128, %c0_35] : memref<448x128xbf16, #tpu.memory_space<vmem>>, vector<16x128xbf16>
    tpu.vector_store %arg12[%c128, %c0_35], %48 {strides = array<i32>} : memref<448x128xbf16, #tpu.memory_space<vmem>>, vector<16x128xbf16>,
    %50 = vector.extract_strided_slice %34 {offsets = [5, 0, 0], sizes = [1, 16, 128], strides = [1, 1, 1]} : vector<16x16x128xbf16> to vector<1x16x128xbf16>
    %51 = vector.shape_cast %50 : vector<1x16x128xbf16> to vector<16x128xbf16>
    %c152 = arith.constant 152 : index
    %c0_36 = arith.constant 0 : index
    %52 = vector.load %arg12[%c152, %c0_36] : memref<448x128xbf16, #tpu.memory_space<vmem>>, vector<16x128xbf16>
    tpu.vector_store %arg12[%c152, %c0_36], %51 {strides = array<i32>} : memref<448x128xbf16, #tpu.memory_space<vmem>>, vector<16x128xbf16>,
    %53 = vector.extract_strided_slice %34 {offsets = [6, 0, 0], sizes = [1, 16, 128], strides = [1, 1, 1]} : vector<16x16x128xbf16> to vector<1x16x128xbf16>
    %54 = vector.shape_cast %53 : vector<1x16x128xbf16> to vector<16x128xbf16>
    %c176 = arith.constant 176 : index
    %c0_37 = arith.constant 0 : index
    %55 = vector.load %arg12[%c176, %c0_37] : memref<448x128xbf16, #tpu.memory_space<vmem>>, vector<16x128xbf16>
    tpu.vector_store %arg12[%c176, %c0_37], %54 {strides = array<i32>} : memref<448x128xbf16, #tpu.memory_space<vmem>>, vector<16x128xbf16>,
    %56 = vector.extract_strided_slice %34 {offsets = [7, 0, 0], sizes = [1, 16, 128], strides = [1, 1, 1]} : vector<16x16x128xbf16> to vector<1x16x128xbf16>
    %57 = vector.shape_cast %56 : vector<1x16x128xbf16> to vector<16x128xbf16>
    %c200 = arith.constant 200 : index
    %c0_38 = arith.constant 0 : index
    %58 = vector.load %arg12[%c200, %c0_38] : memref<448x128xbf16, #tpu.memory_space<vmem>>, vector<16x128xbf16>
    tpu.vector_store %arg12[%c200, %c0_38], %57 {strides = array<i32>} : memref<448x128xbf16, #tpu.memory_space<vmem>>, vector<16x128xbf16>,
    %59 = vector.extract_strided_slice %34 {offsets = [8, 0, 0], sizes = [1, 16, 128], strides = [1, 1, 1]} : vector<16x16x128xbf16> to vector<1x16x128xbf16>
    %60 = vector.shape_cast %59 : vector<1x16x128xbf16> to vector<16x128xbf16>
    %c224 = arith.constant 224 : index
    %c0_39 = arith.constant 0 : index
    %61 = vector.load %arg12[%c224, %c0_39] : memref<448x128xbf16, #tpu.memory_space<vmem>>, vector<16x128xbf16>
    tpu.vector_store %arg12[%c224, %c0_39], %60 {strides = array<i32>} : memref<448x128xbf16, #tpu.memory_space<vmem>>, vector<16x128xbf16>,
    %62 = vector.extract_strided_slice %34 {offsets = [9, 0, 0], sizes = [1, 16, 128], strides = [1, 1, 1]} : vector<16x16x128xbf16> to vector<1x16x128xbf16>
    %63 = vector.shape_cast %62 : vector<1x16x128xbf16> to vector<16x128xbf16>
    %c248 = arith.constant 248 : index
    %c0_40 = arith.constant 0 : index
    %64 = vector.load %arg12[%c248, %c0_40] : memref<448x128xbf16, #tpu.memory_space<vmem>>, vector<16x128xbf16>
    tpu.vector_store %arg12[%c248, %c0_40], %63 {strides = array<i32>} : memref<448x128xbf16, #tpu.memory_space<vmem>>, vector<16x128xbf16>,
    %65 = vector.extract_strided_slice %34 {offsets = [10, 0, 0], sizes = [1, 16, 128], strides = [1, 1, 1]} : vector<16x16x128xbf16> to vector<1x16x128xbf16>
    %66 = vector.shape_cast %65 : vector<1x16x128xbf16> to vector<16x128xbf16>
    %c272 = arith.constant 272 : index
    %c0_41 = arith.constant 0 : index
    %67 = vector.load %arg12[%c272, %c0_41] : memref<448x128xbf16, #tpu.memory_space<vmem>>, vector<16x128xbf16>
    tpu.vector_store %arg12[%c272, %c0_41], %66 {strides = array<i32>} : memref<448x128xbf16, #tpu.memory_space<vmem>>, vector<16x128xbf16>,
    %68 = vector.extract_strided_slice %34 {offsets = [11, 0, 0], sizes = [1, 16, 128], strides = [1, 1, 1]} : vector<16x16x128xbf16> to vector<1x16x128xbf16>
    %69 = vector.shape_cast %68 : vector<1x16x128xbf16> to vector<16x128xbf16>
    %c296 = arith.constant 296 : index
    %c0_42 = arith.constant 0 : index
    %70 = vector.load %arg12[%c296, %c0_42] : memref<448x128xbf16, #tpu.memory_space<vmem>>, vector<16x128xbf16>
    tpu.vector_store %arg12[%c296, %c0_42], %69 {strides = array<i32>} : memref<448x128xbf16, #tpu.memory_space<vmem>>, vector<16x128xbf16>,
    %71 = vector.extract_strided_slice %34 {offsets = [12, 0, 0], sizes = [1, 16, 128], strides = [1, 1, 1]} : vector<16x16x128xbf16> to vector<1x16x128xbf16>
    %72 = vector.shape_cast %71 : vector<1x16x128xbf16> to vector<16x128xbf16>
    %c320 = arith.constant 320 : index
    %c0_43 = arith.constant 0 : index
    %73 = vector.load %arg12[%c320, %c0_43] : memref<448x128xbf16, #tpu.memory_space<vmem>>, vector<16x128xbf16>
    tpu.vector_store %arg12[%c320, %c0_43], %72 {strides = array<i32>} : memref<448x128xbf16, #tpu.memory_space<vmem>>, vector<16x128xbf16>,
    %74 = vector.extract_strided_slice %34 {offsets = [13, 0, 0], sizes = [1, 16, 128], strides = [1, 1, 1]} : vector<16x16x128xbf16> to vector<1x16x128xbf16>
    %75 = vector.shape_cast %74 : vector<1x16x128xbf16> to vector<16x128xbf16>
    %c344 = arith.constant 344 : index
    %c0_44 = arith.constant 0 : index
    %76 = vector.load %arg12[%c344, %c0_44] : memref<448x128xbf16, #tpu.memory_space<vmem>>, vector<16x128xbf16>
    tpu.vector_store %arg12[%c344, %c0_44], %75 {strides = array<i32>} : memref<448x128xbf16, #tpu.memory_space<vmem>>, vector<16x128xbf16>,
    %77 = vector.extract_strided_slice %34 {offsets = [14, 0, 0], sizes = [1, 16, 128], strides = [1, 1, 1]} : vector<16x16x128xbf16> to vector<1x16x128xbf16>
    %78 = vector.shape_cast %77 : vector<1x16x128xbf16> to vector<16x128xbf16>
    %c368 = arith.constant 368 : index
    %c0_45 = arith.constant 0 : index
    %79 = vector.load %arg12[%c368, %c0_45] : memref<448x128xbf16, #tpu.memory_space<vmem>>, vector<16x128xbf16>
    tpu.vector_store %arg12[%c368, %c0_45], %78 {strides = array<i32>} : memref<448x128xbf16, #tpu.memory_space<vmem>>, vector<16x128xbf16>,
    %80 = vector.extract_strided_slice %34 {offsets = [15, 0, 0], sizes = [1, 16, 128], strides = [1, 1, 1]} : vector<16x16x128xbf16> to vector<1x16x128xbf16>
    %81 = vector.shape_cast %80 : vector<1x16x128xbf16> to vector<16x128xbf16>
    %c392 = arith.constant 392 : index
    %c0_46 = arith.constant 0 : index
    %82 = vector.load %arg12[%c392, %c0_46] : memref<448x128xbf16, #tpu.memory_space<vmem>>, vector<16x128xbf16>
    tpu.vector_store %arg12[%c392, %c0_46], %81 {strides = array<i32>} : memref<448x128xbf16, #tpu.memory_space<vmem>>, vector<16x128xbf16>,
    %c7 = arith.constant 7 : index
    %c0_47 = arith.constant 0 : index
    %83 = vector.load %arg12[%c7, %c0_47] : memref<448x128xbf16, #tpu.memory_space<vmem>>, vector<384x128xbf16>
    %c0_48 = arith.constant 0 : index
    %c0_49 = arith.constant 0 : index
    %c0_50 = arith.constant 0 : index
    %84 = vector.load %arg5[%c0_48, %c0_49, %c0_50] : memref<9x128x128xbf16, #tpu.memory_space<vmem>>, vector<1x128x128xbf16>
    %85 = vector.shape_cast %84 : vector<1x128x128xbf16> to vector<128x128xbf16>
    %cst_51 = arith.constant dense<0.000000e+00> : vector<384x128xf32>
    %86 = tpu.matmul %83, %85, %cst_51 {dimension_numbers = #tpu.dot_dimension_numbers<[1], [0], [0], [1], [0, 0, 1, 1], [], []>} : vector<384x128xbf16>, vector<128x128xbf16>, vector<384x128xf32> -> vector<384x128xf32>
    %c8 = arith.constant 8 : index
    %c0_52 = arith.constant 0 : index
    %87 = vector.load %arg12[%c8, %c0_52] : memref<448x128xbf16, #tpu.memory_space<vmem>>, vector<384x128xbf16>
    %c1 = arith.constant 1 : index
    %c0_53 = arith.constant 0 : index
    %c0_54 = arith.constant 0 : index
    %88 = vector.load %arg5[%c1, %c0_53, %c0_54] : memref<9x128x128xbf16, #tpu.memory_space<vmem>>, vector<1x128x128xbf16>
    %89 = vector.shape_cast %88 : vector<1x128x128xbf16> to vector<128x128xbf16>
    %cst_55 = arith.constant dense<0.000000e+00> : vector<384x128xf32>
    %90 = tpu.matmul %87, %89, %cst_55 {dimension_numbers = #tpu.dot_dimension_numbers<[1], [0], [0], [1], [0, 0, 1, 1], [], []>} : vector<384x128xbf16>, vector<128x128xbf16>, vector<384x128xf32> -> vector<384x128xf32>
    %91 = arith.addf %86, %90 : vector<384x128xf32>
    %c9 = arith.constant 9 : index
    %c0_56 = arith.constant 0 : index
    %92 = vector.load %arg12[%c9, %c0_56] : memref<448x128xbf16, #tpu.memory_space<vmem>>, vector<384x128xbf16>
    %c2 = arith.constant 2 : index
    %c0_57 = arith.constant 0 : index
    %c0_58 = arith.constant 0 : index
    %93 = vector.load %arg5[%c2, %c0_57, %c0_58] : memref<9x128x128xbf16, #tpu.memory_space<vmem>>, vector<1x128x128xbf16>
    %94 = vector.shape_cast %93 : vector<1x128x128xbf16> to vector<128x128xbf16>
    %cst_59 = arith.constant dense<0.000000e+00> : vector<384x128xf32>
    %95 = tpu.matmul %92, %94, %cst_59 {dimension_numbers = #tpu.dot_dimension_numbers<[1], [0], [0], [1], [0, 0, 1, 1], [], []>} : vector<384x128xbf16>, vector<128x128xbf16>, vector<384x128xf32> -> vector<384x128xf32>
    %96 = arith.addf %91, %95 : vector<384x128xf32>
    %c31 = arith.constant 31 : index
    %c0_60 = arith.constant 0 : index
    %97 = vector.load %arg12[%c31, %c0_60] : memref<448x128xbf16, #tpu.memory_space<vmem>>, vector<384x128xbf16>
    %c3 = arith.constant 3 : index
    %c0_61 = arith.constant 0 : index
    %c0_62 = arith.constant 0 : index
    %98 = vector.load %arg5[%c3, %c0_61, %c0_62] : memref<9x128x128xbf16, #tpu.memory_space<vmem>>, vector<1x128x128xbf16>
    %99 = vector.shape_cast %98 : vector<1x128x128xbf16> to vector<128x128xbf16>
    %cst_63 = arith.constant dense<0.000000e+00> : vector<384x128xf32>
    %100 = tpu.matmul %97, %99, %cst_63 {dimension_numbers = #tpu.dot_dimension_numbers<[1], [0], [0], [1], [0, 0, 1, 1], [], []>} : vector<384x128xbf16>, vector<128x128xbf16>, vector<384x128xf32> -> vector<384x128xf32>
    %101 = arith.addf %96, %100 : vector<384x128xf32>
    %c32_64 = arith.constant 32 : index
    %c0_65 = arith.constant 0 : index
    %102 = vector.load %arg12[%c32_64, %c0_65] : memref<448x128xbf16, #tpu.memory_space<vmem>>, vector<384x128xbf16>
    %c4 = arith.constant 4 : index
    %c0_66 = arith.constant 0 : index
    %c0_67 = arith.constant 0 : index
    %103 = vector.load %arg5[%c4, %c0_66, %c0_67] : memref<9x128x128xbf16, #tpu.memory_space<vmem>>, vector<1x128x128xbf16>
    %104 = vector.shape_cast %103 : vector<1x128x128xbf16> to vector<128x128xbf16>
    %cst_68 = arith.constant dense<0.000000e+00> : vector<384x128xf32>
    %105 = tpu.matmul %102, %104, %cst_68 {dimension_numbers = #tpu.dot_dimension_numbers<[1], [0], [0], [1], [0, 0, 1, 1], [], []>} : vector<384x128xbf16>, vector<128x128xbf16>, vector<384x128xf32> -> vector<384x128xf32>
    %106 = arith.addf %101, %105 : vector<384x128xf32>
    %c33 = arith.constant 33 : index
    %c0_69 = arith.constant 0 : index
    %107 = vector.load %arg12[%c33, %c0_69] : memref<448x128xbf16, #tpu.memory_space<vmem>>, vector<384x128xbf16>
    %c5 = arith.constant 5 : index
    %c0_70 = arith.constant 0 : index
    %c0_71 = arith.constant 0 : index
    %108 = vector.load %arg5[%c5, %c0_70, %c0_71] : memref<9x128x128xbf16, #tpu.memory_space<vmem>>, vector<1x128x128xbf16>
    %109 = vector.shape_cast %108 : vector<1x128x128xbf16> to vector<128x128xbf16>
    %cst_72 = arith.constant dense<0.000000e+00> : vector<384x128xf32>
    %110 = tpu.matmul %107, %109, %cst_72 {dimension_numbers = #tpu.dot_dimension_numbers<[1], [0], [0], [1], [0, 0, 1, 1], [], []>} : vector<384x128xbf16>, vector<128x128xbf16>, vector<384x128xf32> -> vector<384x128xf32>
    %111 = arith.addf %106, %110 : vector<384x128xf32>
    %c55 = arith.constant 55 : index
    %c0_73 = arith.constant 0 : index
    %112 = vector.load %arg12[%c55, %c0_73] : memref<448x128xbf16, #tpu.memory_space<vmem>>, vector<384x128xbf16>
    %c6 = arith.constant 6 : index
    %c0_74 = arith.constant 0 : index
    %c0_75 = arith.constant 0 : index
    %113 = vector.load %arg5[%c6, %c0_74, %c0_75] : memref<9x128x128xbf16, #tpu.memory_space<vmem>>, vector<1x128x128xbf16>
    %114 = vector.shape_cast %113 : vector<1x128x128xbf16> to vector<128x128xbf16>
    %cst_76 = arith.constant dense<0.000000e+00> : vector<384x128xf32>
    %115 = tpu.matmul %112, %114, %cst_76 {dimension_numbers = #tpu.dot_dimension_numbers<[1], [0], [0], [1], [0, 0, 1, 1], [], []>} : vector<384x128xbf16>, vector<128x128xbf16>, vector<384x128xf32> -> vector<384x128xf32>
    %116 = arith.addf %111, %115 : vector<384x128xf32>
    %c56_77 = arith.constant 56 : index
    %c0_78 = arith.constant 0 : index
    %117 = vector.load %arg12[%c56_77, %c0_78] : memref<448x128xbf16, #tpu.memory_space<vmem>>, vector<384x128xbf16>
    %c7_79 = arith.constant 7 : index
    %c0_80 = arith.constant 0 : index
    %c0_81 = arith.constant 0 : index
    %118 = vector.load %arg5[%c7_79, %c0_80, %c0_81] : memref<9x128x128xbf16, #tpu.memory_space<vmem>>, vector<1x128x128xbf16>
    %119 = vector.shape_cast %118 : vector<1x128x128xbf16> to vector<128x128xbf16>
    %cst_82 = arith.constant dense<0.000000e+00> : vector<384x128xf32>
    %120 = tpu.matmul %117, %119, %cst_82 {dimension_numbers = #tpu.dot_dimension_numbers<[1], [0], [0], [1], [0, 0, 1, 1], [], []>} : vector<384x128xbf16>, vector<128x128xbf16>, vector<384x128xf32> -> vector<384x128xf32>
    %121 = arith.addf %116, %120 : vector<384x128xf32>
    %c57 = arith.constant 57 : index
    %c0_83 = arith.constant 0 : index
    %122 = vector.load %arg12[%c57, %c0_83] : memref<448x128xbf16, #tpu.memory_space<vmem>>, vector<384x128xbf16>
    %c8_84 = arith.constant 8 : index
    %c0_85 = arith.constant 0 : index
    %c0_86 = arith.constant 0 : index
    %123 = vector.load %arg5[%c8_84, %c0_85, %c0_86] : memref<9x128x128xbf16, #tpu.memory_space<vmem>>, vector<1x128x128xbf16>
    %124 = vector.shape_cast %123 : vector<1x128x128xbf16> to vector<128x128xbf16>
    %cst_87 = arith.constant dense<0.000000e+00> : vector<384x128xf32>
    %125 = tpu.matmul %122, %124, %cst_87 {dimension_numbers = #tpu.dot_dimension_numbers<[1], [0], [0], [1], [0, 0, 1, 1], [], []>} : vector<384x128xbf16>, vector<128x128xbf16>, vector<384x128xf32> -> vector<384x128xf32>
    %126 = arith.addf %121, %125 : vector<384x128xf32>
    %c0_88 = arith.constant 0 : index
    %c0_89 = arith.constant 0 : index
    %127 = vector.load %arg6[%c0_88, %c0_89] : memref<1x128xf32, #tpu.memory_space<vmem>>, vector<1x128xf32>
    %128 = vector.broadcast %127 : vector<1x128xf32> to vector<384x128xf32>
    %129 = arith.mulf %126, %128 : vector<384x128xf32>
    %c0_90 = arith.constant 0 : index
    %c0_91 = arith.constant 0 : index
    %130 = vector.load %arg7[%c0_90, %c0_91] : memref<1x128xf32, #tpu.memory_space<vmem>>, vector<1x128xf32>
    %131 = vector.broadcast %130 : vector<1x128xf32> to vector<384x128xf32>
    %132 = arith.addf %129, %131 : vector<384x128xf32>
    %cst_92 = arith.constant 0.000000e+00 : f32
    %133 = vector.broadcast %cst_92 : f32 to vector<384x128xf32>
    %134 = arith.maximumf %132, %133 : vector<384x128xf32>
    %135 = arith.truncf %134 : vector<384x128xf32> to vector<384x128xbf16>
    %136 = vector.shape_cast %135 : vector<384x128xbf16> to vector<16x24x128xbf16>
    %137 = vector.extract_strided_slice %136 {offsets = [0, 0, 0], sizes = [16, 16, 128], strides = [1, 1, 1]} : vector<16x24x128xbf16> to vector<16x16x128xbf16>
    %138 = vector.shape_cast %137 : vector<16x16x128xbf16> to vector<256x128xbf16>
    %c0_93 = arith.constant 0 : index
    %c0_94 = arith.constant 0 : index
    %139 = vector.load %arg8[%c0_93, %c0_94] : memref<128x128xbf16, #tpu.memory_space<vmem>>, vector<128x128xbf16>
    %cst_95 = arith.constant dense<0.000000e+00> : vector<256x128xf32>
    %140 = tpu.matmul %138, %139, %cst_95 {dimension_numbers = #tpu.dot_dimension_numbers<[1], [0], [0], [1], [0, 0, 1, 1], [], []>} : vector<256x128xbf16>, vector<128x128xbf16>, vector<256x128xf32> -> vector<256x128xf32>
    %c0_96 = arith.constant 0 : index
    %c0_97 = arith.constant 0 : index
    %141 = vector.load %arg9[%c0_96, %c0_97] : memref<1x128xf32, #tpu.memory_space<vmem>>, vector<1x128xf32>
    %142 = vector.broadcast %141 : vector<1x128xf32> to vector<256x128xf32>
    %143 = arith.mulf %140, %142 : vector<256x128xf32>
    %c0_98 = arith.constant 0 : index
    %c0_99 = arith.constant 0 : index
    %144 = vector.load %arg10[%c0_98, %c0_99] : memref<1x128xf32, #tpu.memory_space<vmem>>, vector<1x128xf32>
    %145 = vector.broadcast %144 : vector<1x128xf32> to vector<256x128xf32>
    %146 = arith.addf %143, %145 : vector<256x128xf32>
    %c0_100 = arith.constant 0 : index
    %c0_101 = arith.constant 0 : index
    %c0_102 = arith.constant 0 : index
    %c0_103 = arith.constant 0 : index
    %147 = vector.load %arg1[%c0_100, %c0_101, %c0_102, %c0_103] : memref<1x16x16x128xbf16, #tpu.memory_space<vmem>>, vector<1x16x16x128xbf16>
    %148 = vector.shape_cast %147 : vector<1x16x16x128xbf16> to vector<16x16x128xbf16>
    %149 = vector.shape_cast %148 : vector<16x16x128xbf16> to vector<256x128xbf16>
    %150 = arith.extf %149 : vector<256x128xbf16> to vector<256x128xf32>
    %151 = arith.addf %146, %150 : vector<256x128xf32>
    %cst_104 = arith.constant 0.000000e+00 : f32
    %152 = vector.broadcast %cst_104 : f32 to vector<256x128xf32>
    %153 = arith.maximumf %151, %152 : vector<256x128xf32>
    %154 = vector.shape_cast %153 : vector<256x128xf32> to vector<16x16x128xf32>
    %155 = arith.truncf %154 : vector<16x16x128xf32> to vector<16x16x128xbf16>
    %c0_105 = arith.constant 0 : index
    %c0_106 = arith.constant 0 : index
    %c0_107 = arith.constant 0 : index
    %c0_108 = arith.constant 0 : index
    %156 = vector.load %arg11[%c0_105, %c0_106, %c0_107, %c0_108] : memref<1x16x16x128xbf16, #tpu.memory_space<vmem>>, vector<1x16x16x128xbf16>
    %157 = vector.shape_cast %156 : vector<1x16x16x128xbf16> to vector<16x16x128xbf16>
    %158 = vector.shape_cast %155 : vector<16x16x128xbf16> to vector<1x16x16x128xbf16>
    tpu.vector_store %arg11[%c0_105, %c0_106, %c0_107, %c0_108], %158 {strides = array<i32>} : memref<1x16x16x128xbf16, #tpu.memory_space<vmem>>, vector<1x16x16x128xbf16>,
    return
  }
  func.func @transform_0(%arg0: i32) -> (i32, i32, i32, i32) {
    %c0_i32 = arith.constant 0 : i32
    %c0_i32_0 = arith.constant 0 : i32
    %c0_i32_1 = arith.constant 0 : i32
    %c0_i32_2 = arith.constant 0 : i32
    return %arg0, %c0_i32, %c0_i32_0, %c0_i32_1 : i32, i32, i32, i32
  }
  func.func @transform_1(%arg0: i32) -> (i32, i32) {
    %c0_i32 = arith.constant 0 : i32
    %c0_i32_0 = arith.constant 0 : i32
    %c0_i32_1 = arith.constant 0 : i32
    return %c0_i32, %c0_i32_0 : i32, i32
  }
  func.func @transform_2(%arg0: i32) -> (i32, i32) {
    %c0_i32 = arith.constant 0 : i32
    %c0_i32_0 = arith.constant 0 : i32
    %c0_i32_1 = arith.constant 0 : i32
    return %c0_i32, %c0_i32_0 : i32, i32
  }
  func.func @transform_3(%arg0: i32) -> (i32, i32) {
    %c0_i32 = arith.constant 0 : i32
    %c0_i32_0 = arith.constant 0 : i32
    %c0_i32_1 = arith.constant 0 : i32
    return %c0_i32, %c0_i32_0 : i32, i32
  }
  func.func @transform_4(%arg0: i32) -> (i32, i32, i32) {
    %c0_i32 = arith.constant 0 : i32
    %c0_i32_0 = arith.constant 0 : i32
    %c0_i32_1 = arith.constant 0 : i32
    %c0_i32_2 = arith.constant 0 : i32
    return %c0_i32, %c0_i32_0, %c0_i32_1 : i32, i32, i32
  }
  func.func @transform_5(%arg0: i32) -> (i32, i32) {
    %c0_i32 = arith.constant 0 : i32
    %c0_i32_0 = arith.constant 0 : i32
    %c0_i32_1 = arith.constant 0 : i32
    return %c0_i32, %c0_i32_0 : i32, i32
  }
  func.func @transform_6(%arg0: i32) -> (i32, i32) {
    %c0_i32 = arith.constant 0 : i32
    %c0_i32_0 = arith.constant 0 : i32
    %c0_i32_1 = arith.constant 0 : i32
    return %c0_i32, %c0_i32_0 : i32, i32
  }
  func.func @transform_7(%arg0: i32) -> (i32, i32) {
    %c0_i32 = arith.constant 0 : i32
    %c0_i32_0 = arith.constant 0 : i32
    %c0_i32_1 = arith.constant 0 : i32
    return %c0_i32, %c0_i32_0 : i32, i32
  }
  func.func @transform_8(%arg0: i32) -> (i32, i32) {
    %c0_i32 = arith.constant 0 : i32
    %c0_i32_0 = arith.constant 0 : i32
    %c0_i32_1 = arith.constant 0 : i32
    return %c0_i32, %c0_i32_0 : i32, i32
  }
  func.func @transform_9(%arg0: i32) -> (i32, i32) {
    %c0_i32 = arith.constant 0 : i32
    %c0_i32_0 = arith.constant 0 : i32
    %c0_i32_1 = arith.constant 0 : i32
    return %c0_i32, %c0_i32_0 : i32, i32
  }
  func.func @transform_10(%arg0: i32) -> (i32, i32, i32, i32) {
    %c0_i32 = arith.constant 0 : i32
    %c0_i32_0 = arith.constant 0 : i32
    %c0_i32_1 = arith.constant 0 : i32
    %c0_i32_2 = arith.constant 0 : i32
    return %arg0, %c0_i32, %c0_i32_0, %c0_i32_1 : i32, i32, i32, i32
  }
}

</mosaic_0001>

<bundles_post_ra>
// kernel: a_call__.1
= control target key start
LH: loop header
LB: loop body
LE: loop exit
PB: predicated region body
PF: predicated region fallthrough
CT: control target
= control target key end

     0   :  { %s8375_s13 = smov 0   ;;  %s10420_s0 = inlined_call_operand.vmem [shape: bf16[2,16,16,128], index: 0, kind: input, shape index: {}]   ;;  %s10421_s1 = inlined_call_operand.vmem [shape: bf16[128,128], index: 1, kind: input, shape index: {}]   ;;  %s10422_s2 = inlined_call_operand.vmem [shape: f32[1,128], index: 2, kind: input, shape index: {}]   ;;  %s10423_s3 = inlined_call_operand.vmem [shape: f32[1,128], index: 3, kind: input, shape index: {}]   ;;  %s10424_s4 = inlined_call_operand.vmem [shape: bf16[9,128,128], index: 4, kind: input, shape index: {}]   ;;  %s10425_s5 = inlined_call_operand.vmem [shape: f32[1,128], index: 5, kind: input, shape index: {}]   ;;  %s10426_s6 = inlined_call_operand.vmem [shape: f32[1,128], index: 6, kind: input, shape index: {}]   ;;  %s10427_s7 = inlined_call_operand.vmem [shape: bf16[128,128], index: 7, kind: input, shape index: {}]   ;;  %s10428_s8 = inlined_call_operand.vmem [shape: f32[1,128], index: 8, kind: input, shape index: {}]   ;;  %s10429_s9 = inlined_call_operand.vmem [shape: f32[1,128], index: 9, kind: input, shape index: {}]   ;;  %s10430_s10 = inlined_call_operand.vmem [shape: bf16[2,16,16,128], index: 10, kind: output, shape index: {}]  }
   0x1 LB: > { %s6276_s14 = sadd.s32 4294967295, %s8317_s13   ;;  %p6280_p0 = scmp.ge.s32.totalorder %s8317_s13, 1  ;;  %s8317_s13 = sphi %s8375_s13, %s20_s13  }
   0x2   : > { %p312_p1 = scmp.lt.s32.totalorder %s8317_s13, 3 }
   0x4   : > { %p313_p2 = pnand %p6280_p0, %p312_p1 }
   0x6   : > { %316 = sbr.rel (%p313_p2) target bundleno = 1229 (0x4cd), region = 60 }
   0xd   : > { %v8182_v0 = vld [vmem:[%s10421_s1] sm:$0xff]   ;;  %p350_p3 = scmp.lt.s32.totalorder %s6276_s14, 1  ;;  %v8183_v1 = vld [vmem:[%s10421_s1 + $0x8] sm:$0xff]   ;;  %v8184_v2 = vld [vmem:[%s10421_s1 + $0x10] sm:$0xff]   ;;  %v10431_v33 = vmov 0   ;;  %vm992_vm0 = vcmask 1043456  }
   0xe   : > { %7101 = vmatprep.subr.bf16.mxu0 %v8182_v0  ;;  %v8185_v3 = vld [vmem:[%s10421_s1 + $0x18] sm:$0xff]   ;;  %v8186_v5 = vld [vmem:[%s10421_s1 + $0x20] sm:$0xff]   ;;  %v8187_v6 = vld [vmem:[%s10421_s1 + $0x28] sm:$0xff]   ;;  %361 = vst [vmem:[#allocation2] sm:$0xff] %v10431_v33  ;;  %v8493_v40 = vrot.slane %v10431_v33, 4 }
   0xf   : > { %s10893_s14 = smov (!%p350_p3, %s6276_s14), 1  ;;  %7102 = vmatpush3.bf16.msra.mxu0 %v8182_v0  ;;  %v8188_v7 = vld [vmem:[%s10421_s1 + $0x30] sm:$0xff]   ;;  %v8189_v8 = vld [vmem:[%s10421_s1 + $0x38] sm:$0xff]   ;;  %v8208_v9 = vld [vmem:[%s10424_s4 + $0xc0] sm:$0xff]   ;;  %362 = vst [vmem:[#allocation2 + $0x8] sm:$0xff] %v10431_v33 }
  0x10   : > { %7103 = vmatprep.subr.bf16.mxu0 %v8183_v1  ;;  %s6557_s21 = sshll.u32 %s10893_s14, 7  ;;  %v8206_v10 = vld [vmem:[%s10424_s4 + $0x40] sm:$0xff]   ;;  %7341 = vmatprep.subr.bf16.mxu1 %v8208_v9  ;;  %v8210_v12 = vld [vmem:[%s10424_s4 + $0xc8] sm:$0xff]   ;;  %v8209_v15 = vld [vmem:[%s10424_s4 + $0x50] sm:$0xff]   ;;  %363 = vst [vmem:[#allocation2 + $0x18] sm:$0xf] %v10431_v33 }
  0x11   : > { %s8400_s24 = scalar_lea.vmem %s10420_s0, %s6557_s21  ;;  %7342 = vmatpush3.bf16.msra.mxu1 %v8208_v9  ;;  %v8207_v14 = vld [vmem:[%s10424_s4 + $0x48] sm:$0xff]   ;;  %v8211_v29 = vld [vmem:[%s10424_s4 + $0x58] sm:$0xff]   ;;  %v8213_v30 = vld [vmem:[%s10424_s4 + $0x60] sm:$0xff]   ;;  %364 = vst [vmem:[#allocation2 + $0x20] sm:$0xf0] %v10431_v33  ;;  %s10332_s17 = scalar_lea.vmem %s10430_s10, %s6557_s21 }
  0x12   : > { %v8190_v4 = vld [vmem:[%s8400_s24] sm:$0xff]   ;;  %v8191_v11 = vld [vmem:[%s8400_s24 + $0x8] sm:$0xff]   ;;  %v8192_v13 = vld [vmem:[%s8400_s24 + $0x10] sm:$0xff]   ;;  %7343 = vmatprep.subr.bf16.mxu1 %v8210_v12  ;;  %365 = vst [vmem:[#allocation2 + $0x30] sm:$0xf] %v10431_v33 }
  0x13   : > { %7104 = vmatpush3.bf16.msra.mxu0 %v8183_v1  ;;  %7117 = vmatprep.mubr.bf16.mxu0 %v8190_v4  ;;  %v8193_v16 = vld [vmem:[%s8400_s24 + $0x18] sm:$0xff]   ;;  %v8194_v17 = vld [vmem:[%s8400_s24 + $0x20] sm:$0xff]   ;;  %v8195_v18 = vld [vmem:[%s8400_s24 + $0x28] sm:$0xff]   ;;  %366 = vst [vmem:[#allocation2 + $0x38] sm:$0xf0] %v10431_v33 }
  0x14   : > { %7105 = vmatprep.subr.bf16.mxu0 %v8184_v2  ;;  %v8196_v19 = vld [vmem:[%s8400_s24 + $0x30] sm:$0xff]   ;;  %v8197_v20 = vld [vmem:[%s8400_s24 + $0x38] sm:$0xff]   ;;  %v8198_v21 = vld [vmem:[%s8400_s24 + $0x40] sm:$0xff]   ;;  %367 = vst [vmem:[#allocation2 + $0x48] sm:$0xf] %v10431_v33 }
  0x15   : > { %7344 = vmatpush3.bf16.msra.mxu1 %v8210_v12  ;;  %v8199_v22 = vld [vmem:[%s8400_s24 + $0x48] sm:$0xff]   ;;  %v8200_v23 = vld [vmem:[%s8400_s24 + $0x50] sm:$0xff]   ;;  %v8201_v24 = vld [vmem:[%s8400_s24 + $0x58] sm:$0xff]   ;;  %368 = vst [vmem:[#allocation2 + $0x50] sm:$0xf0] %v10431_v33 }
  0x16   : > { %v8202_v25 = vld [vmem:[%s8400_s24 + $0x60] sm:$0xff]   ;;  %v8203_v26 = vld [vmem:[%s8400_s24 + $0x68] sm:$0xff]   ;;  %v8204_v27 = vld [vmem:[%s8400_s24 + $0x70] sm:$0xff]   ;;  %369 = vst [vmem:[#allocation2 + $0x60] sm:$0xf] %v10431_v33 }
  0x17   : > { %7106 = vmatpush3.bf16.msra.mxu0 %v8184_v2  ;;  %v8205_v28 = vld [vmem:[%s8400_s24 + $0x78] sm:$0xff]   ;;  %v8215_v31 = vld [vmem:[%s10424_s4 + $0x68] sm:$0xff]   ;;  %v8212_v32 = vld [vmem:[%s10424_s4 + $0xd0] sm:$0xff]   ;;  %370 = vst [vmem:[#allocation2 + $0x68] sm:$0xf0] %v10431_v33 }
  0x18   : > { %7107 = vmatprep.subr.bf16.mxu0 %v8185_v3  ;;  %371 = vst [vmem:[#allocation2 + $0x78] sm:$0xf] %v10431_v33  ;;  %372 = vst [vmem:[#allocation2 + $0x80] sm:$0xf0] %v10431_v33  ;;  %7345 = vmatprep.subr.bf16.mxu1 %v8212_v32  ;;  %v8217_v34 = vld [vmem:[%s10424_s4 + $0x70] sm:$0xff]   ;;  %v8214_v35 = vld [vmem:[%s10424_s4 + $0xd8] sm:$0xff]  }
  0x19   : > { %373 = vst [vmem:[#allocation2 + $0x90] sm:$0xf] %v10431_v33  ;;  %374 = vst [vmem:[#allocation2 + $0x98] sm:$0xf0] %v10431_v33  ;;  %7346 = vmatpush3.bf16.msra.mxu1 %v8212_v32  ;;  %v8219_v36 = vld [vmem:[%s10424_s4 + $0x78] sm:$0xff]   ;;  %v8216_v37 = vld [vmem:[%s10424_s4 + $0xe0] sm:$0xff]  }
  0x1a   : > { %375 = vst [vmem:[#allocation2 + $0xa8] sm:$0xf] %v10431_v33  ;;  %376 = vst [vmem:[#allocation2 + $0xb0] sm:$0xf0] %v10431_v33  ;;  %7347 = vmatprep.subr.bf16.mxu1 %v8214_v35  ;;  %v949_v38 = vld [vmem:[#allocation2] sm:$0xf0] }
  0x1b   : > { %7108 = vmatpush3.bf16.msra.mxu0 %v8185_v3  ;;  %377 = vst [vmem:[#allocation2 + $0xc0] sm:$0xf] %v10431_v33  ;;  %378 = vst [vmem:[#allocation2 + $0xc8] sm:$0xf0] %v10431_v33  ;;  %v993_v39 = vrot.slane %v949_v38, 4  ;;  %v8218_v42 = vld [vmem:[%s10424_s4 + $0xe8] sm:$0xff]  }
  0x1c   : > { %7109 = vmatprep.subr.bf16.mxu0 %v8186_v5  ;;  %379 = vst [vmem:[#allocation2 + $0xd0] sm:$0xff] %v10431_v33  ;;  %380 = vst [vmem:[#allocation2 + $0xd8] sm:$0xff] %v10431_v33  ;;  %v8220_v43 = vld [vmem:[%s10424_s4 + $0xf0] sm:$0xff]   ;;  %v8221_v44 = vld [vmem:[%s10424_s4 + $0xf8] sm:$0xff]   ;;  %vm2376_vm1 = vsmask.f32 256 }
  0x1d   : > { %7348 = vmatpush3.bf16.msra.mxu1 %v8214_v35  ;;  %v995_v41 = vsel %vm992_vm0, %v993_v39, %v8493_v40  ;;  %v8509_v45 = vld [vmem:[%s10424_s4 + $0x100] sm:$0xff]   ;;  %v2334_v59 = vld [vmem:[#allocation2 + $0x8] sm:$0x80]  ;;  %v8230_v39 = vld [vmem:[%s10424_s4 + $0x10] sm:$0xff]   ;;  %vm1339_vm2 = vsmask.f32 4352 }
  0x1e   : > { %7349 = vmatprep.subr.bf16.mxu1 %v8216_v37  ;;  %v8227_v46 = vld [vmem:[%s10424_s4] sm:$0xff]   ;;  %v2378_v0 = vshrl.u32 %v2334_v59, 16  ;;  %vm1879_vm3 = vsmask.f32 3328  ;;  %vm3298_vm4 = vsmask.f32 7424 }
  0x1f   : > { %7110 = vmatpush3.bf16.msra.mxu0 %v8186_v5  ;;  %v8518_v47 = vld [vmem:[%s10422_s2] ss:$0 sm:$0xff] }
  0x20   : > { %7111 = vmatprep.subr.bf16.mxu0 %v8187_v6  ;;  %v8523_v49 = vld [vmem:[%s10423_s3] ss:$0 sm:$0xff] }
  0x21   : > { %7350 = vmatpush3.bf16.msra.mxu1 %v8216_v37 }
  0x22   : > { %7351 = vmatprep.subr.bf16.mxu1 %v8218_v42 }
  0x23   : > { %7112 = vmatpush3.bf16.msra.mxu0 %v8187_v6 }
  0x24   : > { %7113 = vmatprep.subr.bf16.mxu0 %v8188_v7 }
  0x25   : > { %7352 = vmatpush3.bf16.msra.mxu1 %v8218_v42 }
  0x26   : > { %7353 = vmatprep.subr.bf16.mxu1 %v8220_v43 }
  0x27   : > { %7114 = vmatpush3.bf16.msra.mxu0 %v8188_v7 }
  0x28   : > { %7115 = vmatprep.subr.bf16.mxu0 %v8189_v8 }
  0x29   : > { %7354 = vmatpush3.bf16.msra.mxu1 %v8220_v43 }
  0x2a   : > { %7355 = vmatprep.subr.bf16.mxu1 %v8221_v44 }
  0x2b   : > { %7116 = vmatpush3.bf16.msra.mxu0 %v8189_v8 }
  0x2c   : > { %7149 = vmatprep.subr.bf16.mxu0 %v8206_v10 }
  0x2d   : > { %7356 = vmatpush3.bf16.msra.mxu1 %v8221_v44 }
  0x2e   : > { %7118 = vmatmul.mubr.bf16.vlgmr.msra.gmra.mrb[0].mxu0 %v8191_v11  ;;  %7405 = vmatprep.subr.bf16.mxu1 %v8509_v45 }
  0x2f   : > { %7121 = vmatprep.mubr.bf16.mxu0 %v8192_v13  ;;  %7150 = vmatpush3.bf16.msra.mxu0 %v8206_v10 }
  0x30   : > { %7151 = vmatprep.subr.bf16.mxu0 %v8207_v14 }
  0x33   : > { %7152 = vmatpush3.bf16.msra.mxu0 %v8207_v14  ;;  %v2380_v14 = vrot.slane %v2378_v0, 7  ;;  %v8231_v0 = vld [vmem:[%s10424_s4 + $0x18] sm:$0xff]  }
  0x34   : > { %7153 = vmatprep.subr.bf16.mxu0 %v8209_v15 }
  0x36   : > { %7122 = vmatmul.mubr.bf16.gmra.mrb[4].mxu0 %v8193_v16 }
  0x37   : > { %7125 = vmatprep.mubr.bf16.mxu0 %v8194_v17  ;;  %7154 = vmatpush3.bf16.msra.mxu0 %v8209_v15 }
  0x38   : > { %7155 = vmatprep.subr.bf16.mxu0 %v8211_v29 }
  0x3b   : > { %7156 = vmatpush3.bf16.msra.mxu0 %v8211_v29 }
  0x3c   : > { %7157 = vmatprep.subr.bf16.mxu0 %v8213_v30 }
  0x3e   : > { %7126 = vmatmul.mubr.bf16.gmra.mrb[8].mxu0 %v8195_v18 }
  0x3f   : > { %7129 = vmatprep.mubr.bf16.mxu0 %v8196_v19  ;;  %7158 = vmatpush3.bf16.msra.mxu0 %v8213_v30 }
  0x40   : > { %7159 = vmatprep.subr.bf16.mxu0 %v8215_v31 }
  0x43   : > { %7160 = vmatpush3.bf16.msra.mxu0 %v8215_v31 }
  0x44   : > { %7161 = vmatprep.subr.bf16.mxu0 %v8217_v34 }
  0x46   : > { %7130 = vmatmul.mubr.bf16.gmra.mrb[12].mxu0 %v8197_v20 }
  0x47   : > { %7133 = vmatprep.mubr.bf16.mxu0 %v8198_v21  ;;  %7162 = vmatpush3.bf16.msra.mxu0 %v8217_v34 }
  0x48   : > { %7163 = vmatprep.subr.bf16.mxu0 %v8219_v36 }
  0x4b   : > { %7164 = vmatpush3.bf16.msra.mxu0 %v8219_v36 }
  0x4c   : > { %7213 = vmatprep.subr.bf16.mxu0 %v8227_v46 }
  0x4e   : > { %7134 = vmatmul.mubr.bf16.gmra.mrb[16].mxu0 %v8199_v22  ;;  %v8229_v22 = vld [vmem:[%s10424_s4 + $0x8] sm:$0xff]  }
  0x4f   : > { %7137 = vmatprep.mubr.bf16.mxu0 %v8200_v23 }
  0x56   : > { %7138 = vmatmul.mubr.bf16.gmra.mrb[20].mxu0 %v8201_v24 }
  0x57   : > { %7141 = vmatprep.mubr.bf16.mxu0 %v8202_v25 }
  0x5e   : > { %7142 = vmatmul.mubr.bf16.gmra.mrb[24].mxu0 %v8203_v26 }
  0x5f   : > { %7145 = vmatprep.mubr.bf16.mxu0 %v8204_v27 }
  0x66   : > { %7146 = vmatmul.mubr.bf16.gmra.mrb[28].mxu0 %v8205_v28 }
  0x67   : > { %7165 = vmatprep.mubr.bf16.mxu0 %v995_v41 }
 0x101   : > { %v7119_v48 = vpop.f32.mrb[0].mxu0 }
 0x102   : > { %v743_v50 = vmul.f32 %v7119_v48, %v8518_v47  ;;  %v607_v51 = vpop.f32.mrb[1].mxu0 }
 0x103   : > { %v741_v52 = vmul.f32 %v8518_v47, %v607_v51  ;;  %v7120_v53 = vpop.f32.mrb[2].mxu0 }
 0x104   : > { %v782_v54 = vadd.f32 %v8523_v49, %v743_v50  ;;  %v744_v55 = vmul.f32 %v7120_v53, %v8518_v47  ;;  %v610_v56 = vpop.f32.mrb[3].mxu0 }
 0x105   : > { %v780_v57 = vadd.f32 %v8523_v49, %v741_v52  ;;  %v742_v58 = vmul.f32 %v8518_v47, %v610_v56 }
 0x106   : > { %v783_v60 = vadd.f32 %v8523_v49, %v744_v55  ;;  %v814_v62 = vmax.f32 %v782_v54, 0.0 }
 0x107   : > { %v781_v61 = vadd.f32 %v8523_v49, %v742_v58  ;;  %v812_v1 = vmax.f32 %v780_v57, 0.0 }
 0x108   : > { %v815_v63 = vmax.f32 %v783_v60, 0.0 }
 0x109   : > { %v813_v2 = vmax.f32 %v781_v61, 0.0  ;;  %v7123_v3 = vpop.f32.mrb[4].mxu0 }
 0x10a   : > { %v845_v4 = vpack.c.bf16 %v815_v63, %v814_v62  ;;  %v747_v5 = vmul.f32 %v7123_v3, %v8518_v47  ;;  %v623_v6 = vpop.f32.mrb[5].mxu0 }
 0x10b   : > { %v8534_v7 = vpack.c.bf16 %v813_v2, %v812_v1  ;;  %v745_v8 = vmul.f32 %v8518_v47, %v623_v6  ;;  %v7124_v9 = vpop.f32.mrb[6].mxu0 }
 0x10c   : > { %v862_v10 = vrot.slane %v845_v4, 4  ;;  %v786_v11 = vadd.f32 %v8523_v49, %v747_v5  ;;  %v748_v12 = vmul.f32 %v7124_v9, %v8518_v47  ;;  %v626_v13 = vpop.f32.mrb[7].mxu0 }
 0x10d   : > { %860 = vst [vmem:[#allocation2 + $0x10] sm:$0xff] %v8534_v7  ;;  %v784_v15 = vadd.f32 %v8523_v49, %v745_v8  ;;  %v746_v16 = vmul.f32 %v8518_v47, %v626_v13  ;;  %v996_v17 = vrot.slane %v8534_v7, 4  ;;  %v8544_v18 = vshrl.u32 %v8534_v7, 16 }
 0x10e   : > { %864 = vst [vmem:[#allocation2 + $0x20] ss:$-4 sps:$4 sm:$0xff] %v862_v10   ;;  %v818_v19 = vmax.f32 %v786_v11, 0.0  ;;  %v787_v20 = vadd.f32 %v8523_v49, %v748_v12  ;;  %v2385_v21 = vshll.u32 %v8534_v7, 16 }
 0x10f   : > { %v816_v23 = vmax.f32 %v784_v15, 0.0  ;;  %v785_v24 = vadd.f32 %v8523_v49, %v746_v16  ;;  %v997_v25 = vsel %vm992_vm0, %v8493_v40, %v996_v17  ;;  %v2384_v26 = vrot.slane %v8544_v18, 7 }
 0x110   : > { %v819_v27 = vmax.f32 %v787_v20, 0.0  ;;  %7166 = vmatmul.mubr.bf16.vlgmr.msra.gmra.mrb[32].mxu0 %v997_v25  ;;  %v1360_v28 = vrot.slane %v8544_v18, 3  ;;  %v1363_v29 = vrot.slane %v2385_v21, 4  ;;  %v1892_v30 = vrot.slane %v8544_v18, 4  ;;  %v8639_v18 = vld [vmem:[%s10424_s4 + $0x20] sm:$0xff]  }
 0x111   : > { %v817_v31 = vmax.f32 %v785_v24, 0.0  ;;  %v7127_v32 = vpop.f32.mrb[8].mxu0  ;;  %v2387_v34 = vor.u32 %v2385_v21, %v2384_v26  ;;  %7214 = vmatpush3.bf16.msra.mxu0 %v8227_v46  ;;  %v1893_v35 = vrot.slane %v2385_v21, 5 }
 0x112   : > { %v847_v36 = vpack.c.bf16 %v819_v27, %v818_v19  ;;  %v751_v37 = vmul.f32 %v7127_v32, %v8518_v47  ;;  %v639_v38 = vpop.f32.mrb[9].mxu0  ;;  %7215 = vmatprep.subr.bf16.mxu0 %v8229_v22  ;;  %v8563_v41 = vor.u32 %v1363_v29, %v1360_v28  ;;  %v8223_v27 = vld [vmem:[%s10424_s4 + $0x108] sm:$0xff]  }
 0x113   : > { %v8565_v42 = vpack.c.bf16 %v817_v31, %v816_v23  ;;  %v749_v43 = vmul.f32 %v8518_v47, %v639_v38  ;;  %v7128_v44 = vpop.f32.mrb[10].mxu0  ;;  %v2388_v48 = vsel %vm2376_vm1, %v2380_v14, %v2387_v34  ;;  %v8569_v46 = vor.u32 %v1893_v35, %v1892_v30 }
 0x114   : > { %v868_v50 = vrot.slane %v847_v36, 4  ;;  %v790_v51 = vadd.f32 %v8523_v49, %v751_v37  ;;  %v752_v52 = vmul.f32 %v7128_v44, %v8518_v47  ;;  %v642_v53 = vpop.f32.mrb[11].mxu0  ;;  %7357 = vmatprep.mubr.bf16.mxu1 %v2388_v48 }
 0x115   : > { %10540 = vst [vmem:[#allocation3_spill] sm:$0xff] %v8569_v46  ;;  %866 = vst [vmem:[#allocation2 + $0x28] sm:$0xff] %v8565_v42  ;;  %v788_v54 = vadd.f32 %v8523_v49, %v749_v43  ;;  %v750_v55 = vmul.f32 %v8518_v47, %v642_v53  ;;  %v8576_v56 = vld [vmem:[#allocation2 + $0x18] sm:$0xff]  ;;  %v8578_v57 = vld [vmem:[#allocation2 + $0x20] sm:$0xff]  ;;  %v1002_v58 = vrot.slane %v8565_v42, 4  ;;  %v8582_v59 = vshrl.u32 %v8565_v42, 16  ;;  %7216 = vmatpush3.bf16.msra.mxu0 %v8229_v22 }
 0x116   : > { %870 = vst [vmem:[#allocation2 + $0x38] ss:$-4 sps:$4 sm:$0xff] %v868_v50   ;;  %v822_v60 = vmax.f32 %v790_v51, 0.0  ;;  %v791_v61 = vadd.f32 %v8523_v49, %v752_v52  ;;  %v998_v62 = vrot.slane %v8576_v56, 4  ;;  %v8587_v63 = vshrl.u32 %v8576_v56, 16  ;;  %7217 = vmatprep.subr.bf16.mxu0 %v8230_v39 }
 0x117   : > { %10541 = vst [vmem:[#allocation4_spill] sm:$0xff] %v8582_v59  ;;  %v820_v1 = vmax.f32 %v788_v54, 0.0  ;;  %v789_v2 = vadd.f32 %v8523_v49, %v750_v55  ;;  %v8594_v3 = vshll.u32 %v8576_v56, 16  ;;  %v8597_v4 = vshrl.u32 %v8578_v57, 16 }
 0x118   : > { %10542 = vst [vmem:[#allocation5_spill] sm:$0xff] %v8587_v63  ;;  %v823_v5 = vmax.f32 %v791_v61, 0.0  ;;  %v999_v6 = vsel %vm992_vm0, %v996_v17, %v998_v62  ;;  %v2392_v8 = vrot.slane %v8587_v63, 7  ;;  %v8602_v9 = vshll.u32 %v8578_v57, 16 }
 0x119   : > { %10543 = vst [vmem:[#allocation6_spill] sm:$0xff] %v8594_v3  ;;  %10544 = vst [vmem:[#allocation7_spill] sm:$0xff] %v8597_v4  ;;  %v821_v10 = vmax.f32 %v789_v2, 0.0  ;;  %v7131_v11 = vpop.f32.mrb[12].mxu0  ;;  %7169 = vmatprep.mubr.bf16.mxu0 %v999_v6  ;;  %v2400_v12 = vrot.slane %v8597_v4, 7  ;;  %v1000_v13 = vrot.slane %v8578_v57, 4  ;;  %7218 = vmatpush3.bf16.msra.mxu0 %v8230_v39 }
 0x11a   : > { %10545 = vst [vmem:[#allocation8_spill] sm:$0xff] %v8602_v9  ;;  %v2408_v14 = vrot.slane %v8582_v59, 7  ;;  %v849_v15 = vpack.c.bf16 %v823_v5, %v822_v60  ;;  %v755_v16 = vmul.f32 %v7131_v11, %v8518_v47  ;;  %v655_v19 = vpop.f32.mrb[13].mxu0  ;;  %v2395_v17 = vor.u32 %v8594_v3, %v2392_v8  ;;  %7219 = vmatprep.subr.bf16.mxu0 %v8231_v0 }
 0x11b   : > { %v8610_v20 = vshll.u32 %v8565_v42, 16  ;;  %v8612_v21 = vpack.c.bf16 %v821_v10, %v820_v1  ;;  %v753_v22 = vmul.f32 %v8518_v47, %v655_v19  ;;  %v7132_v23 = vpop.f32.mrb[14].mxu0  ;;  %v2403_v24 = vor.u32 %v8602_v9, %v2400_v12 }
 0x11c   : > { %v1001_v25 = vsel %vm992_vm0, %v998_v62, %v1000_v13  ;;  %v874_v28 = vrot.slane %v849_v15, 4  ;;  %v794_v29 = vadd.f32 %v8523_v49, %v755_v16  ;;  %v756_v30 = vmul.f32 %v7132_v23, %v8518_v47  ;;  %v658_v31 = vpop.f32.mrb[15].mxu0 }
 0x11d   : > { %10546 = vst [vmem:[#allocation9_spill] sm:$0xff] %v8610_v20  ;;  %10547 = vst [vmem:[#allocation10_spill] sm:$0xff] %v8612_v21  ;;  %v2396_v32 = vsel %vm2376_vm1, %v2384_v26, %v2395_v17  ;;  %7170 = vmatmul.mubr.bf16.gmra.mrb[36].mxu0 %v1001_v25  ;;  %v792_v34 = vadd.f32 %v8523_v49, %v753_v22  ;;  %v754_v35 = vmul.f32 %v8518_v47, %v658_v31  ;;  %v8632_v38 = vld [vmem:[#allocation2 + $0x30] sm:$0xff]  ;;  %v8634_v39 = vld [vmem:[#allocation2 + $0x38] sm:$0xff] }
 0x11e   : > { %872 = vst [vmem:[#allocation2 + $0x40] sm:$0xff] %v8612_v21  ;;  %7358 = vmatmul.mubr.bf16.vlgmr.msra.gmra.mrb[0].mxu1 %v2396_v32  ;;  %v2404_v36 = vsel %vm2376_vm1, %v2392_v8, %v2403_v24  ;;  %v1003_v37 = vsel %vm992_vm0, %v1000_v13, %v1002_v58  ;;  %10548 = vst [vmem:[#allocation11_spill] sm:$0xff] %v8634_v39  ;;  %v826_v26 = vmax.f32 %v794_v29, 0.0  ;;  %v8647_v48 = vshrl.u32 %v8632_v38, 16  ;;  %v8225_v17 = vld [vmem:[%s10424_s4 + $0x118] sm:$0xff]  }
 0x11f   : > { %876 = vst [vmem:[#allocation2 + $0x50] ss:$-4 sps:$4 sm:$0xff] %v874_v28   ;;  %v795_v43 = vadd.f32 %v8523_v49, %v756_v30  ;;  %7406 = vmatpush3.bf16.msra.mxu1 %v8509_v45  ;;  %7361 = vmatprep.mubr.bf16.mxu1 %v2404_v36  ;;  %v2411_v44 = vor.u32 %v8610_v20, %v2408_v14  ;;  %v824_v50 = vmax.f32 %v792_v34, 0.0  ;;  %v8651_v52 = vshll.u32 %v8632_v38, 16  ;;  %v8224_v45 = vld [vmem:[%s10424_s4 + $0x110] sm:$0xff]   ;;  %v8234_v28 = vld [vmem:[%s10424_s4 + $0x28] sm:$0xff]  }
 0x120   : > { %10549 = vst [vmem:[#allocation12_spill] sm:$0xff] %v8647_v48  ;;  %v793_v51 = vadd.f32 %v8523_v49, %v754_v35  ;;  %7173 = vmatprep.mubr.bf16.mxu0 %v1003_v37  ;;  %v1004_v53 = vrot.slane %v8632_v38, 4  ;;  %7407 = vmatprep.subr.bf16.mxu1 %v8223_v27  ;;  %v2416_v60 = vrot.slane %v8647_v48, 7  ;;  %v1006_v61 = vrot.slane %v8634_v39, 4 }
 0x121   : > { %10550 = vst [vmem:[#allocation13_spill] sm:$0xff] %v8651_v52  ;;  %v827_v54 = vmax.f32 %v795_v43, 0.0  ;;  %v2412_v55 = vsel %vm2376_vm1, %v2400_v12, %v2411_v44  ;;  %7220 = vmatpush3.bf16.msra.mxu0 %v8231_v0  ;;  %v7135_v1 = vpop.f32.mrb[16].mxu0  ;;  %v8664_v5 = vshrl.u32 %v8634_v39, 16  ;;  %v8667_v6 = vshll.u32 %v8634_v39, 16 }
 0x122   : > { %v825_v62 = vmax.f32 %v793_v51, 0.0  ;;  %v1005_v2 = vsel %vm992_vm0, %v1002_v58, %v1004_v53  ;;  %7221 = vmatprep.subr.bf16.mxu0 %v8639_v18  ;;  %v759_v10 = vmul.f32 %v7135_v1, %v8518_v47  ;;  %v671_v11 = vpop.f32.mrb[17].mxu0  ;;  %v2419_v0 = vor.u32 %v8651_v52, %v2416_v60  ;;  %v8226_v51 = vld [vmem:[%s10424_s4 + $0x120] sm:$0xff]  }
 0x123   : > { %10551 = vst [vmem:[#allocation14_spill] sm:$0xff] %v8664_v5  ;;  %10552 = vst [vmem:[#allocation15_spill] sm:$0xff] %v8667_v6  ;;  %v851_v8 = vpack.c.bf16 %v827_v54, %v826_v26  ;;  %v1007_v12 = vsel %vm992_vm0, %v1004_v53, %v1006_v61  ;;  %7408 = vmatpush3.bf16.msra.mxu1 %v8223_v27  ;;  %v757_v58 = vmul.f32 %v8518_v47, %v671_v11  ;;  %v7136_v15 = vpop.f32.mrb[18].mxu0 }
 0x124   : > { %v8673_v13 = vpack.c.bf16 %v825_v62, %v824_v50  ;;  %v2424_v16 = vrot.slane %v8664_v5, 7  ;;  %v8678_v19 = vshrl.u32 %v8612_v21, 16  ;;  %7409 = vmatprep.subr.bf16.mxu1 %v8224_v45  ;;  %v798_v23 = vadd.f32 %v8523_v49, %v759_v10  ;;  %v674_v25 = vpop.f32.mrb[19].mxu0  ;;  %v8235_v62 = vld [vmem:[%s10424_s4 + $0x30] sm:$0xff]  }
 0x125   : > { %v880_v22 = vrot.slane %v851_v8, 4  ;;  %v760_v24 = vmul.f32 %v7136_v15, %v8518_v47  ;;  %v2420_v27 = vsel %vm2376_vm1, %v2408_v14, %v2419_v0  ;;  %7174 = vmatmul.mubr.bf16.gmra.mrb[40].mxu0 %v1005_v2  ;;  %v796_v29 = vadd.f32 %v8523_v49, %v757_v58 }
 0x126   : > { %10553 = vst [vmem:[#allocation16_spill] sm:$0xff] %v8673_v13  ;;  %10554 = vst [vmem:[#allocation17_spill] sm:$0xff] %v8678_v19  ;;  %v758_v30 = vmul.f32 %v8518_v47, %v674_v25  ;;  %7362 = vmatmul.mubr.bf16.gmra.mrb[4].mxu1 %v2412_v55  ;;  %7177 = vmatprep.mubr.bf16.mxu0 %v1007_v12  ;;  %v2427_v31 = vor.u32 %v8667_v6, %v2424_v16  ;;  %v2432_v32 = vrot.slane %v8678_v19, 7  ;;  %v8696_v34 = vld [vmem:[#allocation2 + $0x48] sm:$0xff]  ;;  %v8703_v26 = vld [vmem:[#allocation2 + $0x50] sm:$0xff] }
 0x127   : > { %878 = vst [vmem:[#allocation2 + $0x58] sm:$0xff] %v8673_v13  ;;  %10555 = vst [vmem:[#allocation18_spill] sm:$0xff] %v8696_v34  ;;  %v830_v14 = vmax.f32 %v798_v23, 0.0  ;;  %v799_v35 = vadd.f32 %v8523_v49, %v760_v24  ;;  %7365 = vmatprep.mubr.bf16.mxu1 %v2420_v27  ;;  %v8700_v36 = vshll.u32 %v8612_v21, 16  ;;  %v1008_v37 = vrot.slane %v8612_v21, 4  ;;  %7410 = vmatpush3.bf16.msra.mxu1 %v8224_v45  ;;  %v8228_v25 = vld [vmem:[%s10424_s4 + $0x128] sm:$0xff]  }
 0x128   : > { %882 = vst [vmem:[#allocation2 + $0x68] ss:$-4 sps:$4 sm:$0xff] %v880_v22   ;;  %10557 = vst [vmem:[#allocation20_spill] sm:$0xff] %v8703_v26  ;;  %v828_v43 = vmax.f32 %v796_v29, 0.0  ;;  %v797_v44 = vadd.f32 %v8523_v49, %v758_v30  ;;  %v1010_v50 = vrot.slane %v8696_v34, 4  ;;  %7411 = vmatprep.subr.bf16.mxu1 %v8225_v17  ;;  %7222 = vmatpush3.bf16.msra.mxu0 %v8639_v18  ;;  %v8716_v55 = vshrl.u32 %v8696_v34, 16 }
 0x129   : > { %10556 = vst [vmem:[#allocation19_spill] sm:$0xff] %v8700_v36  ;;  %v831_v53 = vmax.f32 %v799_v35, 0.0  ;;  %v2428_v54 = vsel %vm2376_vm1, %v2416_v60, %v2427_v31  ;;  %v2435_v45 = vor.u32 %v8700_v36, %v2432_v32  ;;  %7223 = vmatprep.subr.bf16.mxu0 %v8234_v28  ;;  %v7139_v2 = vpop.f32.mrb[20].mxu0  ;;  %v1009_v8 = vsel %vm992_vm0, %v1006_v61, %v1008_v37  ;;  %v8237_v31 = vld [vmem:[%s10424_s4 + $0x38] sm:$0xff]  }
 0x12a   : > { %10558 = vst [vmem:[#allocation21_spill] sm:$0xff] %v8716_v55  ;;  %v829_v1 = vmax.f32 %v797_v44, 0.0  ;;  %v1011_v18 = vsel %vm992_vm0, %v1008_v37, %v1010_v50  ;;  %v8726_v60 = vshrl.u32 %v8703_v26, 16  ;;  %v763_v11 = vmul.f32 %v7139_v2, %v8518_v47  ;;  %v687_v0 = vpop.f32.mrb[21].mxu0 }
 0x12b   : > { %v853_v10 = vpack.c.bf16 %v831_v53, %v830_v14  ;;  %v2440_v12 = vrot.slane %v8716_v55, 7  ;;  %v8731_v58 = vshll.u32 %v8696_v34, 16  ;;  %7412 = vmatpush3.bf16.msra.mxu1 %v8225_v17  ;;  %v2436_v61 = vsel %vm2376_vm1, %v2424_v16, %v2435_v45  ;;  %v7140_v23 = vpop.f32.mrb[22].mxu0 }
 0x12c   : > { %10559 = vst [vmem:[#allocation22_spill] sm:$0xff] %v8726_v60  ;;  %v8733_v15 = vpack.c.bf16 %v829_v1, %v828_v43  ;;  %v761_v22 = vmul.f32 %v8518_v47, %v687_v0  ;;  %v2448_v24 = vrot.slane %v8726_v60, 7  ;;  %7413 = vmatprep.subr.bf16.mxu1 %v8226_v51  ;;  %7224 = vmatpush3.bf16.msra.mxu0 %v8234_v28  ;;  %v690_v30 = vpop.f32.mrb[23].mxu0  ;;  %v8744_v16 = vshll.u32 %v8703_v26, 16  ;;  %v8232_v1 = vld [vmem:[%s10424_s4 + $0x130] sm:$0xff]  }
 0x12d   : > { %10560 = vst [vmem:[#allocation23_spill] sm:$0xff] %v8731_v58  ;;  %v886_v27 = vrot.slane %v853_v10, 4  ;;  %v802_v29 = vadd.f32 %v8523_v49, %v763_v11  ;;  %v764_v17 = vmul.f32 %v7140_v23, %v8518_v47  ;;  %7178 = vmatmul.mubr.bf16.gmra.mrb[44].mxu0 %v1009_v8  ;;  %7225 = vmatprep.subr.bf16.mxu0 %v8235_v62  ;;  %v1012_v37 = vrot.slane %v8703_v26, 4 }
 0x12e   : > { %10561 = vst [vmem:[#allocation24_spill] sm:$0xff] %v8733_v15  ;;  %10562 = vst [vmem:[#allocation25_spill] sm:$0xff] %v8744_v16  ;;  %7366 = vmatmul.mubr.bf16.gmra.mrb[8].mxu1 %v2428_v54  ;;  %v800_v28 = vadd.f32 %v8523_v49, %v761_v22  ;;  %v762_v14 = vmul.f32 %v8518_v47, %v690_v30  ;;  %7181 = vmatprep.mubr.bf16.mxu0 %v1011_v18  ;;  %v1014_v18 = vrot.slane %v8673_v13, 4 }
 0x12f   : > { %884 = vst [vmem:[#allocation2 + $0x70] sm:$0xff] %v8733_v15  ;;  %v2443_v35 = vor.u32 %v8731_v58, %v2440_v12  ;;  %888 = vst [vmem:[#allocation2 + $0x80] ss:$-4 sps:$4 sm:$0xff] %v886_v27   ;;  %v834_v43 = vmax.f32 %v802_v29, 0.0  ;;  %7369 = vmatprep.mubr.bf16.mxu1 %v2436_v61  ;;  %v803_v44 = vadd.f32 %v8523_v49, %v764_v17  ;;  %v8757_v53 = vld [vmem:[#allocation2 + $0x60] sm:$0xff]  ;;  %7414 = vmatpush3.bf16.msra.mxu1 %v8226_v51 }
 0x130   : > { %10563 = vst [vmem:[#allocation26_spill] sm:$0xff] %v8757_v53  ;;  %v832_v54 = vmax.f32 %v800_v28, 0.0  ;;  %v801_v45 = vadd.f32 %v8523_v49, %v762_v14  ;;  %7415 = vmatprep.subr.bf16.mxu1 %v8228_v25  ;;  %7226 = vmatpush3.bf16.msra.mxu0 %v8235_v62  ;;  %v2451_v8 = vor.u32 %v8744_v16, %v2448_v24  ;;  %v8768_v10 = vshrl.u32 %v8673_v13, 16 }
 0x131   : > { %v835_v2 = vmax.f32 %v803_v44, 0.0  ;;  %7227 = vmatprep.subr.bf16.mxu0 %v8237_v31  ;;  %v2444_v11 = vsel %vm2376_vm1, %v2432_v32, %v2443_v35  ;;  %v7143_v0 = vpop.f32.mrb[24].mxu0  ;;  %v1013_v62 = vsel %vm992_vm0, %v1010_v50, %v1012_v37  ;;  %v8777_v61 = vshrl.u32 %v8757_v53, 16  ;;  %v8791_v35 = vld [vmem:[#allocation2 + $0x68] sm:$0xff] }
 0x132   : > { %10564 = vst [vmem:[#allocation27_spill] sm:$0xff] %v8768_v10  ;;  %v833_v51 = vmax.f32 %v801_v45, 0.0  ;;  %v767_v23 = vmul.f32 %v7143_v0, %v8518_v47  ;;  %v703_v27 = vpop.f32.mrb[25].mxu0  ;;  %v2456_v29 = vrot.slane %v8768_v10, 7  ;;  %v8782_v17 = vshll.u32 %v8673_v13, 16  ;;  %10568 = vst [vmem:[#allocation31_spill] sm:$0xff] %v8791_v35 }
 0x133   : > { %10565 = vst [vmem:[#allocation28_spill] sm:$0xff] %v8777_v61  ;;  %v855_v22 = vpack.c.bf16 %v835_v2, %v834_v43  ;;  %7416 = vmatpush3.bf16.msra.mxu1 %v8228_v25  ;;  %v765_v32 = vmul.f32 %v8518_v47, %v703_v27  ;;  %v7144_v28 = vpop.f32.mrb[26].mxu0  ;;  %v10433_v50 = vrot.slane %v8777_v61, 7  ;;  %v8789_v14 = vshll.u32 %v8757_v53, 16  ;;  %v8236_v43 = vld [vmem:[%s10424_s4 + $0x138] sm:$0xff]  }
 0x134   : > { %10566 = vst [vmem:[#allocation29_spill] sm:$0xff] %v8782_v17  ;;  %v8784_v30 = vpack.c.bf16 %v833_v51, %v832_v54  ;;  %7417 = vmatprep.subr.bf16.mxu1 %v8232_v1  ;;  %7228 = vmatpush3.bf16.msra.mxu0 %v8237_v31  ;;  %v806_v25 = vadd.f32 %v8523_v49, %v767_v23  ;;  %v706_v2 = vpop.f32.mrb[27].mxu0 }
 0x135   : > { %10567 = vst [vmem:[#allocation30_spill] sm:$0xff] %v8789_v14  ;;  %v892_v44 = vrot.slane %v855_v22, 4  ;;  %7182 = vmatmul.mubr.bf16.gmra.mrb[48].mxu0 %v1013_v62  ;;  %v768_v54 = vmul.f32 %v7144_v28, %v8518_v47  ;;  %v1015_v45 = vsel %vm992_vm0, %v1012_v37, %v1014_v18  ;;  %v2452_v51 = vsel %vm2376_vm1, %v2440_v12, %v2451_v8  ;;  %v8812_v12 = vld [vmem:[%s10424_s4 + $0x80] sm:$0xff]  }
 0x136   : > { %890 = vst [vmem:[#allocation2 + $0x88] sm:$0xff] %v8784_v30  ;;  %7370 = vmatmul.mubr.bf16.gmra.mrb[12].mxu1 %v2444_v11  ;;  %v804_v0 = vadd.f32 %v8523_v49, %v765_v32  ;;  %7185 = vmatprep.mubr.bf16.mxu0 %v1015_v45  ;;  %v766_v31 = vmul.f32 %v8518_v47, %v706_v2  ;;  %v1016_v22 = vrot.slane %v8757_v53, 4  ;;  %v838_v62 = vmax.f32 %v806_v25, 0.0 }
 0x137   : > { %894 = vst [vmem:[#allocation2 + $0x98] ss:$-4 sps:$4 sm:$0xff] %v892_v44   ;;  %7373 = vmatprep.mubr.bf16.mxu1 %v2452_v51  ;;  %v807_v37 = vadd.f32 %v8523_v49, %v768_v54  ;;  %v2459_v23 = vor.u32 %v8782_v17, %v2456_v29  ;;  %v1018_v11 = vrot.slane %v8791_v35, 4  ;;  %7418 = vmatpush3.bf16.msra.mxu1 %v8232_v1  ;;  %v8819_v28 = vshrl.u32 %v8791_v35, 16  ;;  %v8824_v1 = vld [vmem:[%s10424_s4 + $0x140] sm:$0xff]  }
 0x138   : > { %v836_v8 = vmax.f32 %v804_v0, 0.0  ;;  %v805_v27 = vadd.f32 %v8523_v49, %v766_v31  ;;  %v2467_v32 = vor.u32 %v8789_v14, %v10433_v50  ;;  %7419 = vmatprep.subr.bf16.mxu1 %v8236_v43  ;;  %7277 = vmatprep.subr.bf16.mxu0 %v8812_v12  ;;  %v1017_v54 = vsel %vm992_vm0, %v1014_v18, %v1016_v22 }
 0x139   : > { %10569 = vst [vmem:[#allocation32_spill] sm:$0xff] %v8819_v28  ;;  %v839_v44 = vmax.f32 %v807_v37, 0.0  ;;  %v7147_v45 = vpop.f32.mrb[28].mxu0  ;;  %v8829_v2 = vshrl.u32 %v8733_v15, 16  ;;  %v2460_v0 = vsel %vm2376_vm1, %v2448_v24, %v2459_v23  ;;  %v1019_v31 = vsel %vm992_vm0, %v1016_v22, %v1018_v11 }
 0x13a   : > { %v837_v25 = vmax.f32 %v805_v27, 0.0  ;;  %v771_v33 = vmul.f32 %v7147_v45, %v8518_v47  ;;  %v719_v50 = vpop.f32.mrb[29].mxu0  ;;  %v2468_v27 = vsel %vm2376_vm1, %v2456_v29, %v2467_v32  ;;  %v2472_v18 = vrot.slane %v8819_v28, 7 }
 0x13b   : > { %10570 = vst [vmem:[#allocation33_spill] sm:$0xff] %v8829_v2  ;;  %v857_v51 = vpack.c.bf16 %v839_v44, %v838_v62  ;;  %7420 = vmatpush3.bf16.msra.mxu1 %v8236_v43  ;;  %v769_v46 = vmul.f32 %v8518_v47, %v719_v50  ;;  %v7148_v53 = vpop.f32.mrb[30].mxu0  ;;  %v8843_v24 = vshll.u32 %v8791_v35, 16  ;;  %v8847_v43 = vshll.u32 %v8733_v15, 16  ;;  %v8854_v44 = vld [vmem:[#allocation2 + $0x78] sm:$0xff] }
 0x13c   : > { %v8836_v37 = vpack.c.bf16 %v837_v25, %v836_v8  ;;  %7469 = vmatprep.subr.bf16.mxu1 %v8824_v1  ;;  %v810_v22 = vadd.f32 %v8523_v49, %v771_v33  ;;  %v722_v23 = vpop.f32.mrb[31].mxu0  ;;  %v2480_v29 = vrot.slane %v8829_v2, 7  ;;  %v772_v8 = vmul.f32 %v7148_v53, %v8518_v47  ;;  %10574 = vst [vmem:[#allocation37_spill] sm:$0xff] %v8854_v44  ;;  %v8857_v25 = vld [vmem:[#allocation2 + $0x80] sm:$0xff] }
 0x13d   : > { %v898_v62 = vrot.slane %v857_v51, 4  ;;  %7186 = vmatmul.mubr.bf16.gmra.mrb[52].mxu0 %v1017_v54  ;;  %10572 = vst [vmem:[#allocation35_spill] sm:$0xff] %v8843_v24  ;;  %10573 = vst [vmem:[#allocation36_spill] sm:$0xff] %v8847_v43  ;;  %v808_v50 = vadd.f32 %v8523_v49, %v769_v46  ;;  %v770_v32 = vmul.f32 %v8518_v47, %v722_v23  ;;  %v1020_v33 = vrot.slane %v8733_v15, 4 }
 0x13e   : > { %10571 = vst [vmem:[#allocation34_spill] sm:$0xff] %v8836_v37  ;;  %896 = vst [vmem:[#allocation2 + $0xa0] sm:$0xff] %v8836_v37  ;;  %7374 = vmatmul.mubr.bf16.gmra.mrb[16].mxu1 %v2460_v0  ;;  %7189 = vmatprep.mubr.bf16.mxu0 %v1019_v31  ;;  %v842_v54 = vmax.f32 %v810_v22, 0.0  ;;  %v811_v51 = vadd.f32 %v8523_v49, %v772_v8  ;;  %v2475_v46 = vor.u32 %v8843_v24, %v2472_v18 }
 0x13f   : > { %900 = vst [vmem:[#allocation2 + $0xb0] ss:$-4 sps:$4 sm:$0xff] %v898_v62   ;;  %7377 = vmatprep.mubr.bf16.mxu1 %v2468_v27  ;;  %10575 = vst [vmem:[#allocation38_spill] sm:$0xff] %v8857_v25  ;;  %v840_v45 = vmax.f32 %v808_v50, 0.0  ;;  %v809_v0 = vadd.f32 %v8523_v49, %v770_v32  ;;  %v1022_v53 = vrot.slane %v8854_v44, 4  ;;  %v8864_v47 = vshrl.u32 %v8854_v44, 16 }
 0x140   : > { %v2483_v31 = vor.u32 %v8847_v43, %v2480_v29  ;;  %v843_v27 = vmax.f32 %v811_v51, 0.0  ;;  %v8868_v23 = vshrl.u32 %v8857_v25, 16  ;;  %v1021_v50 = vsel %vm992_vm0, %v1018_v11, %v1020_v33 }
 0x141   : > { %10576 = vst [vmem:[#allocation39_spill] sm:$0xff] %v8864_v47  ;;  %v841_v62 = vmax.f32 %v809_v0, 0.0  ;;  %v10578_v49 = vrot.slane %v8777_v61, 7  ;;  %v1023_v15 = vsel %vm992_vm0, %v1020_v33, %v1022_v53  ;;  %v2488_v35 = vrot.slane %v8864_v47, 7 }
 0x142   : > { %10577 = vst [vmem:[#allocation40_spill] sm:$0xff] %v8868_v23  ;;  %v859_v22 = vpack.c.bf16 %v843_v27, %v842_v54  ;;  %v8879_v51 = vshll.u32 %v8854_v44, 16  ;;  %v2484_v0 = vsel %vm2376_vm1, %v2472_v18, %v2483_v31  ;;  %v2496_v11 = vrot.slane %v8868_v23, 7 }
 0x143   : > { %v8871_v8 = vpack.c.bf16 %v841_v62, %v840_v45  ;;  %v2476_v32 = vsel %vm2376_vm1, %v10578_v49, %v2475_v46  ;;  %v8885_v45 = vshll.u32 %v8857_v25, 16  ;;  %v8887_v46 = vld [vmem:[#allocation2 + $0x90] sm:$0xff]  ;;  %v1024_v33 = vrot.slane %v8857_v25, 4 }
 0x144   : > { %10579 = vst [vmem:[#allocation41_spill] sm:$0xff] %v8879_v51  ;;  %v904_v54 = vrot.slane %v859_v22, 4  ;;  %10581 = vst [vmem:[#allocation43_spill] sm:$0xff] %v8887_v46  ;;  %v2491_v27 = vor.u32 %v8879_v51, %v2488_v35  ;;  %v1026_v62 = vrot.slane %v8784_v30, 4  ;;  %v8893_v18 = vshrl.u32 %v8784_v30, 16 }
 0x145   : > { %7190 = vmatmul.mubr.bf16.gmra.mrb[56].mxu0 %v1021_v50  ;;  %902 = vst [vmem:[#allocation2 + $0xb8] sm:$0xff] %v8871_v8  ;;  %10580 = vst [vmem:[#allocation42_spill] sm:$0xff] %v8885_v45  ;;  %v8897_v31 = vshrl.u32 %v8887_v46, 16  ;;  %v1025_v22 = vsel %vm992_vm0, %v1022_v53, %v1024_v33  ;;  %v8900_v50 = vld [vmem:[#allocation2 + $0x98] sm:$0xff]  ;;  %v8911_v53 = vshll.u32 %v8887_v46, 16  ;;  %v8933_v34 = vshll.u32 %v8836_v37, 16 }
 0x146   : > { %7378 = vmatmul.mubr.bf16.gmra.mrb[20].mxu1 %v2476_v32  ;;  %7193 = vmatprep.mubr.bf16.mxu0 %v1023_v15  ;;  %906 = vst [vmem:[#allocation2 + $0xc8] ss:$-4 sps:$4 sm:$0xff] %v904_v54   ;;  %10582 = vst [vmem:[#allocation44_spill] sm:$0xff] %v8893_v18  ;;  %v2499_v15 = vor.u32 %v8885_v45, %v2496_v11  ;;  %v2492_v49 = vsel %vm2376_vm1, %v2480_v29, %v2491_v27  ;;  %v8906_v54 = vshll.u32 %v8784_v30, 16  ;;  %v8935_v21 = vld [vmem:[#allocation2 + $0xa8] sm:$0xff] }
 0x147   : > { %7381 = vmatprep.mubr.bf16.mxu1 %v2484_v0  ;;  %10583 = vst [vmem:[#allocation45_spill] sm:$0xff] %v8897_v31  ;;  %10584 = vst [vmem:[#allocation46_spill] sm:$0xff] %v8900_v50  ;;  %v1027_v32 = vsel %vm992_vm0, %v1024_v33, %v1026_v62  ;;  %v2504_v0 = vrot.slane %v8893_v18, 7  ;;  %v2512_v44 = vrot.slane %v8897_v31, 7  ;;  %v1030_v29 = vrot.slane %v8900_v50, 4 }
 0x148   : > { %10585 = vst [vmem:[#allocation47_spill] sm:$0xff] %v8906_v54  ;;  %v2500_v25 = vsel %vm2376_vm1, %v2488_v35, %v2499_v15  ;;  %10586 = vst [vmem:[#allocation48_spill] sm:$0xff] %v8911_v53  ;;  %v1028_v27 = vrot.slane %v8887_v46, 4  ;;  %v8921_v35 = vshrl.u32 %v8836_v37, 16  ;;  %v8928_v46 = vshll.u32 %v8900_v50, 16 }
 0x149   : > { %v2507_v33 = vor.u32 %v8906_v54, %v2504_v0  ;;  %v2515_v30 = vor.u32 %v8911_v53, %v2512_v44  ;;  %10590 = vst [vmem:[#allocation52_spill] sm:$0xff] %v8933_v34  ;;  %10591 = vst [vmem:[#allocation53_spill] sm:$0xff] %v8935_v21  ;;  %v8977_v53 = vshll.u32 %v8871_v8, 16  ;;  %v8979_v31 = vld [vmem:[#allocation2 + $0xc0] sm:$0xf] }
 0x14a   : > { %10588 = vst [vmem:[#allocation50_spill] sm:$0xff] %v8921_v35  ;;  %v1031_v15 = vsel %vm992_vm0, %v1028_v27, %v1030_v29  ;;  %10589 = vst [vmem:[#allocation51_spill] sm:$0xff] %v8928_v46  ;;  %v2528_v26 = vrot.slane %v8921_v35, 7  ;;  %v8954_v35 = vshll.u32 %v8935_v21, 16 }
 0x14b   : > { %v2516_v13 = vsel %vm2376_vm1, %v2504_v0, %v2515_v30  ;;  %10600 = vst [vmem:[#allocation61_spill] sm:$0xff] %v8977_v53 }
 0x14c   : > { %v2531_v0 = vor.u32 %v8933_v34, %v2528_v26  ;;  %10595 = vst [vmem:[#allocation57_spill] sm:$0xff] %v8954_v35 }
 0x14d   : > { %7194 = vmatmul.mubr.bf16.gmra.mrb[60].mxu0 %v1025_v22  ;;  %v8917_v22 = vshrl.u32 %v8900_v50, 16 }
 0x14e   : > { %7382 = vmatmul.mubr.bf16.gmra.mrb[24].mxu1 %v2492_v49  ;;  %7197 = vmatprep.mubr.bf16.mxu0 %v1027_v32  ;;  %v1029_v49 = vsel %vm992_vm0, %v1026_v62, %v1028_v27  ;;  %v8937_v62 = vld [vmem:[#allocation2 + $0xb0] sm:$0xff] }
 0x14f   : > { %7385 = vmatprep.mubr.bf16.mxu1 %v2500_v25  ;;  %10587 = vst [vmem:[#allocation49_spill] sm:$0xff] %v8917_v22  ;;  %v2508_v25 = vsel %vm2376_vm1, %v2496_v11, %v2507_v33  ;;  %v2520_v32 = vrot.slane %v8917_v22, 7  ;;  %10592 = vst [vmem:[#allocation54_spill] sm:$0xff] %v8937_v62  ;;  %v1032_v11 = vrot.slane %v8836_v37, 4  ;;  %v1034_v33 = vrot.slane %v8935_v21, 4 }
 0x150   : > { %v8947_v30 = vshrl.u32 %v8937_v62, 16 }
 0x151   : > { %v2523_v27 = vor.u32 %v8928_v46, %v2520_v32  ;;  %v1035_v37 = vsel %vm992_vm0, %v1032_v11, %v1034_v33  ;;  %v2532_v39 = vsel %vm2376_vm1, %v2520_v32, %v2531_v0  ;;  %v8959_v46 = vshll.u32 %v8937_v62, 16 }
 0x152   : > { %10594 = vst [vmem:[#allocation56_spill] sm:$0xff] %v8947_v30  ;;  %v2544_v34 = vrot.slane %v8947_v30, 7 }
 0x153   : > { %10596 = vst [vmem:[#allocation58_spill] sm:$0xff] %v8959_v46 }
 0x155   : > { %7198 = vmatmul.mubr.bf16.gmra.mrb[64].mxu0 %v1029_v49  ;;  %v8943_v49 = vshrl.u32 %v8935_v21, 16  ;;  %v1038_v21 = vrot.slane %v8871_v8, 4 }
 0x156   : > { %7386 = vmatmul.mubr.bf16.gmra.mrb[28].mxu1 %v2508_v25  ;;  %7201 = vmatprep.mubr.bf16.mxu0 %v1031_v15  ;;  %v1033_v15 = vsel %vm992_vm0, %v1030_v29, %v1032_v11  ;;  %v908_v25 = vld [vmem:[#allocation2] sm:$0xf8]  ;;  %v1036_v11 = vrot.slane %v8937_v62, 4 }
 0x157   : > { %7389 = vmatprep.mubr.bf16.mxu1 %v2516_v13  ;;  %10593 = vst [vmem:[#allocation55_spill] sm:$0xff] %v8943_v49  ;;  %v2524_v13 = vsel %vm2376_vm1, %v2512_v44, %v2523_v27  ;;  %v2536_v50 = vrot.slane %v8943_v49, 7  ;;  %v8961_v29 = vld [vmem:[#allocation2 + $0xc0] sm:$0xff]  ;;  %v1341_v44 = vshrl.u32 %v908_v25, 16  ;;  %v1344_v27 = vshll.u32 %v908_v25, 16 }
 0x158   : > { %10597 = vst [vmem:[#allocation59_spill] sm:$0xff] %v8961_v29  ;;  %v2558_v32 = vshrl.u32 %v8961_v29, 16  ;;  %v10599_v49 = vmov 0   ;;  %v1039_v62 = vsel %vm992_vm0, %v1036_v11, %v1038_v21 }
 0x159   : > { %v1343_v0 = vrot.slane %v1341_v44, 3  ;;  %v1346_v30 = vrot.slane %v1344_v27, 4  ;;  %v1351_v22 = vrot.slane %v10599_v49, 3 }
 0x15a   : > { %v2560_v27 = vrot.slane %v2558_v32, 7 }
 0x15d   : > { %7202 = vmatmul.mubr.bf16.gmra.mrb[68].mxu0 %v1033_v15  ;;  %v2539_v15 = vor.u32 %v8954_v35, %v2536_v50 }
 0x15e   : > { %7390 = vmatmul.mubr.bf16.gmra.mrb[32].mxu1 %v2524_v13  ;;  %7205 = vmatprep.mubr.bf16.mxu0 %v1035_v37  ;;  %v8967_v13 = vshrl.u32 %v8871_v8, 16  ;;  %v2547_v37 = vor.u32 %v8959_v46, %v2544_v34  ;;  %v8983_v46 = vld [vmem:[#allocation2 + $0xc8] sm:$0xff] }
 0x15f   : > { %7393 = vmatprep.mubr.bf16.mxu1 %v2532_v39  ;;  %v1037_v39 = vsel %vm992_vm0, %v1034_v33, %v1036_v11  ;;  %v2540_v25 = vsel %vm2376_vm1, %v2528_v26, %v2539_v15  ;;  %v2561_v33 = vshll.u32 %v8961_v29, 16  ;;  %10601 = vst [vmem:[#allocation62_spill] sm:$0xff] %v8983_v46  ;;  %v1347_v26 = vor.u32 %v1346_v30, %v1343_v0 }
 0x160   : > { %10598 = vst [vmem:[#allocation60_spill] sm:$0xff] %v8967_v13  ;;  %v2552_v35 = vrot.slane %v8967_v13, 7  ;;  %v2548_v44 = vsel %vm2376_vm1, %v2536_v50, %v2547_v37  ;;  %v1040_v11 = vrot.slane %v8979_v31, 4  ;;  %v2566_v8 = vshrl.u32 %v8983_v46, 16 }
 0x161   : > { %v2563_v13 = vor.u32 %v2561_v33, %v2560_v27  ;;  %v1369_v37 = vrot.slane %v8587_v63, 3  ;;  %v2569_v0 = vshll.u32 %v8983_v46, 16  ;;  %v9270_v63 = vld [vmem:[#allocation2 + $0xc8] sm:$0xff] }
 0x162   : > { %v2555_v15 = vor.u32 %v8977_v53, %v2552_v35  ;;  %v2568_v30 = vrot.slane %v2566_v8, 7  ;;  %v1390_v8 = vrot.slane %v8610_v20, 4  ;;  %10636 = vst [vmem:[#allocation74_spill] sm:$0xff] %v9270_v63 }
 0x164   : > { %v2556_v32 = vsel %vm2376_vm1, %v2544_v34, %v2555_v15  ;;  %v1381_v34 = vrot.slane %v8602_v9, 4  ;;  %v3277_v9 = vld [vmem:[#allocation2 + $0xb8] sm:$0xff] }
 0x165   : > { %7206 = vmatmul.mubr.bf16.gmra.mrb[72].mxu0 %v1037_v39  ;;  %v1355_v39 = vor.u32 %v1351_v22, %v8493_v40  ;;  %v2571_v22 = vor.u32 %v2569_v0, %v2568_v30  ;;  %v8247_v0 = vld [vmem:[%s10424_s4 + $0x98] sm:$0xff]  }
 0x166   : > { %7394 = vmatmul.mubr.bf16.gmra.mrb[36].mxu1 %v2540_v25  ;;  %7209 = vmatprep.mubr.bf16.mxu0 %v1039_v62  ;;  %v1041_v62 = vsel %vm992_vm0, %v1038_v21, %v1040_v11  ;;  %v1372_v25 = vrot.slane %v8594_v3, 4  ;;  %v8245_v11 = vld [vmem:[%s10424_s4 + $0x88] sm:$0xff]  }
 0x167   : > { %7397 = vmatprep.mubr.bf16.mxu1 %v2548_v44  ;;  %v1356_v50 = vsel %vm1339_vm2, %v1347_v26, %v1355_v39  ;;  %v2564_v44 = vsel %vm2376_vm1, %v2552_v35, %v2563_v13  ;;  %v1365_v21 = vsel %vm1339_vm2, %v1355_v39, %v8563_v41  ;;  %v1378_v26 = vrot.slane %v8597_v4, 3 }
 0x168   : > { %v1373_v33 = vor.u32 %v1372_v25, %v1369_v37  ;;  %v2572_v15 = vsel %vm2376_vm1, %v2560_v27, %v2571_v22  ;;  %v1387_v13 = vrot.slane %v8582_v59, 3  ;;  %v8246_v27 = vld [vmem:[%s10424_s4 + $0x90] sm:$0xff]   ;;  %v1399_v37 = vrot.slane %v8651_v52, 4  ;;  %v10633_v52 = vld [vmem:[#allocation26_spill] sm:$0xff] }
 0x169   : > { %v1382_v39 = vor.u32 %v1381_v34, %v1378_v26  ;;  %v1414_v22 = vrot.slane %v8678_v19, 3  ;;  %v1423_v26 = vrot.slane %v8716_v55, 3  ;;  %v8249_v34 = vld [vmem:[%s10424_s4 + $0xa0] sm:$0xff]   ;;  %v3273_v19 = vld [vmem:[#allocation2 + $0x98] sm:$0xff] }
 0x16a   : > { %v1374_v35 = vsel %vm1339_vm2, %v8563_v41, %v1373_v33  ;;  %v9250_v20 = vshll.u32 %v3273_v19, 16  ;;  %v9252_v59 = vshrl.u32 %v3273_v19, 16 }
 0x16b   : > { %v1383_v41 = vsel %vm1339_vm2, %v1373_v33, %v1382_v39  ;;  %v1417_v33 = vrot.slane %v8700_v36, 4  ;;  %v3272_v36 = vld [vmem:[#allocation2 + $0x90] sm:$0xff] }
 0x16c   : > { %v9248_v46 = vshrl.u32 %v3272_v36, 16 }
 0x16d   : > { %7210 = vmatmul.mubr.bf16.gmra.mrb[76].mxu0 %v1041_v62  ;;  %v1396_v62 = vrot.slane %v8647_v48, 3 }
 0x16e   : > { %7398 = vmatmul.mubr.bf16.gmra.mrb[40].mxu1 %v2556_v32  ;;  %7229 = vmatprep.mubr.bf16.mxu0 %v1356_v50  ;;  %v1391_v50 = vor.u32 %v1390_v8, %v1387_v13  ;;  %v1408_v32 = vrot.slane %v8667_v6, 4  ;;  %v8241_v8 = vld [vmem:[%s10424_s4 + $0x158] sm:$0xff]  }
 0x16f   : > { %7401 = vmatprep.mubr.bf16.mxu1 %v2564_v44  ;;  %v1400_v25 = vor.u32 %v1399_v37, %v1396_v62  ;;  %v1889_v37 = vrot.slane %v10599_v49, 5  ;;  %v8242_v49 = vld [vmem:[%s10424_s4 + $0x160] sm:$0xff]  }
 0x170   : > { %v1392_v30 = vsel %vm1339_vm2, %v1382_v39, %v1391_v50  ;;  %v1418_v39 = vor.u32 %v1417_v33, %v1414_v22 }
 0x171   : > { %v9066_v22 = vor.u32 %v1889_v37, %v8493_v40  ;;  %v1486_v40 = vrot.slane %v8868_v23, 3  ;;  %v10611_v23 = vld [vmem:[#allocation57_spill] sm:$0xff] }
 0x173   : > { %10602 = vst [vmem:[#allocation63_spill] sm:$0xff] %v9066_v22 }
 0x175   : > { %7230 = vmatmul.mubr.bf16.vlgmr.msra.gmra.mrb[32].mxu0 %v1365_v21  ;;  %v8240_v21 = vld [vmem:[%s10424_s4 + $0x150] sm:$0xff]  }
 0x176   : > { %7402 = vmatmul.mubr.bf16.gmra.mrb[44].mxu1 %v2572_v15  ;;  %7233 = vmatprep.mubr.bf16.mxu0 %v1374_v35  ;;  %v1444_v15 = vrot.slane %v8782_v17, 4  ;;  %v1401_v35 = vsel %vm1339_vm2, %v1391_v50, %v1400_v25  ;;  %v1450_v50 = vrot.slane %v8777_v61, 3 }
 0x177   : > { %7421 = vmatprep.mubr.bf16.mxu1 %v8534_v7  ;;  %7278 = vmatpush3.bf16.msra.mxu0 %v8812_v12  ;;  %v8239_v7 = vld [vmem:[%s10424_s4 + $0x148] sm:$0xff]   ;;  %v1405_v12 = vrot.slane %v8664_v5, 3 }
 0x178   : > { %7279 = vmatprep.subr.bf16.mxu0 %v8245_v11  ;;  %v3275_v5 = vld [vmem:[#allocation2 + $0xa8] sm:$0xff] }
 0x179   : > { %v1409_v44 = vor.u32 %v1408_v32, %v1405_v12  ;;  %v1459_v12 = vrot.slane %v8819_v28, 3  ;;  %v1462_v32 = vrot.slane %v8843_v24, 4 }
 0x17b   : > { %7280 = vmatpush3.bf16.msra.mxu0 %v8245_v11  ;;  %v1441_v11 = vrot.slane %v8768_v10, 3  ;;  %v1410_v13 = vsel %vm1339_vm2, %v1400_v25, %v1409_v44  ;;  %v8251_v25 = vld [vmem:[%s10424_s4 + $0xb0] sm:$0xff]  }
 0x17c   : > { %7281 = vmatprep.subr.bf16.mxu0 %v8246_v27 }
 0x17d   : > { %7234 = vmatmul.mubr.bf16.gmra.mrb[36].mxu0 %v1383_v41  ;;  %v8250_v41 = vld [vmem:[%s10424_s4 + $0xa8] sm:$0xff]  }
 0x17e   : > { %7422 = vmatmul.mubr.bf16.vlgmr.msra.gmra.mrb[0].mxu1 %v8576_v56  ;;  %7237 = vmatprep.mubr.bf16.mxu0 %v1392_v30  ;;  %v1426_v56 = vrot.slane %v8731_v58, 4  ;;  %v1445_v30 = vor.u32 %v1444_v15, %v1441_v11  ;;  %v1495_v11 = vrot.slane %v8893_v18, 3  ;;  %v1498_v15 = vrot.slane %v8906_v54, 4  ;;  %v10608_v54 = vld [vmem:[#allocation50_spill] sm:$0xff] }
 0x17f   : > { %7470 = vmatpush3.bf16.msra.mxu1 %v8824_v1  ;;  %7425 = vmatprep.mubr.bf16.mxu1 %v8578_v57  ;;  %v1432_v1 = vrot.slane %v8726_v60, 3  ;;  %v1435_v57 = vrot.slane %v8744_v16, 4  ;;  %v1522_v18 = vrot.slane %v10608_v54, 3 }
 0x180   : > { %7471 = vmatprep.subr.bf16.mxu1 %v8239_v7  ;;  %7282 = vmatpush3.bf16.msra.mxu0 %v8246_v27  ;;  %v1427_v27 = vor.u32 %v1426_v56, %v1423_v26  ;;  %v1468_v26 = vrot.slane %v8829_v2, 3  ;;  %v1471_v56 = vrot.slane %v8847_v43, 4  ;;  %v10615_v2 = vld [vmem:[#allocation60_spill] sm:$0xff]  ;;  %v1499_v28 = vor.u32 %v1498_v15, %v1495_v11 }
 0x181   : > { %7283 = vmatprep.subr.bf16.mxu0 %v8247_v0  ;;  %v1436_v62 = vor.u32 %v1435_v57, %v1432_v1  ;;  %v1477_v1 = vrot.slane %v8864_v47, 3  ;;  %v1480_v57 = vrot.slane %v8879_v51, 4  ;;  %v10612_v51 = vld [vmem:[#allocation10_spill] sm:$0xff]  ;;  %v1549_v24 = vrot.slane %v10615_v2, 3  ;;  %v3259_v11 = vld [vmem:[#allocation2 + $0x28] sm:$0xff] }
 0x182   : > { %v10614_v47 = vld [vmem:[#allocation58_spill] sm:$0xff]  ;;  %v10623_v15 = vld [vmem:[#allocation20_spill] sm:$0xff] }
 0x183   : > { %7472 = vmatpush3.bf16.msra.mxu1 %v8239_v7  ;;  %v1453_v7 = vrot.slane %v8789_v14, 4  ;;  %v1543_v43 = vrot.slane %v10614_v47, 4  ;;  %v1481_v54 = vor.u32 %v1480_v57, %v1477_v1  ;;  %v3258_v57 = vld [vmem:[#allocation2 + $0x20] sm:$0xff] }
 0x184   : > { %7473 = vmatprep.subr.bf16.mxu1 %v8240_v21  ;;  %7284 = vmatpush3.bf16.msra.mxu0 %v8247_v0  ;;  %v1428_v0 = vsel %vm1339_vm2, %v1418_v39, %v1427_v27 }
 0x185   : > { %7238 = vmatmul.mubr.bf16.gmra.mrb[40].mxu0 %v1401_v35  ;;  %7285 = vmatprep.subr.bf16.mxu0 %v8249_v34  ;;  %v1454_v33 = vor.u32 %v1453_v7, %v1450_v50  ;;  %v8244_v35 = vld [vmem:[%s10424_s4 + $0x168] sm:$0xff]   ;;  %v10606_v50 = vld [vmem:[#allocation51_spill] sm:$0xff] }
 0x186   : > { %7426 = vmatmul.mubr.bf16.gmra.mrb[4].mxu1 %v8565_v42  ;;  %7241 = vmatprep.mubr.bf16.mxu0 %v1410_v13  ;;  %v1419_v42 = vsel %vm1339_vm2, %v1409_v44, %v1418_v39  ;;  %v9075_v44 = vsel %vm1339_vm2, %v1436_v62, %v1445_v30  ;;  %v10603_v13 = vld [vmem:[#allocation45_spill] sm:$0xff]  ;;  %v10604_v39 = vld [vmem:[#allocation48_spill] sm:$0xff]  ;;  %v1516_v7 = vrot.slane %v10606_v50, 4 }
 0x187   : > { %7429 = vmatprep.mubr.bf16.mxu1 %v8632_v38  ;;  %7474 = vmatpush3.bf16.msra.mxu1 %v8240_v21  ;;  %v9069_v38 = vsel %vm1339_vm2, %v1427_v27, %v1436_v62  ;;  %v9071_v21 = vor.u32 %v1462_v32, %v1459_v12  ;;  %v1507_v27 = vrot.slane %v10604_v39, 4  ;;  %v10605_v62 = vld [vmem:[#allocation49_spill] sm:$0xff]  ;;  %v8253_v12 = vld [vmem:[%s10424_s4 + $0xb8] sm:$0xff]   ;;  %v10607_v32 = vld [vmem:[#allocation11_spill] sm:$0xff]  ;;  %v1534_v39 = vrot.slane %v10611_v23, 4 }
 0x188   : > { %7475 = vmatprep.subr.bf16.mxu1 %v8241_v8  ;;  %7286 = vmatpush3.bf16.msra.mxu0 %v8249_v34  ;;  %v1489_v34 = vrot.slane %v8885_v45, 4  ;;  %v1513_v37 = vrot.slane %v10605_v62, 3  ;;  %v10610_v45 = vld [vmem:[#allocation55_spill] sm:$0xff]  ;;  %v10613_v50 = vld [vmem:[#allocation56_spill] sm:$0xff]  ;;  %v1559_v23 = vshll.u32 %v8979_v31, 16 }
 0x189   : > { %7287 = vmatprep.subr.bf16.mxu0 %v8250_v41  ;;  %v1540_v62 = vrot.slane %v10613_v50, 3  ;;  %v1472_v50 = vor.u32 %v1471_v56, %v1468_v26  ;;  %v9114_v17 = vsel %vm1339_vm2, %v1454_v33, %v9071_v21 }
 0x18a   : > { %v1490_v47 = vor.u32 %v1489_v34, %v1486_v40  ;;  %v1517_v14 = vor.u32 %v1516_v7, %v1513_v37  ;;  %v9120_v56 = vrot.slane %v1559_v23, 4  ;;  %v10622_v40 = vld [vmem:[#allocation18_spill] sm:$0xff]  ;;  %v3263_v37 = vld [vmem:[#allocation2 + $0x48] sm:$0xff]  ;;  %v9186_v7 = vshll.u32 %v3259_v11, 16 }
 0x18b   : > { %7476 = vmatpush3.bf16.msra.mxu1 %v8241_v8  ;;  %v1504_v8 = vrot.slane %v10603_v13, 3  ;;  %v1531_v13 = vrot.slane %v10610_v45, 3  ;;  %v1556_v45 = vshrl.u32 %v8979_v31, 16 }
 0x18c   : > { %7477 = vmatprep.subr.bf16.mxu1 %v8242_v49  ;;  %7288 = vmatpush3.bf16.msra.mxu0 %v8250_v41  ;;  %v10609_v41 = vld [vmem:[#allocation52_spill] sm:$0xff]  ;;  %10618 = vst [vmem:[#allocation64_spill] sm:$0xff] %v9120_v56  ;;  %v9140_v23 = vsel %vm1339_vm2, %v1481_v54, %v1490_v47  ;;  %10628 = vst [vmem:[#allocation70_spill] sm:$0xff] %v9186_v7  ;;  %v3905_v22 = vrot.slane %v9186_v7, 4 }
 0x18d   : > { %7242 = vmatmul.mubr.bf16.gmra.mrb[44].mxu0 %v1419_v42  ;;  %7289 = vmatprep.subr.bf16.mxu0 %v8251_v25  ;;  %v1525_v42 = vrot.slane %v10609_v41, 4  ;;  %v1508_v2 = vor.u32 %v1507_v27, %v1504_v8  ;;  %v1535_v31 = vor.u32 %v1534_v39, %v1531_v13  ;;  %v9118_v26 = vrot.slane %v1556_v45, 3  ;;  %v9171_v13 = vld [vmem:[%s10424_s4 + $0x200] sm:$0xff]  }
 0x18e   : > { %7430 = vmatmul.mubr.bf16.gmra.mrb[8].mxu1 %v10607_v32  ;;  %7245 = vmatprep.mubr.bf16.mxu0 %v1428_v0  ;;  %v1552_v32 = vrot.slane %v8977_v53, 4  ;;  %v8248_v0 = vld [vmem:[%s10424_s4 + $0x170] sm:$0xff]   ;;  %v9110_v53 = vsel %vm1339_vm2, %v1445_v30, %v1454_v33  ;;  %v8252_v30 = vld [vmem:[%s10424_s4 + $0x178] sm:$0xff]   ;;  %v9143_v45 = vsel %vm1339_vm2, %v1490_v47, %v1499_v28  ;;  %10624 = vst [vmem:[#allocation18_spill] sm:$0xff] %v9171_v13  ;;  %v9180_v39 = vld [vmem:[%s10424_s4 + $0x180] sm:$0xff]   ;;  %v9182_v27 = vshll.u32 %v3258_v57, 16 }
 0x18f   : > { %7433 = vmatprep.mubr.bf16.mxu1 %v10612_v51  ;;  %7478 = vmatpush3.bf16.msra.mxu1 %v8242_v49  ;;  %v8286_v51 = vld [vmem:[#allocation2] sm:$0xf0]  ;;  %v1526_v61 = vor.u32 %v1525_v42, %v1522_v18  ;;  %10617 = vst [vmem:[#allocation10_spill] sm:$0xff] %v9118_v26  ;;  %v9125_v18 = vld [vmem:[#allocation2 + $0x10] sm:$0xff]  ;;  %10625 = vst [vmem:[#allocation20_spill] sm:$0xff] %v9180_v39  ;;  %v9275_v26 = vshrl.u32 %v3277_v9, 16 }
 0x190   : > { %7479 = vmatprep.subr.bf16.mxu1 %v8244_v35  ;;  %7290 = vmatpush3.bf16.msra.mxu0 %v8251_v25  ;;  %v1881_v49 = vshrl.u32 %v8286_v51, 16  ;;  %v1884_v41 = vshll.u32 %v8286_v51, 16  ;;  %v1544_v25 = vor.u32 %v1543_v43, %v1540_v62  ;;  %v9116_v10 = vor.u32 %v1552_v32, %v1549_v24  ;;  %10619 = vst [vmem:[#allocation65_spill] sm:$0xff] %v9125_v18  ;;  %v3265_v32 = vld [vmem:[#allocation2 + $0x58] sm:$0xff]  ;;  %v3270_v8 = vld [vmem:[#allocation2 + $0x80] sm:$0xff] }
 0x191   : > { %7291 = vmatprep.subr.bf16.mxu0 %v8253_v12  ;;  %v9134_v24 = vsel %vm1339_vm2, %v9071_v21, %v1472_v50  ;;  %v9137_v43 = vsel %vm1339_vm2, %v1472_v50, %v1481_v54  ;;  %v9151_v21 = vsel %vm1339_vm2, %v1508_v2, %v1517_v14  ;;  %v9154_v34 = vsel %vm1339_vm2, %v1517_v14, %v1526_v61  ;;  %v3260_v54 = vld [vmem:[#allocation2 + $0x30] sm:$0xff]  ;;  %v3262_v14 = vld [vmem:[#allocation2 + $0x40] sm:$0xff] }
 0x192   : > { %10616 = vst [vmem:[#allocation11_spill] sm:$0xff] %v9116_v10  ;;  %v9127_v1 = vrot.slane %v1881_v49, 4  ;;  %v9129_v33 = vrot.slane %v1884_v41, 5  ;;  %v9158_v47 = vsel %vm1339_vm2, %v1526_v61, %v1535_v31  ;;  %10626 = vst [vmem:[#allocation68_spill] sm:$0xff] %v9182_v27  ;;  %v9184_v62 = vshrl.u32 %v3258_v57, 16  ;;  %v3264_v50 = vld [vmem:[#allocation2 + $0x50] sm:$0xff] }
 0x193   : > { %7480 = vmatpush3.bf16.msra.mxu1 %v8244_v35  ;;  %v9161_v35 = vsel %vm1339_vm2, %v1535_v31, %v1544_v25  ;;  %v9190_v41 = vshll.u32 %v3260_v54, 16  ;;  %v9192_v42 = vshrl.u32 %v3260_v54, 16  ;;  %v9199_v31 = vshll.u32 %v3262_v14, 16  ;;  %v3267_v57 = vld [vmem:[#allocation2 + $0x68] sm:$0xff]  ;;  %v3269_v61 = vld [vmem:[#allocation2 + $0x78] sm:$0xff]  ;;  %10637 = vst [vmem:[#allocation75_spill] sm:$0xff] %v9275_v26 }
 0x194   : > { %7481 = vmatprep.subr.bf16.mxu1 %v8248_v0  ;;  %7292 = vmatpush3.bf16.msra.mxu0 %v8253_v12  ;;  %10620 = vst [vmem:[#allocation66_spill] sm:$0xff] %v9127_v1  ;;  %10621 = vst [vmem:[#allocation67_spill] sm:$0xff] %v9129_v33  ;;  %v9188_v12 = vshrl.u32 %v3259_v11, 16  ;;  %v9203_v11 = vshll.u32 %v3263_v37, 16  ;;  %v9207_v54 = vshll.u32 %v3264_v50, 16  ;;  %v9214_v16 = vshrl.u32 %v3265_v32, 16 }
 0x195   : > { %7246 = vmatmul.mubr.bf16.gmra.mrb[48].mxu0 %v9069_v38  ;;  %v9148_v38 = vsel %vm1339_vm2, %v1499_v28, %v1508_v2  ;;  %v9165_v28 = vsel %vm1339_vm2, %v1544_v25, %v9116_v10  ;;  %10627 = vst [vmem:[#allocation69_spill] sm:$0xff] %v9184_v62  ;;  %10630 = vst [vmem:[#allocation72_spill] sm:$0xff] %v9190_v41  ;;  %7661 = vmatprep.subr.bf16.mxu0 %v9171_v13  ;;  %v9201_v25 = vshrl.u32 %v3262_v14, 16  ;;  %v10642_v33 = vld [vmem:[#allocation31_spill] sm:$0xff] }
 0x196   : > { %7434 = vmatmul.mubr.bf16.gmra.mrb[12].mxu1 %v10622_v40  ;;  %7249 = vmatprep.mubr.bf16.mxu0 %v9075_v44  ;;  %v3261_v44 = vld [vmem:[#allocation2 + $0x38] sm:$0xff]  ;;  %10629 = vst [vmem:[#allocation71_spill] sm:$0xff] %v9188_v12  ;;  %10631 = vst [vmem:[#allocation73_spill] sm:$0xff] %v9192_v42  ;;  %v3268_v40 = vld [vmem:[#allocation2 + $0x70] sm:$0xff]  ;;  %v9209_v2 = vshrl.u32 %v3264_v50, 16  ;;  %v9223_v58 = vshrl.u32 %v3267_v57, 16 }
 0x197   : > { %7437 = vmatprep.mubr.bf16.mxu1 %v10623_v15  ;;  %7482 = vmatpush3.bf16.msra.mxu1 %v8248_v0  ;;  %v3266_v0 = vld [vmem:[#allocation2 + $0x60] sm:$0xff]  ;;  %v9195_v51 = vshll.u32 %v3261_v44, 16  ;;  %v9197_v49 = vshrl.u32 %v3261_v44, 16  ;;  %v9205_v15 = vshrl.u32 %v3263_v37, 16  ;;  %v9212_v44 = vshll.u32 %v3265_v32, 16 }
 0x198   : > { %7483 = vmatprep.subr.bf16.mxu1 %v8252_v30  ;;  %v9216_v14 = vshll.u32 %v3266_v0, 16  ;;  %v9218_v60 = vshrl.u32 %v3266_v0, 16  ;;  %v9221_v37 = vshll.u32 %v3267_v57, 16  ;;  %v9225_v50 = vshll.u32 %v3268_v40, 16 }
 0x199   : > { %v9227_v55 = vshrl.u32 %v3268_v40, 16  ;;  %v9231_v32 = vshll.u32 %v3269_v61, 16  ;;  %v9233_v0 = vshrl.u32 %v3269_v61, 16  ;;  %v9235_v6 = vshll.u32 %v3270_v8, 16 }
 0x19a   : > { %v4914_v57 = vrot.slane %v9184_v62, 4  ;;  %v9239_v40 = vshrl.u32 %v3270_v8, 16  ;;  %v4915_v13 = vrot.slane %v9182_v27, 5  ;;  %v9246_v61 = vshll.u32 %v3272_v36, 16 }
 0x19b   : > { %7484 = vmatpush3.bf16.msra.mxu1 %v8252_v30  ;;  %v3271_v30 = vld [vmem:[#allocation2 + $0x88] sm:$0xff]  ;;  %v9264_v18 = vshrl.u32 %v3275_v5, 16  ;;  %v3893_v19 = vrot.slane %v9184_v62, 3  ;;  %v9273_v10 = vshll.u32 %v3277_v9, 16  ;;  %v4922_v56 = vrot.slane %v9192_v42, 4 }
 0x19c   : > { %7533 = vmatprep.subr.bf16.mxu1 %v9180_v39  ;;  %v10632_v39 = vld [vmem:[#allocation16_spill] sm:$0xff]  ;;  %v9241_v48 = vshll.u32 %v3271_v30, 16  ;;  %v9262_v29 = vor.u32 %v4915_v13, %v4914_v57  ;;  %v3896_v13 = vrot.slane %v9182_v27, 4  ;;  %v4918_v57 = vrot.slane %v9188_v12, 4 }
 0x19d   : > { %7250 = vmatmul.mubr.bf16.gmra.mrb[52].mxu0 %v9110_v53  ;;  %v3274_v53 = vld [vmem:[#allocation2 + $0xa0] sm:$0xff]  ;;  %v9289_v62 = vshll.u32 %v9270_v63, 16  ;;  %v4923_v1 = vrot.slane %v9190_v41, 5  ;;  %v3902_v27 = vrot.slane %v9188_v12, 3  ;;  %v4927_v12 = vrot.slane %v9195_v51, 5 }
 0x19e   : > { %7438 = vmatmul.mubr.bf16.gmra.mrb[16].mxu1 %v10632_v39  ;;  %7253 = vmatprep.mubr.bf16.mxu0 %v9114_v17  ;;  %v9243_v39 = vshrl.u32 %v3271_v30, 16  ;;  %v3276_v17 = vld [vmem:[#allocation2 + $0xb0] sm:$0xff]  ;;  %v9256_v8 = vshll.u32 %v3274_v53, 16  ;;  %v9258_v4 = vshrl.u32 %v3274_v53, 16  ;;  %v9260_v30 = vshll.u32 %v3275_v5, 16  ;;  %10635 = vst [vmem:[#allocation26_spill] sm:$0xff] %v9262_v29 }
 0x19f   : > { %7441 = vmatprep.mubr.bf16.mxu1 %v10633_v52  ;;  %v9254_v52 = vld [vmem:[#allocation2 + $0xc0] sm:$0xff]  ;;  %v9266_v3 = vshll.u32 %v3276_v17, 16  ;;  %v9268_v36 = vshrl.u32 %v3276_v17, 16  ;;  %v4919_v17 = vrot.slane %v9186_v7, 5  ;;  %10640 = vst [vmem:[#allocation78_spill] sm:$0xff] %v9289_v62  ;;  %v9291_v9 = vor.u32 %v3896_v13, %v3893_v19 }
 0x1a0   : > { %10634 = vst [vmem:[#allocation16_spill] sm:$0xff] %v9254_v52  ;;  %v9278_v53 = vshll.u32 %v9254_v52, 16  ;;  %v9282_v5 = vshrl.u32 %v9254_v52, 16  ;;  %v9302_v19 = vshrl.u32 %v9270_v63, 16  ;;  %v4924_v13 = vor.u32 %v4923_v1, %v4922_v56 }
 0x1a1   : > { %10641 = vst [vmem:[#allocation79_spill] sm:$0xff] %v9291_v9  ;;  %v4920_v52 = vor.u32 %v4919_v17, %v4918_v57  ;;  %v4926_v62 = vrot.slane %v9197_v49, 4  ;;  %v4930_v17 = vrot.slane %v9201_v25, 4  ;;  %v3920_v56 = vrot.slane %v9197_v49, 3 }
 0x1a2   : > { %10638 = vst [vmem:[#allocation76_spill] sm:$0xff] %v9278_v53  ;;  %10639 = vst [vmem:[#allocation77_spill] sm:$0xff] %v9282_v5  ;;  %v3911_v53 = vrot.slane %v9192_v42, 3  ;;  %v10643_v5 = vld [vmem:[#allocation24_spill] sm:$0xff] }
 0x1a3   : > { %10644 = vst [vmem:[#allocation31_spill] sm:$0xff] %v9302_v19  ;;  %v9312_v42 = vsel %vm1879_vm3, %v4920_v52, %v4924_v13 }
 0x1a4   : > { %10646 = vst [vmem:[#allocation80_spill] sm:$0xff] %v9312_v42  ;;  %v4935_v42 = vrot.slane %v9203_v11, 5 }
 0x1a5   : > { %7254 = vmatmul.mubr.bf16.gmra.mrb[56].mxu0 %v9134_v24  ;;  %v3914_v24 = vrot.slane %v9190_v41, 4  ;;  %v4931_v41 = vrot.slane %v9199_v31, 5 }
 0x1a6   : > { %7442 = vmatmul.mubr.bf16.gmra.mrb[20].mxu1 %v10642_v33  ;;  %7257 = vmatprep.mubr.bf16.mxu0 %v9137_v43  ;;  %v9308_v33 = vsel %vm1879_vm3, %v9262_v29, %v4920_v52  ;;  %v3906_v43 = vor.u32 %v3905_v22, %v3902_v27  ;;  %v3923_v22 = vrot.slane %v9195_v51, 4  ;;  %v3929_v27 = vrot.slane %v9201_v25, 3 }
 0x1a7   : > { %7445 = vmatprep.mubr.bf16.mxu1 %v10643_v5  ;;  %10645 = vst [vmem:[#allocation24_spill] sm:$0xff] %v9308_v33  ;;  %v3915_v57 = vor.u32 %v3914_v24, %v3911_v53  ;;  %v4928_v5 = vor.u32 %v4927_v12, %v4926_v62  ;;  %v4932_v52 = vor.u32 %v4931_v41, %v4930_v17  ;;  %v3932_v62 = vrot.slane %v9199_v31, 4  ;;  %v10651_v17 = vld [vmem:[#allocation37_spill] sm:$0xff] }
 0x1a8   : > { %v9318_v1 = vsel %vm1339_vm2, %v9291_v9, %v3906_v43  ;;  %v4934_v12 = vrot.slane %v9205_v15, 4  ;;  %v3924_v24 = vor.u32 %v3923_v22, %v3920_v56  ;;  %v3941_v41 = vrot.slane %v9203_v11, 4 }
 0x1a9   : > { %10647 = vst [vmem:[#allocation81_spill] sm:$0xff] %v9318_v1  ;;  %v9321_v7 = vsel %vm1339_vm2, %v3906_v43, %v3915_v57  ;;  %v9326_v53 = vsel %vm1879_vm3, %v4924_v13, %v4928_v5  ;;  %v4938_v1 = vrot.slane %v9209_v2, 4  ;;  %v4939_v43 = vrot.slane %v9207_v54, 5 }
 0x1aa   : > { %10648 = vst [vmem:[#allocation82_spill] sm:$0xff] %v9321_v7  ;;  %10649 = vst [vmem:[#allocation83_spill] sm:$0xff] %v9326_v53  ;;  %v9335_v7 = vsel %vm1879_vm3, %v4928_v5, %v4932_v52  ;;  %v3933_v9 = vor.u32 %v3932_v62, %v3929_v27  ;;  %v3938_v13 = vrot.slane %v9205_v15, 3  ;;  %v9342_v56 = vsel %vm1339_vm2, %v3915_v57, %v3924_v24 }
 0x1ab   : > { %10650 = vst [vmem:[#allocation84_spill] sm:$0xff] %v9335_v7  ;;  %10652 = vst [vmem:[#allocation37_spill] sm:$0xff] %v9342_v56  ;;  %v4936_v22 = vor.u32 %v4935_v42, %v4934_v12  ;;  %v4940_v53 = vor.u32 %v4939_v43, %v4938_v1  ;;  %v3947_v33 = vrot.slane %v9209_v2, 3  ;;  %v3950_v62 = vrot.slane %v9207_v54, 4 }
 0x1ac   : > { %v9347_v5 = vsel %vm1339_vm2, %v3924_v24, %v3933_v9  ;;  %v3942_v27 = vor.u32 %v3941_v41, %v3938_v13  ;;  %v4942_v7 = vrot.slane %v9214_v16, 4  ;;  %v4943_v42 = vrot.slane %v9212_v44, 5 }
 0x1ad   : > { %7258 = vmatmul.mubr.bf16.gmra.mrb[60].mxu0 %v9140_v23  ;;  %v10653_v23 = vld [vmem:[#allocation38_spill] sm:$0xff]  ;;  %v4946_v57 = vrot.slane %v9218_v60, 4  ;;  %v3951_v12 = vor.u32 %v3950_v62, %v3947_v33  ;;  %v4947_v24 = vrot.slane %v9216_v14, 5  ;;  %v3956_v43 = vrot.slane %v9214_v16, 3 }
 0x1ae   : > { %7446 = vmatmul.mubr.bf16.gmra.mrb[24].mxu1 %v10651_v17  ;;  %7261 = vmatprep.mubr.bf16.mxu0 %v9143_v45  ;;  %10654 = vst [vmem:[#allocation38_spill] sm:$0xff] %v9347_v5  ;;  %v9352_v17 = vsel %vm1879_vm3, %v4932_v52, %v4936_v22  ;;  %v9355_v45 = vsel %vm1879_vm3, %v4936_v22, %v4940_v53  ;;  %v3959_v41 = vrot.slane %v9212_v44, 4  ;;  %v3965_v52 = vrot.slane %v9218_v60, 3 }
 0x1af   : > { %7449 = vmatprep.mubr.bf16.mxu1 %v10653_v23  ;;  %10655 = vst [vmem:[#allocation85_spill] sm:$0xff] %v9352_v17  ;;  %10656 = vst [vmem:[#allocation86_spill] sm:$0xff] %v9355_v45  ;;  %v9360_v1 = vsel %vm1339_vm2, %v3933_v9, %v3942_v27  ;;  %v4944_v13 = vor.u32 %v4943_v42, %v4942_v7  ;;  %v3968_v22 = vrot.slane %v9216_v14, 4  ;;  %v4950_v45 = vrot.slane %v9223_v58, 4 }
 0x1b0   : > { %10657 = vst [vmem:[#allocation87_spill] sm:$0xff] %v9360_v1  ;;  %v9368_v23 = vsel %vm1339_vm2, %v3942_v27, %v3951_v12  ;;  %v4948_v5 = vor.u32 %v4947_v24, %v4946_v57  ;;  %v4951_v9 = vrot.slane %v9221_v37, 5  ;;  %v3960_v62 = vor.u32 %v3959_v41, %v3956_v43  ;;  %v8287_v24 = vld [vmem:[#allocation2 + $0x88] sm:$0xff]  ;;  %v10663_v41 = vld [vmem:[#allocation43_spill] sm:$0xff] }
 0x1b1   : > { %10658 = vst [vmem:[#allocation88_spill] sm:$0xff] %v9368_v23  ;;  %v9373_v33 = vsel %vm1879_vm3, %v4940_v53, %v4944_v13  ;;  %v3969_v1 = vor.u32 %v3968_v22, %v3965_v52  ;;  %v4954_v7 = vrot.slane %v9227_v55, 4  ;;  %v4955_v27 = vrot.slane %v9225_v50, 5 }
 0x1b2   : > { %10659 = vst [vmem:[#allocation89_spill] sm:$0xff] %v9373_v33  ;;  %v9378_v42 = vsel %vm1879_vm3, %v4944_v13, %v4948_v5  ;;  %v4952_v56 = vor.u32 %v4951_v9, %v4950_v45  ;;  %v3974_v57 = vrot.slane %v9223_v58, 3  ;;  %v9384_v53 = vsel %vm1339_vm2, %v3951_v12, %v3960_v62 }
 0x1b3   : > { %10660 = vst [vmem:[#allocation90_spill] sm:$0xff] %v9378_v42  ;;  %10661 = vst [vmem:[#allocation91_spill] sm:$0xff] %v9384_v53  ;;  %v9387_v43 = vsel %vm1339_vm2, %v3960_v62, %v3969_v1  ;;  %v3983_v13 = vrot.slane %v9227_v55, 3  ;;  %v4956_v52 = vor.u32 %v4955_v27, %v4954_v7  ;;  %v3986_v22 = vrot.slane %v9225_v50, 4 }
 0x1b4   : > { %10662 = vst [vmem:[#allocation92_spill] sm:$0xff] %v9387_v43  ;;  %v9393_v45 = vsel %vm1879_vm3, %v4948_v5, %v4952_v56  ;;  %v4959_v12 = vrot.slane %v9231_v32, 5  ;;  %v4962_v62 = vrot.slane %v9239_v40, 4  ;;  %v3995_v5 = vrot.slane %v9231_v32, 4 }
 0x1b5   : > { %7262 = vmatmul.mubr.bf16.gmra.mrb[64].mxu0 %v9148_v38  ;;  %v3977_v38 = vrot.slane %v9221_v37, 4  ;;  %10664 = vst [vmem:[#allocation43_spill] sm:$0xff] %v9393_v45  ;;  %v9401_v43 = vsel %vm1879_vm3, %v4952_v56, %v4956_v52  ;;  %v3987_v53 = vor.u32 %v3986_v22, %v3983_v13  ;;  %v4004_v42 = vrot.slane %v9235_v6, 4 }
 0x1b6   : > { %7450 = vmatmul.mubr.bf16.gmra.mrb[28].mxu1 %v8287_v24  ;;  %7265 = vmatprep.mubr.bf16.mxu0 %v9151_v21  ;;  %v4958_v21 = vrot.slane %v9233_v0, 4  ;;  %v4963_v24 = vrot.slane %v9235_v6, 5  ;;  %10665 = vst [vmem:[#allocation93_spill] sm:$0xff] %v9401_v43  ;;  %v4966_v56 = vrot.slane %v9243_v39, 4  ;;  %v10696_v43 = vld [vmem:[#allocation10_spill] sm:$0xff] }
 0x1b7   : > { %7453 = vmatprep.mubr.bf16.mxu1 %v10663_v41  ;;  %v3978_v9 = vor.u32 %v3977_v38, %v3974_v57  ;;  %v3992_v41 = vrot.slane %v9233_v0, 3  ;;  %v4001_v57 = vrot.slane %v9239_v40, 3 }
 0x1b8   : > { %v4960_v27 = vor.u32 %v4959_v12, %v4958_v21  ;;  %v4964_v45 = vor.u32 %v4963_v24, %v4962_v62  ;;  %v4970_v21 = vrot.slane %v9248_v46, 4  ;;  %v4971_v62 = vrot.slane %v9246_v61, 5 }
 0x1b9   : > { %v9406_v7 = vsel %vm1339_vm2, %v3969_v1, %v3978_v9  ;;  %v9410_v38 = vsel %vm1339_vm2, %v3978_v9, %v3987_v53  ;;  %v3996_v23 = vor.u32 %v3995_v5, %v3992_v41  ;;  %v4967_v1 = vrot.slane %v9241_v48, 5  ;;  %v10671_v41 = vld [vmem:[#allocation46_spill] sm:$0xff] }
 0x1ba   : > { %10666 = vst [vmem:[#allocation94_spill] sm:$0xff] %v9406_v7  ;;  %10667 = vst [vmem:[#allocation95_spill] sm:$0xff] %v9410_v38  ;;  %v9415_v13 = vsel %vm1879_vm3, %v4956_v52, %v4960_v27  ;;  %v9418_v22 = vsel %vm1879_vm3, %v4960_v27, %v4964_v45  ;;  %v4005_v12 = vor.u32 %v4004_v42, %v4001_v57  ;;  %v4010_v24 = vrot.slane %v9243_v39, 3 }
 0x1bb   : > { %10668 = vst [vmem:[#allocation96_spill] sm:$0xff] %v9415_v13  ;;  %10669 = vst [vmem:[#allocation97_spill] sm:$0xff] %v9418_v22  ;;  %v9424_v9 = vsel %vm1339_vm2, %v3987_v53, %v3996_v23  ;;  %v4968_v52 = vor.u32 %v4967_v1, %v4966_v56  ;;  %v4013_v5 = vrot.slane %v9241_v48, 4  ;;  %v4019_v27 = vrot.slane %v9248_v46, 3 }
 0x1bc   : > { %10670 = vst [vmem:[#allocation98_spill] sm:$0xff] %v9424_v9  ;;  %v4022_v38 = vrot.slane %v9246_v61, 4  ;;  %v9435_v53 = vsel %vm1339_vm2, %v3996_v23, %v4005_v12  ;;  %v4972_v42 = vor.u32 %v4971_v62, %v4970_v21  ;;  %v4974_v57 = vrot.slane %v9252_v59, 4 }
 0x1bd   : > { %7266 = vmatmul.mubr.bf16.gmra.mrb[68].mxu0 %v9154_v34  ;;  %v10672_v34 = vld [vmem:[#allocation34_spill] sm:$0xff]  ;;  %10673 = vst [vmem:[#allocation46_spill] sm:$0xff] %v9435_v53  ;;  %v4975_v9 = vrot.slane %v9250_v20, 5  ;;  %v4978_v1 = vrot.slane %v9258_v4, 4  ;;  %v4028_v23 = vrot.slane %v9252_v59, 3  ;;  %v4055_v53 = vrot.slane %v9268_v36, 3 }
 0x1be   : > { %7454 = vmatmul.mubr.bf16.gmra.mrb[32].mxu1 %v10671_v41  ;;  %7269 = vmatprep.mubr.bf16.mxu0 %v9158_v47  ;;  %v9440_v41 = vsel %vm1879_vm3, %v4964_v45, %v4968_v52  ;;  %v4014_v47 = vor.u32 %v4013_v5, %v4010_v24  ;;  %v4023_v56 = vor.u32 %v4022_v38, %v4019_v27  ;;  %v4031_v45 = vrot.slane %v9250_v20, 4 }
 0x1bf   : > { %7457 = vmatprep.mubr.bf16.mxu1 %v10672_v34  ;;  %10674 = vst [vmem:[#allocation34_spill] sm:$0xff] %v9440_v41  ;;  %v9444_v22 = vsel %vm1879_vm3, %v4968_v52, %v4972_v42  ;;  %v4976_v7 = vor.u32 %v4975_v9, %v4974_v57  ;;  %v4979_v34 = vrot.slane %v9256_v8, 5  ;;  %v4037_v38 = vrot.slane %v9258_v4, 3  ;;  %v10692_v41 = vld [vmem:[#allocation66_spill] sm:$0xff] }
 0x1c0   : > { %10675 = vst [vmem:[#allocation99_spill] sm:$0xff] %v9444_v22  ;;  %v9449_v21 = vsel %vm1339_vm2, %v4005_v12, %v4014_v47  ;;  %v9452_v62 = vsel %vm1339_vm2, %v4014_v47, %v4023_v56  ;;  %v4040_v9 = vrot.slane %v9256_v8, 4  ;;  %v4982_v5 = vrot.slane %v9264_v18, 4  ;;  %v10691_v22 = vld [vmem:[#allocation67_spill] sm:$0xff] }
 0x1c1   : > { %10676 = vst [vmem:[#allocation100_spill] sm:$0xff] %v9449_v21  ;;  %10677 = vst [vmem:[#allocation101_spill] sm:$0xff] %v9452_v62  ;;  %v9457_v24 = vsel %vm1879_vm3, %v4972_v42, %v4976_v7  ;;  %v4980_v52 = vor.u32 %v4979_v34, %v4978_v1  ;;  %v4032_v27 = vor.u32 %v4031_v45, %v4028_v23  ;;  %v4983_v57 = vrot.slane %v9260_v30, 5  ;;  %v10680_v34 = vld [vmem:[#allocation53_spill] sm:$0xff] }
 0x1c2   : > { %10678 = vst [vmem:[#allocation102_spill] sm:$0xff] %v9457_v24  ;;  %v4986_v12 = vrot.slane %v9268_v36, 4  ;;  %v4987_v47 = vrot.slane %v9266_v3, 5  ;;  %v4041_v21 = vor.u32 %v4040_v9, %v4037_v38  ;;  %v4046_v42 = vrot.slane %v9264_v18, 3 }
 0x1c3   : > { %v9466_v62 = vsel %vm1879_vm3, %v4976_v7, %v4980_v52  ;;  %v4049_v1 = vrot.slane %v9260_v30, 4  ;;  %v9473_v23 = vsel %vm1339_vm2, %v4023_v56, %v4032_v27  ;;  %v4984_v45 = vor.u32 %v4983_v57, %v4982_v5 }
 0x1c4   : > { %10679 = vst [vmem:[#allocation103_spill] sm:$0xff] %v9466_v62  ;;  %10681 = vst [vmem:[#allocation53_spill] sm:$0xff] %v9473_v23  ;;  %v4988_v24 = vor.u32 %v4987_v47, %v4986_v12  ;;  %v9478_v7 = vsel %vm1339_vm2, %v4032_v27, %v4041_v21  ;;  %v4058_v9 = vrot.slane %v9266_v3, 4  ;;  %v4990_v62 = vrot.slane %v9275_v26, 4  ;;  %v10687_v47 = vld [vmem:[#allocation77_spill] sm:$0xff] }
 0x1c5   : > { %7270 = vmatmul.mubr.bf16.gmra.mrb[72].mxu0 %v9161_v35  ;;  %v10682_v35 = vld [vmem:[#allocation54_spill] sm:$0xff]  ;;  %v4050_v38 = vor.u32 %v4049_v1, %v4046_v42  ;;  %v4991_v56 = vrot.slane %v9273_v10, 5  ;;  %v4064_v5 = vrot.slane %v9275_v26, 3  ;;  %v4067_v12 = vrot.slane %v9273_v10, 4 }
 0x1c6   : > { %7458 = vmatmul.mubr.bf16.gmra.mrb[36].mxu1 %v10680_v34  ;;  %7273 = vmatprep.mubr.bf16.mxu0 %v9165_v28  ;;  %10683 = vst [vmem:[#allocation54_spill] sm:$0xff] %v9478_v7  ;;  %v9483_v34 = vsel %vm1879_vm3, %v4980_v52, %v4984_v45  ;;  %v9486_v28 = vsel %vm1879_vm3, %v4984_v45, %v4988_v24  ;;  %v4073_v42 = vrot.slane %v10687_v47, 3  ;;  %v3257_v1 = vld [vmem:[#allocation2 + $0x18] sm:$0xff]  ;;  %v10688_v52 = vld [vmem:[#allocation76_spill] sm:$0xff]  ;;  %v4082_v45 = vrot.slane %v9302_v19, 3 }
 0x1c7   : > { %7461 = vmatprep.mubr.bf16.mxu1 %v10682_v35  ;;  %10684 = vst [vmem:[#allocation104_spill] sm:$0xff] %v9483_v34  ;;  %10685 = vst [vmem:[#allocation105_spill] sm:$0xff] %v9486_v28  ;;  %v9491_v57 = vsel %vm1339_vm2, %v4041_v21, %v4050_v38  ;;  %v4059_v27 = vor.u32 %v4058_v9, %v4055_v53  ;;  %v9495_v35 = vor.u32 %v4991_v56, %v4990_v62  ;;  %v10689_v28 = vld [vmem:[#allocation78_spill] sm:$0xff]  ;;  %v10690_v34 = vld [vmem:[#allocation63_spill] sm:$0xff] }
 0x1c8   : > { %10686 = vst [vmem:[#allocation106_spill] sm:$0xff] %v9491_v57  ;;  %v4076_v7 = vrot.slane %v10688_v52, 4  ;;  %v4085_v23 = vrot.slane %v10689_v28, 4  ;;  %v10693_v13 = vor.u32 %v10691_v22, %v10692_v41  ;;  %v4068_v9 = vor.u32 %v4067_v12, %v4064_v5  ;;  %v10695_v57 = vld [vmem:[#allocation64_spill] sm:$0xff]  ;;  %v10698_v56 = vld [vmem:[#allocation11_spill] sm:$0xff] }
 0x1c9   : > { %v9506_v53 = vsel %vm1339_vm2, %v4050_v38, %v4059_v27  ;;  %v10697_v62 = vor.u32 %v10695_v57, %v10696_v43  ;;  %v9515_v17 = vsel %vm1879_vm3, %v4988_v24, %v9495_v35  ;;  %v3307_v22 = vshll.u32 %v3257_v1, 16  ;;  %v10702_v38 = vld [vmem:[#allocation6_spill] sm:$0xff]  ;;  %v10704_v57 = vld [vmem:[#allocation65_spill] sm:$0xff] }
 0x1ca   : > { %v1891_v21 = vsel %vm1879_vm3, %v10693_v13, %v10690_v34  ;;  %10694 = vst [vmem:[#allocation77_spill] sm:$0xff] %v9506_v53  ;;  %10699 = vst [vmem:[#allocation76_spill] sm:$0xff] %v9515_v17  ;;  %v4077_v29 = vor.u32 %v4076_v7, %v4073_v42  ;;  %v9517_v26 = vor.u32 %v4085_v23, %v4082_v45  ;;  %v10701_v13 = vld [vmem:[#allocation5_spill] sm:$0xff]  ;;  %v1897_v53 = vrot.slane %v10702_v38, 5  ;;  %v8288_v43 = vld [vmem:[#allocation2 + $0xb8] sm:$0xff] }
 0x1cb   : > { %v1563_v33 = vsel %vm1339_vm2, %v10698_v56, %v10697_v62  ;;  %v1896_v41 = vrot.slane %v10701_v13, 4  ;;  %v9522_v5 = vsel %vm1339_vm2, %v4059_v27, %v4068_v9  ;;  %v10705_v12 = vshll.u32 %v10704_v57, 16  ;;  %v10708_v23 = vld [vmem:[#allocation59_spill] sm:$0xff] }
 0x1cc   : > { %10700 = vst [vmem:[#allocation78_spill] sm:$0xff] %v9517_v26  ;;  %10703 = vst [vmem:[#allocation63_spill] sm:$0xff] %v9522_v5  ;;  %v9527_v24 = vsel %vm1339_vm2, %v4068_v9, %v4077_v29  ;;  %v3300_v7 = vshrl.u32 %v10704_v57, 16  ;;  %v3309_v42 = vrot.slane %v3307_v22, 1  ;;  %v3311_v56 = vshrl.u32 %v3257_v1, 16  ;;  %v10709_v13 = vld [vmem:[#allocation3_spill] sm:$0xff] }
 0x1cd   : > { %7274 = vmatmul.mubr.bf16.gmra.mrb[76].mxu0 %v1563_v33  ;;  %v3304_v62 = vrot.slane %v10705_v12, 1  ;;  %10706 = vst [vmem:[#allocation67_spill] sm:$0xff] %v9527_v24  ;;  %v9531_v33 = vsel %vm1339_vm2, %v4077_v29, %v9517_v26  ;;  %v1898_v27 = vor.u32 %v1897_v53, %v1896_v41  ;;  %v10710_v38 = vld [vmem:[#allocation7_spill] sm:$0xff]  ;;  %v10712_v24 = vld [vmem:[#allocation4_spill] sm:$0xff]  ;;  %v10713_v26 = vld [vmem:[#allocation9_spill] sm:$0xff] }
 0x1ce   : > { %7462 = vmatmul.mubr.bf16.gmra.mrb[40].mxu1 %v8288_v43  ;;  %7293 = vmatprep.mubr.bf16.mxu0 %v1891_v21  ;;  %10707 = vst [vmem:[#allocation66_spill] sm:$0xff] %v9531_v33  ;;  %v1895_v21 = vsel %vm1879_vm3, %v10690_v34, %v10709_v13  ;;  %v1900_v9 = vrot.slane %v10710_v38, 4  ;;  %v10711_v43 = vld [vmem:[#allocation8_spill] sm:$0xff]  ;;  %v1904_v29 = vrot.slane %v10712_v24, 4  ;;  %v1905_v33 = vrot.slane %v10713_v26, 5  ;;  %v10716_v57 = vld [vmem:[#allocation62_spill] sm:$0xff] }
 0x1cf   : > { %7465 = vmatprep.mubr.bf16.mxu1 %v10708_v23  ;;  %v3305_v45 = vor.u32 %v3304_v62, %v3300_v7  ;;  %v1901_v12 = vrot.slane %v10711_v43, 5  ;;  %v9545_v22 = vld [vmem:[%s10424_s4 + $0x208] sm:$0xff]   ;;  %v3313_v53 = vor.u32 %v3311_v56, %v3309_v42  ;;  %v1899_v1 = vsel %vm1879_vm3, %v10709_v13, %v1898_v27  ;;  %v10717_v24 = vld [vmem:[#allocation18_spill] sm:$0xff]  ;;  %v9553_v26 = vld [vmem:[#allocation2] sm:$0xff] }
 0x1d0   : > { %10714 = vst [vmem:[#allocation64_spill] sm:$0xff] %v9545_v22  ;;  %v10715_v41 = vld [vmem:[#allocation68_spill] sm:$0xff]  ;;  %10718 = vst [vmem:[#allocation10_spill] sm:$0xff] %v9553_v26  ;;  %v10536_v23 = vshrl.u32 %v9553_v26, 16  ;;  %v9561_v13 = vld [vmem:[%s10424_s4 + $0x210] sm:$0xff]   ;;  %v10531_v38 = vrot.slane %v9270_v63, 4 }
 0x1d1   : > { %v3317_v34 = vrot.slane %v10715_v41, 1  ;;  %v3310_v62 = vsel %vm3298_vm4, %v3305_v45, %v3309_v42  ;;  %v1902_v56 = vor.u32 %v1901_v12, %v1900_v9  ;;  %v10719_v42 = vld [vmem:[#allocation16_spill] sm:$0xff]  ;;  %v4995_v12 = vrot.slane %v10688_v52, 5 }
 0x1d2   : > { %v10532_v45 = vrot.slane %v10719_v42, 4 }
 0x1d3   : > { %v3318_v43 = vsel %vm3298_vm4, %v3313_v53, %v3317_v34  ;;  %v4999_v53 = vrot.slane %v10689_v28, 5  ;;  %v1903_v63 = vsel %vm1879_vm3, %v1898_v27, %v1902_v56  ;;  %v9597_v27 = vld [vmem:[%s10424_s4 + $0x218] sm:$0xff]  }
 0x1d5   : > { %7294 = vmatmul.mubr.bf16.vlgmr.msra.gmra.mrb[32].mxu0 %v1895_v21  ;;  %v1906_v21 = vor.u32 %v1905_v33, %v1904_v29  ;;  %v9574_v33 = vsel %vm992_vm0, %v10532_v45, %v10531_v38  ;;  %v4998_v29 = vrot.slane %v9302_v19, 4  ;;  %v10725_v45 = vld [vmem:[#allocation13_spill] sm:$0xff] }
 0x1d6   : > { %7466 = vmatmul.mubr.bf16.gmra.mrb[44].mxu1 %v10716_v57  ;;  %7297 = vmatprep.mubr.bf16.mxu0 %v1899_v1  ;;  %v10720_v1 = vld [vmem:[#allocation69_spill] sm:$0xff]  ;;  %v4994_v57 = vrot.slane %v10687_v47, 4  ;;  %10722 = vst [vmem:[#allocation11_spill] sm:$0xff] %v9574_v33  ;;  %v1909_v33 = vrot.slane %v10725_v45, 5 }
 0x1d7   : > { %7485 = vmatprep.mubr.bf16.mxu1 %v3310_v62  ;;  %7662 = vmatpush3.bf16.msra.mxu0 %v10717_v24  ;;  %v3321_v41 = vor.u32 %v10720_v1, %v3317_v34  ;;  %v10721_v62 = vld [vmem:[#allocation70_spill] sm:$0xff]  ;;  %v10723_v24 = vld [vmem:[#allocation12_spill] sm:$0xff]  ;;  %v5002_v34 = vrot.slane %v10536_v23, 4  ;;  %v10724_v1 = vshll.u32 %v9553_v26, 16  ;;  %v1907_v38 = vsel %vm1879_vm3, %v1902_v56, %v1906_v21  ;;  %v10727_v23 = vld [vmem:[#allocation15_spill] sm:$0xff] }
 0x1d8   : > { %7663 = vmatprep.subr.bf16.mxu0 %v9545_v22  ;;  %v3325_v9 = vrot.slane %v10721_v62, 1  ;;  %v1908_v7 = vrot.slane %v10723_v24, 4  ;;  %v8255_v24 = vld [vmem:[%s10424_s4 + $0x188] sm:$0xff]   ;;  %v4996_v42 = vor.u32 %v4995_v12, %v4994_v57  ;;  %v1913_v17 = vrot.slane %v10727_v23, 5  ;;  %v10731_v12 = vld [vmem:[#allocation73_spill] sm:$0xff] }
 0x1d9   : > { %v5003_v62 = vrot.slane %v10724_v1, 5  ;;  %v5000_v56 = vor.u32 %v4999_v53, %v4998_v29  ;;  %v10728_v26 = vld [vmem:[#allocation72_spill] sm:$0xff]  ;;  %v10732_v53 = vld [vmem:[#allocation17_spill] sm:$0xff] }
 0x1da   : > { %v3326_v45 = vsel %vm3298_vm4, %v3321_v41, %v3325_v9  ;;  %v3333_v19 = vrot.slane %v10728_v26, 1  ;;  %v8256_v26 = vld [vmem:[%s10424_s4 + $0x190] sm:$0xff]  }
 0x1db   : > { %7664 = vmatpush3.bf16.msra.mxu0 %v9545_v22  ;;  %v10726_v22 = vld [vmem:[#allocation14_spill] sm:$0xff]  ;;  %v9599_v1 = vor.u32 %v5003_v62, %v5002_v34  ;;  %v9609_v23 = vsel %vm1879_vm3, %v4996_v42, %v5000_v56  ;;  %v1916_v34 = vrot.slane %v10732_v53, 4  ;;  %v10733_v62 = vld [vmem:[#allocation19_spill] sm:$0xff] }
 0x1dc   : > { %7665 = vmatprep.subr.bf16.mxu0 %v9561_v13  ;;  %v1912_v5 = vrot.slane %v10726_v22, 4  ;;  %v10729_v22 = vld [vmem:[#allocation20_spill] sm:$0xff]  ;;  %v3337_v29 = vor.u32 %v10731_v12, %v3333_v19 }
 0x1dd   : > { %7298 = vmatmul.mubr.bf16.gmra.mrb[36].mxu0 %v1903_v63  ;;  %v9605_v63 = vsel %vm1879_vm3, %v9495_v35, %v4996_v42  ;;  %v9613_v57 = vsel %vm1879_vm3, %v5000_v56, %v9599_v1  ;;  %v10730_v35 = vld [vmem:[#allocation71_spill] sm:$0xff]  ;;  %v1917_v56 = vrot.slane %v10733_v62, 5 }
 0x1de   : > { %7486 = vmatmul.mubr.bf16.vlgmr.msra.gmra.mrb[0].mxu1 %v3318_v43  ;;  %7301 = vmatprep.mubr.bf16.mxu0 %v1907_v38  ;;  %v1910_v43 = vor.u32 %v1909_v33, %v1908_v7  ;;  %v3329_v38 = vor.u32 %v10730_v35, %v3325_v9  ;;  %v1914_v41 = vor.u32 %v1913_v17, %v1912_v5  ;;  %v9624_v42 = vld [vmem:[%s10424_s4 + $0x220] sm:$0xff]   ;;  %v3341_v7 = vrot.slane %v9195_v51, 1  ;;  %v8257_v17 = vld [vmem:[%s10424_s4 + $0x198] sm:$0xff]  }
 0x1df   : > { %7534 = vmatpush3.bf16.msra.mxu1 %v10729_v22  ;;  %7489 = vmatprep.mubr.bf16.mxu1 %v3326_v45  ;;  %v10735_v45 = vld [vmem:[#allocation23_spill] sm:$0xff]  ;;  %v9643_v22 = vld [vmem:[%s10424_s4 + $0x228] sm:$0xff]  }
 0x1e0   : > { %7535 = vmatprep.subr.bf16.mxu1 %v8255_v24  ;;  %7666 = vmatpush3.bf16.msra.mxu0 %v9561_v13  ;;  %v1911_v33 = vsel %vm1879_vm3, %v1906_v21, %v1910_v43  ;;  %v3334_v5 = vsel %vm3298_vm4, %v3329_v38, %v3333_v19  ;;  %v1915_v9 = vsel %vm1879_vm3, %v1910_v43, %v1914_v41  ;;  %v1921_v21 = vrot.slane %v10735_v45, 5  ;;  %v8258_v38 = vld [vmem:[%s10424_s4 + $0x1a0] sm:$0xff]  }
 0x1e1   : > { %7667 = vmatprep.subr.bf16.mxu0 %v9597_v27  ;;  %v3342_v35 = vsel %vm3298_vm4, %v3337_v29, %v3341_v7  ;;  %v3349_v19 = vrot.slane %v9199_v31, 1  ;;  %v1918_v43 = vor.u32 %v1917_v56, %v1916_v34  ;;  %v9655_v29 = vld [vmem:[%s10424_s4 + $0x230] sm:$0xff]   ;;  %v3357_v31 = vrot.slane %v9203_v11, 1  ;;  %v10736_v34 = vld [vmem:[#allocation22_spill] sm:$0xff] }
 0x1e2   : > { %v1924_v62 = vrot.slane %v10736_v34, 4  ;;  %v10737_v56 = vld [vmem:[#allocation25_spill] sm:$0xff]  ;;  %v3365_v45 = vrot.slane %v9207_v54, 1  ;;  %v10741_v34 = vld [vmem:[#allocation30_spill] sm:$0xff] }
 0x1e3   : > { %7536 = vmatpush3.bf16.msra.mxu1 %v8255_v24  ;;  %v10734_v24 = vld [vmem:[#allocation21_spill] sm:$0xff]  ;;  %v1919_v53 = vsel %vm1879_vm3, %v1914_v41, %v1918_v43 }
 0x1e4   : > { %7537 = vmatprep.subr.bf16.mxu1 %v8256_v26  ;;  %7668 = vmatpush3.bf16.msra.mxu0 %v9597_v27  ;;  %v1920_v51 = vrot.slane %v10734_v24, 4  ;;  %v9675_v24 = vld [vmem:[%s10424_s4 + $0x238] sm:$0xff]  }
 0x1e5   : > { %7302 = vmatmul.mubr.bf16.gmra.mrb[40].mxu0 %v1911_v33  ;;  %7669 = vmatprep.subr.bf16.mxu0 %v9624_v42  ;;  %v3345_v33 = vor.u32 %v9197_v49, %v3341_v7  ;;  %v10738_v49 = vld [vmem:[#allocation27_spill] sm:$0xff] }
 0x1e6   : > { %7490 = vmatmul.mubr.bf16.gmra.mrb[4].mxu1 %v3334_v5  ;;  %7305 = vmatprep.mubr.bf16.mxu0 %v1915_v9  ;;  %v1922_v12 = vor.u32 %v1921_v21, %v1920_v51  ;;  %v1925_v5 = vrot.slane %v10737_v56, 5  ;;  %v8259_v9 = vld [vmem:[%s10424_s4 + $0x1a8] sm:$0xff]   ;;  %v1928_v7 = vrot.slane %v10738_v49, 4  ;;  %v8267_v56 = vld [vmem:[%s10424_s4 + $0x1b8] sm:$0xff]   ;;  %v9703_v49 = vld [vmem:[%s10424_s4 + $0x1c0] sm:$0xff]  }
 0x1e7   : > { %7493 = vmatprep.mubr.bf16.mxu1 %v3342_v35  ;;  %7538 = vmatpush3.bf16.msra.mxu1 %v8256_v26  ;;  %v3353_v26 = vor.u32 %v9201_v25, %v3349_v19  ;;  %v3350_v25 = vsel %vm3298_vm4, %v3345_v33, %v3349_v19  ;;  %v8263_v35 = vld [vmem:[%s10424_s4 + $0x1b0] sm:$0xff]   ;;  %v3361_v19 = vor.u32 %v9205_v15, %v3357_v31  ;;  %v3373_v33 = vrot.slane %v9212_v44, 1  ;;  %v10742_v44 = vld [vmem:[#allocation32_spill] sm:$0xff] }
 0x1e8   : > { %7539 = vmatprep.subr.bf16.mxu1 %v8257_v17  ;;  %7670 = vmatpush3.bf16.msra.mxu0 %v9624_v42  ;;  %v1923_v11 = vsel %vm1879_vm3, %v1918_v43, %v1922_v12  ;;  %v1926_v21 = vor.u32 %v1925_v5, %v1924_v62  ;;  %v1933_v62 = vrot.slane %v10741_v34, 5  ;;  %v10743_v5 = vld [vmem:[#allocation35_spill] sm:$0xff] }
 0x1e9   : > { %7671 = vmatprep.subr.bf16.mxu0 %v9643_v22  ;;  %v3358_v51 = vsel %vm3298_vm4, %v3353_v26, %v3357_v31  ;;  %v3369_v26 = vor.u32 %v9209_v2, %v3365_v45  ;;  %v3366_v15 = vsel %vm3298_vm4, %v3361_v19, %v3365_v45  ;;  %v1936_v31 = vrot.slane %v10742_v44, 4  ;;  %v10748_v44 = vld [vmem:[#allocation40_spill] sm:$0xff] }
 0x1ea   : > { %v1927_v54 = vsel %vm1879_vm3, %v1922_v12, %v1926_v21  ;;  %v1937_v12 = vrot.slane %v10743_v5, 5  ;;  %v10749_v5 = vld [vmem:[#allocation42_spill] sm:$0xff] }
 0x1eb   : > { %7540 = vmatpush3.bf16.msra.mxu1 %v8257_v17  ;;  %v10739_v17 = vld [vmem:[#allocation29_spill] sm:$0xff] }
 0x1ec   : > { %7541 = vmatprep.subr.bf16.mxu1 %v8258_v38  ;;  %7672 = vmatpush3.bf16.msra.mxu0 %v9643_v22  ;;  %v1929_v41 = vrot.slane %v10739_v17, 5  ;;  %v1938_v17 = vor.u32 %v1937_v12, %v1936_v31  ;;  %v1948_v31 = vrot.slane %v10748_v44, 4  ;;  %v1949_v12 = vrot.slane %v10749_v5, 5  ;;  %v10757_v44 = vld [vmem:[#allocation52_spill] sm:$0xff] }
 0x1ed   : > { %7306 = vmatmul.mubr.bf16.gmra.mrb[44].mxu0 %v1919_v53  ;;  %7673 = vmatprep.subr.bf16.mxu0 %v9655_v29 }
 0x1ee   : > { %7494 = vmatmul.mubr.bf16.gmra.mrb[8].mxu1 %v3350_v25  ;;  %7309 = vmatprep.mubr.bf16.mxu0 %v1923_v11  ;;  %v1930_v43 = vor.u32 %v1929_v41, %v1928_v7  ;;  %v3381_v25 = vrot.slane %v9216_v14, 1  ;;  %v3377_v7 = vor.u32 %v9214_v16, %v3373_v33  ;;  %v10744_v14 = vld [vmem:[#allocation33_spill] sm:$0xff]  ;;  %v10746_v16 = vld [vmem:[#allocation39_spill] sm:$0xff] }
 0x1ef   : > { %7497 = vmatprep.mubr.bf16.mxu1 %v3358_v51  ;;  %7542 = vmatpush3.bf16.msra.mxu1 %v8258_v38  ;;  %v10740_v38 = vld [vmem:[#allocation28_spill] sm:$0xff]  ;;  %v3389_v51 = vrot.slane %v9221_v37, 1 }
 0x1f0   : > { %7543 = vmatprep.subr.bf16.mxu1 %v8259_v9  ;;  %7674 = vmatpush3.bf16.msra.mxu0 %v9655_v29  ;;  %v1932_v53 = vrot.slane %v10740_v38, 4  ;;  %v1931_v2 = vsel %vm1879_vm3, %v1926_v21, %v1930_v43  ;;  %v3385_v41 = vor.u32 %v9218_v60, %v3381_v25  ;;  %v1940_v21 = vrot.slane %v10744_v14, 4  ;;  %v10747_v38 = vld [vmem:[#allocation41_spill] sm:$0xff] }
 0x1f1   : > { %7675 = vmatprep.subr.bf16.mxu0 %v9675_v24  ;;  %v1945_v60 = vrot.slane %v10747_v38, 5  ;;  %v3393_v34 = vor.u32 %v9223_v58, %v3389_v51  ;;  %v3421_v14 = vrot.slane %v9241_v48, 1  ;;  %v3429_v48 = vrot.slane %v9246_v61, 1 }
 0x1f2   : > { %v1934_v11 = vor.u32 %v1933_v62, %v1932_v53  ;;  %v3390_v37 = vsel %vm3298_vm4, %v3385_v41, %v3389_v51 }
 0x1f3   : > { %7544 = vmatpush3.bf16.msra.mxu1 %v8259_v9  ;;  %v3374_v9 = vsel %vm3298_vm4, %v3369_v26, %v3373_v33  ;;  %v3382_v26 = vsel %vm3298_vm4, %v3377_v7, %v3381_v25  ;;  %v1944_v33 = vrot.slane %v10746_v16, 4  ;;  %v10751_v7 = vld [vmem:[#allocation47_spill] sm:$0xff] }
 0x1f4   : > { %7545 = vmatprep.subr.bf16.mxu1 %v8263_v35  ;;  %7676 = vmatpush3.bf16.msra.mxu0 %v9675_v24  ;;  %v1935_v45 = vsel %vm1879_vm3, %v1930_v43, %v1934_v11  ;;  %v3397_v43 = vrot.slane %v9225_v50, 1  ;;  %v10750_v50 = vld [vmem:[#allocation44_spill] sm:$0xff]  ;;  %v1953_v58 = vrot.slane %v10751_v7, 5 }
 0x1f5   : > { %7310 = vmatmul.mubr.bf16.gmra.mrb[48].mxu0 %v1927_v54  ;;  %v1939_v54 = vsel %vm1879_vm3, %v1934_v11, %v1938_v17  ;;  %v1946_v62 = vor.u32 %v1945_v60, %v1944_v33  ;;  %v1952_v11 = vrot.slane %v10750_v50, 4  ;;  %v10754_v33 = vld [vmem:[#allocation49_spill] sm:$0xff]  ;;  %v10755_v60 = vld [vmem:[#allocation51_spill] sm:$0xff] }
 0x1f6   : > { %7498 = vmatmul.mubr.bf16.gmra.mrb[12].mxu1 %v3366_v15  ;;  %7313 = vmatprep.mubr.bf16.mxu0 %v1931_v2  ;;  %v3405_v15 = vrot.slane %v9231_v32, 1  ;;  %v3413_v32 = vrot.slane %v9235_v6, 1  ;;  %v1960_v38 = vrot.slane %v10754_v33, 4 }
 0x1f7   : > { %7501 = vmatprep.mubr.bf16.mxu1 %v3374_v9  ;;  %7546 = vmatpush3.bf16.msra.mxu1 %v8263_v35  ;;  %v10745_v35 = vld [vmem:[#allocation36_spill] sm:$0xff]  ;;  %v3398_v9 = vsel %vm3298_vm4, %v3393_v34, %v3397_v43  ;;  %v1954_v51 = vor.u32 %v1953_v58, %v1952_v11  ;;  %v3433_v34 = vor.u32 %v9248_v46, %v3429_v48 }
 0x1f8   : > { %7547 = vmatprep.subr.bf16.mxu1 %v8267_v56  ;;  %v1941_v19 = vrot.slane %v10745_v35, 5  ;;  %v3409_v41 = vor.u32 %v9233_v0, %v3405_v15  ;;  %v10752_v35 = vld [vmem:[#allocation45_spill] sm:$0xff]  ;;  %v1961_v0 = vrot.slane %v10755_v60, 5 }
 0x1fa   : > { %v1942_v53 = vor.u32 %v1941_v19, %v1940_v21  ;;  %v1956_v19 = vrot.slane %v10752_v35, 4  ;;  %v3414_v16 = vsel %vm3298_vm4, %v3409_v41, %v3413_v32 }
 0x1fb   : > { %7548 = vmatpush3.bf16.msra.mxu1 %v8267_v56  ;;  %v3401_v56 = vor.u32 %v9227_v55, %v3397_v43  ;;  %v3425_v43 = vor.u32 %v9243_v39, %v3421_v14 }
 0x1fc   : > { %7597 = vmatprep.subr.bf16.mxu1 %v9703_v49  ;;  %v1943_v2 = vsel %vm1879_vm3, %v1938_v17, %v1942_v53  ;;  %v1947_v25 = vsel %vm1879_vm3, %v1942_v53, %v1946_v62  ;;  %v1950_v17 = vor.u32 %v1949_v12, %v1948_v31  ;;  %v1962_v53 = vor.u32 %v1961_v0, %v1960_v38  ;;  %v10758_v12 = vld [vmem:[#allocation55_spill] sm:$0xff] }
 0x1fd   : > { %7314 = vmatmul.mubr.bf16.gmra.mrb[52].mxu0 %v1935_v45  ;;  %v3406_v55 = vsel %vm3298_vm4, %v3401_v56, %v3405_v15  ;;  %v3417_v45 = vor.u32 %v9239_v40, %v3413_v32  ;;  %v10756_v15 = vld [vmem:[#allocation50_spill] sm:$0xff]  ;;  %v1965_v31 = vrot.slane %v10757_v44, 5  ;;  %v3430_v5 = vsel %vm3298_vm4, %v3425_v43, %v3429_v48  ;;  %v10764_v44 = vld [vmem:[#allocation75_spill] sm:$0xff] }
 0x1fe   : > { %7502 = vmatmul.mubr.bf16.gmra.mrb[16].mxu1 %v3382_v26  ;;  %7317 = vmatprep.mubr.bf16.mxu0 %v1939_v54  ;;  %v1951_v21 = vsel %vm1879_vm3, %v1946_v62, %v1950_v17  ;;  %v10753_v26 = vld [vmem:[#allocation48_spill] sm:$0xff]  ;;  %v1955_v6 = vsel %vm1879_vm3, %v1950_v17, %v1954_v51  ;;  %v3437_v62 = vrot.slane %v9250_v20, 1  ;;  %v3445_v20 = vrot.slane %v9256_v8, 1 }
 0x1ff   : > { %7505 = vmatprep.mubr.bf16.mxu1 %v3390_v37  ;;  %v1957_v54 = vrot.slane %v10753_v26, 5  ;;  %v3422_v40 = vsel %vm3298_vm4, %v3417_v45, %v3421_v14  ;;  %v10760_v17 = vld [vmem:[#allocation56_spill] sm:$0xff]  ;;  %v1861_v26 = vld [vmem:[#allocation2 + $0xc0] sm:$0x1f] }
 0x200   : > { %v3438_v46 = vsel %vm3298_vm4, %v3433_v34, %v3437_v62  ;;  %v3441_v11 = vor.u32 %v9252_v59, %v3437_v62  ;;  %v3449_v58 = vor.u32 %v9258_v4, %v3445_v20  ;;  %v1972_v41 = vrot.slane %v10760_v17, 4  ;;  %v10762_v8 = vld [vmem:[#allocation60_spill] sm:$0xff] }
 0x201   : > { %v1958_v37 = vor.u32 %v1957_v54, %v1956_v19  ;;  %v1976_v35 = vrot.slane %v10762_v8, 4  ;;  %v10763_v19 = vld [vmem:[#allocation61_spill] sm:$0xff]  ;;  %v9766_v54 = vld [vmem:[#allocation2 + $0x18] sm:$0xf0]  ;;  %v1984_v33 = vshll.u32 %v1861_v26, 16  ;;  %v8271_v8 = vld [vmem:[%s10424_s4 + $0x1c8] sm:$0xff]  }
 0x202   : > { %v3446_v14 = vsel %vm3298_vm4, %v3441_v11, %v3445_v20  ;;  %v1977_v59 = vrot.slane %v10763_v19, 5  ;;  %v4907_v0 = vshrl.u32 %v9766_v54, 16  ;;  %v10771_v19 = vld [vmem:[#allocation81_spill] sm:$0xff] }
 0x203   : > { %v1959_v56 = vsel %vm1879_vm3, %v1954_v51, %v1958_v37  ;;  %v1963_v61 = vsel %vm1879_vm3, %v1958_v37, %v1962_v53  ;;  %v10761_v51 = vld [vmem:[#allocation58_spill] sm:$0xff]  ;;  %v3469_v37 = vrot.slane %v9273_v10, 1 }
 0x204   : > { %v1973_v45 = vrot.slane %v10761_v51, 5  ;;  %v1978_v60 = vor.u32 %v1977_v59, %v1976_v35  ;;  %v10767_v51 = vld [vmem:[#allocation24_spill] sm:$0xff]  ;;  %v10770_v35 = vld [vmem:[#allocation83_spill] sm:$0xff] }
 0x205   : > { %7318 = vmatmul.mubr.bf16.gmra.mrb[56].mxu0 %v1943_v2  ;;  %v1964_v2 = vrot.slane %v10756_v15, 4  ;;  %v10772_v59 = vld [vmem:[#allocation84_spill] sm:$0xff] }
 0x206   : > { %7506 = vmatmul.mubr.bf16.gmra.mrb[20].mxu1 %v3398_v9  ;;  %7321 = vmatprep.mubr.bf16.mxu0 %v1947_v25  ;;  %v1968_v9 = vrot.slane %v10758_v12, 4  ;;  %v10759_v25 = vld [vmem:[#allocation57_spill] sm:$0xff] }
 0x207   : > { %7509 = vmatprep.mubr.bf16.mxu1 %v3406_v55  ;;  %v1969_v39 = vrot.slane %v10759_v25, 5  ;;  %v1966_v50 = vor.u32 %v1965_v31, %v1964_v2  ;;  %v3453_v55 = vrot.slane %v9260_v30, 1  ;;  %v3461_v30 = vrot.slane %v9266_v3, 1  ;;  %v3280_v12 = vld [vmem:[#allocation2 + $0xd0] sm:$0x1] }
 0x208   : > { %v3477_v2 = vrot.slane %v10688_v52, 1  ;;  %v3473_v31 = vor.u32 %v10764_v44, %v3469_v37  ;;  %v3491_v11 = vshll.u32 %v3280_v12, 16  ;;  %v10790_v44 = vld [vmem:[#allocation34_spill] sm:$0xff] }
 0x209   : > { %v1970_v7 = vor.u32 %v1969_v39, %v1968_v9  ;;  %v1967_v32 = vsel %vm1879_vm3, %v1962_v53, %v1966_v50  ;;  %v3454_v4 = vsel %vm3298_vm4, %v3449_v58, %v3453_v55  ;;  %v3457_v38 = vor.u32 %v9264_v18, %v3453_v55  ;;  %v10766_v55 = vld [vmem:[#allocation31_spill] sm:$0xff]  ;;  %v10794_v12 = vld [vmem:[#allocation102_spill] sm:$0xff] }
 0x20a   : > { %v3465_v48 = vor.u32 %v9268_v36, %v3461_v30  ;;  %v1986_v53 = vrot.slane %v1984_v33, 5  ;;  %v3840_v36 = vld [vmem:[#allocation2 + $0x18] sm:$0xf8]  ;;  %v3485_v39 = vrot.slane %v10689_v28, 1  ;;  %v3478_v20 = vsel %vm3298_vm4, %v3473_v31, %v3477_v2 }
 0x20b   : > { %v3462_v34 = vsel %vm3298_vm4, %v3457_v38, %v3461_v30  ;;  %v3883_v9 = vshrl.u32 %v3840_v36, 16  ;;  %v3886_v25 = vshll.u32 %v3840_v36, 16  ;;  %v3493_v17 = vrot.slane %v3491_v11, 1  ;;  %v8273_v30 = vld [vmem:[%s10424_s4 + $0x1d8] sm:$0xff]   ;;  %v8274_v38 = vld [vmem:[%s10424_s4 + $0x1e0] sm:$0xff]   ;;  %v10788_v36 = vld [vmem:[#allocation97_spill] sm:$0xff] }
 0x20c   : > { %v3470_v15 = vsel %vm3298_vm4, %v3465_v48, %v3469_v37  ;;  %v10776_v33 = vld [vmem:[#allocation86_spill] sm:$0xff]  ;;  %v10781_v37 = vld [vmem:[#allocation88_spill] sm:$0xff] }
 0x20d   : > { %7322 = vmatmul.mubr.bf16.gmra.mrb[60].mxu0 %v1951_v21  ;;  %v1971_v21 = vsel %vm1879_vm3, %v1966_v50, %v1970_v7  ;;  %v10765_v50 = vld [vmem:[#allocation26_spill] sm:$0xff]  ;;  %v3885_v58 = vrot.slane %v3883_v9, 3  ;;  %v10795_v9 = vld [vmem:[#allocation100_spill] sm:$0xff] }
 0x20e   : > { %7510 = vmatmul.mubr.bf16.gmra.mrb[24].mxu1 %v3414_v16  ;;  %7325 = vmatprep.mubr.bf16.mxu0 %v1955_v6  ;;  %v1974_v16 = vor.u32 %v1973_v45, %v1972_v41  ;;  %v1981_v6 = vshrl.u32 %v1861_v26, 16  ;;  %v10768_v45 = vld [vmem:[#allocation79_spill] sm:$0xff]  ;;  %v10773_v26 = vld [vmem:[#allocation82_spill] sm:$0xff]  ;;  %v10802_v11 = vld [vmem:[#allocation76_spill] sm:$0xff] }
 0x20f   : > { %7513 = vmatprep.mubr.bf16.mxu1 %v3422_v40  ;;  %v4910_v40 = vshll.u32 %v9766_v54, 16  ;;  %v10780_v48 = vld [vmem:[#allocation90_spill] sm:$0xff] }
 0x210   : > { %v1975_v43 = vsel %vm1879_vm3, %v1970_v7, %v1974_v16  ;;  %v1983_v3 = vrot.slane %v1981_v6, 4  ;;  %v1979_v62 = vsel %vm1879_vm3, %v1974_v16, %v1978_v60  ;;  %v10774_v16 = vld [vmem:[#allocation85_spill] sm:$0xff]  ;;  %v10791_v31 = vld [vmem:[#allocation98_spill] sm:$0xff] }
 0x211   : > { %v4912_v18 = vrot.slane %v4910_v40, 5  ;;  %v10775_v6 = vld [vmem:[#allocation37_spill] sm:$0xff]  ;;  %v10779_v40 = vld [vmem:[#allocation87_spill] sm:$0xff] }
 0x212   : > { %v1987_v10 = vor.u32 %v1986_v53, %v1983_v3  ;;  %v8277_v3 = vld [vmem:[%s10424_s4 + $0x1f8] sm:$0xff]   ;;  %v10782_v53 = vld [vmem:[#allocation43_spill] sm:$0xff] }
 0x215   : > { %7326 = vmatmul.mubr.bf16.gmra.mrb[64].mxu0 %v1959_v56  ;;  %v4909_v56 = vrot.slane %v4907_v0, 4  ;;  %v10778_v0 = vld [vmem:[#allocation89_spill] sm:$0xff] }
 0x216   : > { %7514 = vmatmul.mubr.bf16.gmra.mrb[28].mxu1 %v3430_v5  ;;  %7329 = vmatprep.mubr.bf16.mxu0 %v1963_v61  ;;  %v3481_v61 = vor.u32 %v10687_v47, %v3477_v2  ;;  %v3888_v47 = vrot.slane %v3886_v25, 4  ;;  %v10787_v2 = vld [vmem:[#allocation94_spill] sm:$0xff]  ;;  %v10796_v25 = vld [vmem:[#allocation103_spill] sm:$0xff] }
 0x217   : > { %7517 = vmatprep.mubr.bf16.mxu1 %v3438_v46  ;;  %v4913_v5 = vor.u32 %v4912_v18, %v4909_v56  ;;  %v1988_v46 = vsel %vm1879_vm3, %v1978_v60, %v1987_v10  ;;  %v8275_v60 = vld [vmem:[%s10424_s4 + $0x1e8] sm:$0xff]   ;;  %v8290_v18 = vld [vmem:[%s10424_s4 + $0x200] sm:$0xff]  }
 0x218   : > { %v3486_v7 = vsel %vm3298_vm4, %v3481_v61, %v3485_v39  ;;  %v3889_v28 = vor.u32 %v3888_v47, %v3885_v58  ;;  %v10785_v56 = vld [vmem:[#allocation92_spill] sm:$0xff]  ;;  %v10789_v10 = vld [vmem:[#allocation95_spill] sm:$0xff]  ;;  %v10793_v61 = vld [vmem:[#allocation46_spill] sm:$0xff] }
 0x219   : > { %v4917_v52 = vsel %vm1879_vm3, %v4913_v5, %v10765_v50  ;;  %v10792_v5 = vld [vmem:[#allocation99_spill] sm:$0xff]  ;;  %v10800_v50 = vld [vmem:[#allocation105_spill] sm:$0xff]  ;;  %v9852_v47 = vld [vmem:[#allocation2 + $0xd8] sm:$0xf] }
 0x21a   : > { %v10804_v58 = vld [vmem:[#allocation77_spill] sm:$0xff] }
 0x21d   : > { %7330 = vmatmul.mubr.bf16.gmra.mrb[68].mxu0 %v1967_v32  ;;  %v3489_v32 = vor.u32 %v10766_v55, %v3485_v39  ;;  %v10797_v39 = vld [vmem:[#allocation101_spill] sm:$0xff]  ;;  %v10805_v55 = vld [vmem:[#allocation63_spill] sm:$0xff] }
 0x21e   : > { %7518 = vmatmul.mubr.bf16.gmra.mrb[32].mxu1 %v3446_v14  ;;  %7333 = vmatprep.mubr.bf16.mxu0 %v1971_v21  ;;  %v3898_v14 = vsel %vm1339_vm2, %v3889_v28, %v10768_v45  ;;  %v10769_v21 = vld [vmem:[#allocation80_spill] sm:$0xff]  ;;  %v10809_v45 = vld [vmem:[#allocation67_spill] sm:$0xff] }
 0x21f   : > { %7521 = vmatprep.mubr.bf16.mxu1 %v3454_v4  ;;  %v3494_v41 = vsel %vm3298_vm4, %v3489_v32, %v3493_v17  ;;  %v8272_v4 = vld [vmem:[%s10424_s4 + $0x1d0] sm:$0xff]   ;;  %v10806_v32 = vld [vmem:[#allocation10_spill] sm:$0xff] }
 0x220   : > { %v10807_v17 = vshrl.u32 %v10806_v32, 16 }
 0x222   : > { %v4091_v28 = vrot.slane %v10807_v17, 3 }
 0x225   : > { %7334 = vmatmul.mubr.bf16.gmra.mrb[72].mxu0 %v1975_v43  ;;  %v8276_v43 = vld [vmem:[%s10424_s4 + $0x1f0] sm:$0xff]  }
 0x226   : > { %7522 = vmatmul.mubr.bf16.gmra.mrb[36].mxu1 %v3462_v34  ;;  %7337 = vmatprep.mubr.bf16.mxu0 %v1979_v62  ;;  %v10783_v34 = vld [vmem:[#allocation91_spill] sm:$0xff]  ;;  %v10784_v62 = vld [vmem:[#allocation93_spill] sm:$0xff] }
 0x227   : > { %7525 = vmatprep.mubr.bf16.mxu1 %v3470_v15  ;;  %v10786_v15 = vld [vmem:[#allocation96_spill] sm:$0xff] }
 0x22d   : > { %7338 = vmatmul.mubr.bf16.gmra.mrb[76].mxu0 %v1988_v46  ;;  %v10798_v46 = vld [vmem:[#allocation104_spill] sm:$0xff] }
 0x22e   : > { %7526 = vmatmul.mubr.bf16.gmra.mrb[40].mxu1 %v3478_v20  ;;  %7677 = vmatprep.mubr.bf16.mxu0 %v4917_v52  ;;  %v10799_v20 = vld [vmem:[#allocation53_spill] sm:$0xff]  ;;  %v10801_v52 = vld [vmem:[#allocation54_spill] sm:$0xff] }
 0x22f   : > { %7529 = vmatprep.mubr.bf16.mxu1 %v3486_v7  ;;  %v10803_v7 = vld [vmem:[#allocation106_spill] sm:$0xff] }
 0x235   : > { %7678 = vmatmul.mubr.bf16.vlgmr.msra.gmra.mrb[80].mxu0 %v10767_v51 }
 0x236   : > { %7530 = vmatmul.mubr.bf16.gmra.mrb[44].mxu1 %v3494_v41  ;;  %7681 = vmatprep.mubr.bf16.mxu0 %v10769_v21  ;;  %v10808_v41 = vshll.u32 %v10806_v32, 16  ;;  %v4101_v21 = vshll.u32 %v9852_v47, 16 }
 0x237   : > { %7549 = vmatprep.mubr.bf16.mxu1 %v3898_v14  ;;  %v4098_v14 = vshrl.u32 %v9852_v47, 16 }
 0x238   : > { %v4094_v51 = vrot.slane %v10808_v41, 4 }
 0x23d   : > { %7682 = vmatmul.mubr.bf16.gmra.mrb[84].mxu0 %v10770_v35  ;;  %v4100_v35 = vrot.slane %v4098_v14, 3 }
 0x23e   : > { %7550 = vmatmul.mubr.bf16.vlgmr.msra.gmra.mrb[0].mxu1 %v10771_v19  ;;  %7685 = vmatprep.mubr.bf16.mxu0 %v10772_v59  ;;  %v4103_v19 = vrot.slane %v4101_v21, 4  ;;  %v10810_v59 = vld [vmem:[#allocation66_spill] sm:$0xff] }
 0x23f   : > { %7598 = vmatpush3.bf16.msra.mxu1 %v9703_v49  ;;  %7553 = vmatprep.mubr.bf16.mxu1 %v10773_v26  ;;  %v10777_v49 = vld [vmem:[#allocation38_spill] sm:$0xff] }
 0x240   : > { %7599 = vmatprep.subr.bf16.mxu1 %v8271_v8  ;;  %v10811_v26 = vld [vmem:[#allocation78_spill] sm:$0xff] }
 0x243   : > { %7600 = vmatpush3.bf16.msra.mxu1 %v8271_v8  ;;  %v4095_v8 = vor.u32 %v4094_v51, %v4091_v28 }
 0x244   : > { %7601 = vmatprep.subr.bf16.mxu1 %v8272_v4 }
 0x245   : > { %7686 = vmatmul.mubr.bf16.gmra.mrb[88].mxu0 %v10774_v16  ;;  %v4494_v16 = vrot.slane %v9766_v54, 4  ;;  %v10812_v54 = vld [vmem:[#allocation64_spill] sm:$0xff] }
 0x246   : > { %7554 = vmatmul.mubr.bf16.gmra.mrb[4].mxu1 %v10775_v6  ;;  %7689 = vmatprep.mubr.bf16.mxu0 %v10776_v33  ;;  %v8291_v6 = vld [vmem:[#allocation2 + $0x20] sm:$0xff] }
 0x247   : > { %7557 = vmatprep.mubr.bf16.mxu1 %v10777_v49  ;;  %7602 = vmatpush3.bf16.msra.mxu1 %v8272_v4  ;;  %v4096_v4 = vsel %vm1339_vm2, %v10811_v26, %v4095_v8  ;;  %v4495_v33 = vrot.slane %v8291_v6, 4 }
 0x248   : > { %7603 = vmatprep.subr.bf16.mxu1 %v8273_v30 }
 0x24b   : > { %7604 = vmatpush3.bf16.msra.mxu1 %v8273_v30  ;;  %v4104_v30 = vor.u32 %v4103_v19, %v4100_v35 }
 0x24c   : > { %7605 = vmatprep.subr.bf16.mxu1 %v8274_v38 }
 0x24d   : > { %7690 = vmatmul.mubr.bf16.gmra.mrb[92].mxu0 %v10778_v0  ;;  %v4105_v49 = vsel %vm1339_vm2, %v4095_v8, %v4104_v30  ;;  %v8302_v8 = vld [vmem:[#allocation2 + $0x78] sm:$0xff] }
 0x24e   : > { %7558 = vmatmul.mubr.bf16.gmra.mrb[8].mxu1 %v10779_v40  ;;  %7693 = vmatprep.mubr.bf16.mxu0 %v10780_v48  ;;  %v8293_v40 = vld [vmem:[#allocation2 + $0x30] sm:$0xff]  ;;  %v4517_v35 = vrot.slane %v8302_v8, 4 }
 0x24f   : > { %7561 = vmatprep.mubr.bf16.mxu1 %v10781_v37  ;;  %7606 = vmatpush3.bf16.msra.mxu1 %v8274_v38  ;;  %v4496_v38 = vsel %vm992_vm0, %v4494_v16, %v4495_v33  ;;  %v4499_v48 = vrot.slane %v8293_v40, 4 }
 0x250   : > { %7607 = vmatprep.subr.bf16.mxu1 %v8275_v60 }
 0x253   : > { %7608 = vmatpush3.bf16.msra.mxu1 %v8275_v60  ;;  %v8292_v60 = vld [vmem:[#allocation2 + $0x28] sm:$0xff] }
 0x254   : > { %7609 = vmatprep.subr.bf16.mxu1 %v8276_v43  ;;  %v4497_v0 = vrot.slane %v8292_v60, 4  ;;  %v8305_v60 = vld [vmem:[#allocation2 + $0x90] sm:$0xff] }
 0x255   : > { %7694 = vmatmul.mubr.bf16.gmra.mrb[96].mxu0 %v10782_v53 }
 0x256   : > { %7562 = vmatmul.mubr.bf16.gmra.mrb[12].mxu1 %v10783_v34  ;;  %7697 = vmatprep.mubr.bf16.mxu0 %v10784_v62  ;;  %v4498_v37 = vsel %vm992_vm0, %v4495_v33, %v4497_v0  ;;  %v8295_v34 = vld [vmem:[#allocation2 + $0x40] sm:$0xff]  ;;  %v8304_v33 = vld [vmem:[#allocation2 + $0x88] sm:$0xff] }
 0x257   : > { %7565 = vmatprep.mubr.bf16.mxu1 %v10785_v56  ;;  %7610 = vmatpush3.bf16.msra.mxu1 %v8276_v43  ;;  %v4500_v43 = vsel %vm992_vm0, %v4497_v0, %v4499_v48  ;;  %v4503_v62 = vrot.slane %v8295_v34, 4  ;;  %v4523_v0 = vrot.slane %v8305_v60, 4 }
 0x258   : > { %7611 = vmatprep.subr.bf16.mxu1 %v8277_v3 }
 0x25b   : > { %7612 = vmatpush3.bf16.msra.mxu1 %v8277_v3  ;;  %v8294_v3 = vld [vmem:[#allocation2 + $0x38] sm:$0xff] }
 0x25c   : > { %7773 = vmatprep.subr.bf16.mxu1 %v8290_v18  ;;  %v4501_v53 = vrot.slane %v8294_v3, 4  ;;  %v8306_v3 = vld [vmem:[#allocation2 + $0x98] sm:$0xff] }
 0x25d   : > { %7698 = vmatmul.mubr.bf16.gmra.mrb[100].mxu0 %v10786_v15 }
 0x25e   : > { %7566 = vmatmul.mubr.bf16.gmra.mrb[16].mxu1 %v10787_v2  ;;  %7701 = vmatprep.mubr.bf16.mxu0 %v10788_v36  ;;  %v4502_v56 = vsel %vm992_vm0, %v4499_v48, %v4501_v53  ;;  %v4504_v15 = vsel %vm992_vm0, %v4501_v53, %v4503_v62  ;;  %v8296_v36 = vld [vmem:[#allocation2 + $0x48] sm:$0xff]  ;;  %v4525_v53 = vrot.slane %v8306_v3, 4  ;;  %v10826_v3 = vld [vmem:[#allocation74_spill] sm:$0xff] }
 0x25f   : > { %7569 = vmatprep.mubr.bf16.mxu1 %v10789_v10  ;;  %v4505_v10 = vrot.slane %v8296_v36, 4  ;;  %v8278_v36 = vld [vmem:[%s10427_s7] sm:$0xff]  }
 0x260   : > { %7725 = vmatprep.subr.bf16.mxu0 %v8278_v36 }
 0x261   : > { %7726 = vmatpush3.bf16.msra.mxu0 %v8278_v36 }
 0x265   : > { %7702 = vmatmul.mubr.bf16.gmra.mrb[104].mxu0 %v10790_v44 }
 0x266   : > { %7570 = vmatmul.mubr.bf16.gmra.mrb[20].mxu1 %v10791_v31  ;;  %7705 = vmatprep.mubr.bf16.mxu0 %v10792_v5  ;;  %v8297_v31 = vld [vmem:[#allocation2 + $0x50] sm:$0xff] }
 0x267   : > { %7573 = vmatprep.mubr.bf16.mxu1 %v10793_v61  ;;  %v4507_v5 = vrot.slane %v8297_v31, 4  ;;  %v4526_v31 = vsel %vm992_vm0, %v4523_v0, %v4525_v53 }
 0x26d   : > { %7706 = vmatmul.mubr.bf16.gmra.mrb[108].mxu0 %v10794_v12  ;;  %v4508_v12 = vsel %vm992_vm0, %v4505_v10, %v4507_v5 }
 0x26e   : > { %7574 = vmatmul.mubr.bf16.gmra.mrb[24].mxu1 %v10795_v9  ;;  %7709 = vmatprep.mubr.bf16.mxu0 %v10796_v25 }
 0x26f   : > { %7577 = vmatprep.mubr.bf16.mxu1 %v10797_v39  ;;  %v8298_v39 = vld [vmem:[#allocation2 + $0x58] sm:$0xff] }
 0x275   : > { %7710 = vmatmul.mubr.bf16.gmra.mrb[112].mxu0 %v10798_v46  ;;  %v4509_v46 = vrot.slane %v8298_v39, 4  ;;  %v8308_v39 = vld [vmem:[#allocation2 + $0xa8] sm:$0xff] }
 0x276   : > { %7578 = vmatmul.mubr.bf16.gmra.mrb[28].mxu1 %v10799_v20  ;;  %7713 = vmatprep.mubr.bf16.mxu0 %v10800_v50 }
 0x277   : > { %7581 = vmatprep.mubr.bf16.mxu1 %v10801_v52 }
 0x27d   : > { %7714 = vmatmul.mubr.bf16.gmra.mrb[116].mxu0 %v10802_v11 }
 0x27e   : > { %7582 = vmatmul.mubr.bf16.gmra.mrb[32].mxu1 %v10803_v7 }
 0x27f   : > { %7585 = vmatprep.mubr.bf16.mxu1 %v10804_v58 }
 0x286   : > { %7586 = vmatmul.mubr.bf16.gmra.mrb[36].mxu1 %v10805_v55  ;;  %v8300_v55 = vld [vmem:[#allocation2 + $0x68] sm:$0xff] }
 0x287   : > { %7589 = vmatprep.mubr.bf16.mxu1 %v10809_v45  ;;  %v4513_v17 = vrot.slane %v8300_v55, 4 }
 0x28e   : > { %7590 = vmatmul.mubr.bf16.gmra.mrb[40].mxu1 %v10810_v59  ;;  %v8303_v59 = vld [vmem:[#allocation2 + $0x80] sm:$0xff] }
 0x28f   : > { %7593 = vmatprep.mubr.bf16.mxu1 %v4096_v4  ;;  %v4519_v26 = vrot.slane %v8303_v59, 4 }
 0x291   : > { %v4520_v30 = vsel %vm992_vm0, %v4517_v35, %v4519_v26 }
 0x296   : > { %7594 = vmatmul.mubr.bf16.gmra.mrb[44].mxu1 %v4105_v49  ;;  %v4521_v49 = vrot.slane %v8304_v33, 4 }
 0x297   : > { %7613 = vmatprep.mubr.bf16.mxu1 %v4496_v38 }
 0x298   : > { %v4522_v48 = vsel %vm992_vm0, %v4519_v26, %v4521_v49  ;;  %v10819_v26 = vld [vmem:[#allocation16_spill] sm:$0xff] }
 0x29e   : > { %7614 = vmatmul.mubr.bf16.vlgmr.msra.gmra.mrb[0].mxu1 %v4498_v37  ;;  %v4524_v37 = vsel %vm992_vm0, %v4521_v49, %v4523_v0  ;;  %v4539_v0 = vrot.slane %v10806_v32, 4 }
 0x29f   : > { %7781 = vmatpush3.bf16.msra.mxu1 %v8290_v18  ;;  %7617 = vmatprep.mubr.bf16.mxu1 %v4500_v43 }
 0x2a0   : > { %7774 = vmatprep.subr.bf16.mxu1 %v10812_v54 }
 0x2a3   : > { %7782 = vmatpush3.bf16.msra.mxu1 %v10812_v54 }
 0x2a4   : > { %7775 = vmatprep.subr.bf16.mxu1 %v9561_v13 }
 0x2a6   : > { %7618 = vmatmul.mubr.bf16.gmra.mrb[4].mxu1 %v4502_v56 }
 0x2a7   : > { %7621 = vmatprep.mubr.bf16.mxu1 %v4504_v15  ;;  %7783 = vmatpush3.bf16.msra.mxu1 %v9561_v13  ;;  %v4506_v13 = vsel %vm992_vm0, %v4503_v62, %v4505_v10  ;;  %v8307_v62 = vld [vmem:[#allocation2 + $0xa0] sm:$0xff]  ;;  %v8279_v10 = vld [vmem:[%s10427_s7 + $0x8] sm:$0xff]  }
 0x2a8   : > { %v9876_v18 = vpop.f32.mrb[32].mxu0  ;;  %7776 = vmatprep.subr.bf16.mxu1 %v9597_v27  ;;  %v4527_v56 = vrot.slane %v8307_v62, 4  ;;  %7727 = vmatprep.subr.bf16.mxu0 %v8279_v10 }
 0x2a9   : > { %v9879_v2 = vpop.f32.mrb[33].mxu0  ;;  %7728 = vmatpush3.bf16.msra.mxu0 %v8279_v10 }
 0x2aa   : > { %v9881_v44 = vpop.f32.mrb[34].mxu0 }
 0x2ab   : > { %v9883_v61 = vpop.f32.mrb[35].mxu0  ;;  %7784 = vmatpush3.bf16.msra.mxu1 %v9597_v27  ;;  %v8299_v27 = vld [vmem:[#allocation2 + $0x60] sm:$0xff] }
 0x2ac   : > { %7777 = vmatprep.subr.bf16.mxu1 %v9624_v42  ;;  %v4511_v50 = vrot.slane %v8299_v27, 4 }
 0x2ae   : > { %7622 = vmatmul.mubr.bf16.gmra.mrb[8].mxu1 %v4506_v13  ;;  %v4512_v11 = vsel %vm992_vm0, %v4509_v46, %v4511_v50  ;;  %v4514_v45 = vsel %vm992_vm0, %v4511_v50, %v4513_v17  ;;  %v8309_v50 = vld [vmem:[#allocation2 + $0xb0] sm:$0xff] }
 0x2af   : > { %7625 = vmatprep.mubr.bf16.mxu1 %v4508_v12  ;;  %7785 = vmatpush3.bf16.msra.mxu1 %v9624_v42  ;;  %v4510_v42 = vsel %vm992_vm0, %v4507_v5, %v4509_v46  ;;  %v4528_v5 = vsel %vm992_vm0, %v4525_v53, %v4527_v56  ;;  %v4529_v46 = vrot.slane %v8308_v39, 4  ;;  %v10827_v53 = vrot.slane %v10826_v3, 4  ;;  %v4888_v39 = vld [vmem:[#allocation2 + $0xd8] sm:$0x1f] }
 0x2b0   : > { %v9890_v9 = vpop.f32.mrb[36].mxu0  ;;  %7778 = vmatprep.subr.bf16.mxu1 %v9643_v22 }
 0x2b1   : > { %v9893_v25 = vpop.f32.mrb[37].mxu0  ;;  %v4530_v55 = vsel %vm992_vm0, %v4527_v56, %v4529_v46  ;;  %v4540_v62 = vsel %vm992_vm0, %v10827_v53, %v4539_v0  ;;  %v4541_v56 = vrot.slane %v9852_v47, 4 }
 0x2b2   : > { %v9895_v20 = vpop.f32.mrb[38].mxu0 }
 0x2b3   : > { %v9897_v52 = vpop.f32.mrb[39].mxu0  ;;  %7786 = vmatpush3.bf16.msra.mxu1 %v9643_v22  ;;  %v8301_v22 = vld [vmem:[#allocation2 + $0x70] sm:$0xff] }
 0x2b4   : > { %7779 = vmatprep.subr.bf16.mxu1 %v9655_v29  ;;  %v4515_v41 = vrot.slane %v8301_v22, 4 }
 0x2b6   : > { %7626 = vmatmul.mubr.bf16.gmra.mrb[12].mxu1 %v4510_v42  ;;  %v4531_v42 = vrot.slane %v8309_v50, 4  ;;  %v5010_v50 = vshll.u32 %v4888_v39, 16 }
 0x2b7   : > { %7629 = vmatprep.mubr.bf16.mxu1 %v4512_v11  ;;  %7787 = vmatpush3.bf16.msra.mxu1 %v9655_v29  ;;  %v4516_v29 = vsel %vm992_vm0, %v4513_v17, %v4515_v41 }
 0x2b8   : > { %v9904_v7 = vpop.f32.mrb[40].mxu0  ;;  %7780 = vmatprep.subr.bf16.mxu1 %v9675_v24  ;;  %v4532_v17 = vsel %vm992_vm0, %v4529_v46, %v4531_v42  ;;  %v5007_v46 = vshrl.u32 %v4888_v39, 16 }
 0x2b9   : > { %v9907_v58 = vpop.f32.mrb[41].mxu0 }
 0x2ba   : > { %v9909_v28 = vpop.f32.mrb[42].mxu0 }
 0x2bb   : > { %v9911_v51 = vpop.f32.mrb[43].mxu0  ;;  %7788 = vmatpush3.bf16.msra.mxu1 %v9675_v24  ;;  %v4518_v24 = vsel %vm992_vm0, %v4515_v41, %v4517_v35 }
 0x2be   : > { %7630 = vmatmul.mubr.bf16.gmra.mrb[16].mxu1 %v4514_v45  ;;  %v8310_v45 = vld [vmem:[#allocation2 + $0xb8] sm:$0xff] }
 0x2bf   : > { %7633 = vmatprep.mubr.bf16.mxu1 %v4516_v29  ;;  %v4533_v29 = vrot.slane %v8310_v45, 4  ;;  %v5009_v45 = vrot.slane %v5007_v46, 4 }
 0x2c0   : > { %v9916_v14 = vpop.f32.mrb[44].mxu0 }
 0x2c1   : > { %v9918_v21 = vpop.f32.mrb[45].mxu0  ;;  %v4534_v59 = vsel %vm992_vm0, %v4531_v42, %v4533_v29 }
 0x2c2   : > { %v9920_v19 = vpop.f32.mrb[46].mxu0 }
 0x2c3   : > { %v9922_v4 = vpop.f32.mrb[47].mxu0 }
 0x2c6   : > { %7634 = vmatmul.mubr.bf16.gmra.mrb[20].mxu1 %v4518_v24  ;;  %v10820_v24 = vrot.slane %v10819_v26, 4 }
 0x2c7   : > { %7637 = vmatprep.mubr.bf16.mxu1 %v4520_v30 }
 0x2c8   : > { %v9926_v16 = vpop.f32.mrb[48].mxu0  ;;  %v4536_v30 = vsel %vm992_vm0, %v4533_v29, %v10820_v24  ;;  %v5012_v29 = vrot.slane %v5010_v50, 5  ;;  %v8281_v24 = vld [vmem:[%s10427_s7 + $0x18] sm:$0xff]  }
 0x2c9   : > { %v9928_v6 = vpop.f32.mrb[49].mxu0 }
 0x2ca   : > { %v9930_v38 = vpop.f32.mrb[50].mxu0 }
 0x2cb   : > { %v9932_v40 = vpop.f32.mrb[51].mxu0 }
 0x2ce   : > { %7638 = vmatmul.mubr.bf16.gmra.mrb[24].mxu1 %v4522_v48 }
 0x2cf   : > { %7641 = vmatprep.mubr.bf16.mxu1 %v4524_v37  ;;  %v10825_v37 = vld [vmem:[#allocation11_spill] sm:$0xff] }
 0x2d0   : > { %v9936_v43 = vpop.f32.mrb[52].mxu0 }
 0x2d1   : > { %v9938_v54 = vpop.f32.mrb[53].mxu0 }
 0x2d2   : > { %v9940_v34 = vpop.f32.mrb[54].mxu0 }
 0x2d3   : > { %v9942_v15 = vpop.f32.mrb[55].mxu0 }
 0x2d6   : > { %7642 = vmatmul.mubr.bf16.gmra.mrb[28].mxu1 %v4526_v31 }
 0x2d7   : > { %7645 = vmatprep.mubr.bf16.mxu1 %v4528_v5  ;;  %v4542_v5 = vsel %vm992_vm0, %v4539_v0, %v4541_v56  ;;  %v8282_v56 = vld [vmem:[%s10427_s7 + $0x20] sm:$0xff]  }
 0x2d8   : > { %v9952_v13 = vpop.f32.mrb[56].mxu0 }
 0x2d9   : > { %v9954_v12 = vpop.f32.mrb[57].mxu0 }
 0x2da   : > { %v9956_v27 = vpop.f32.mrb[58].mxu0 }
 0x2db   : > { %10813 = vst [vmem:[#allocation5_spill] sm:$0xff] %v9956_v27  ;;  %v9958_v11 = vpop.f32.mrb[59].mxu0 }
 0x2dc   : > { %10814 = vst [vmem:[#allocation6_spill] sm:$0xff] %v9958_v11 }
 0x2de   : > { %7646 = vmatmul.mubr.bf16.gmra.mrb[32].mxu1 %v4530_v55 }
 0x2df   : > { %7649 = vmatprep.mubr.bf16.mxu1 %v4532_v17 }
 0x2e0   : > { %v9962_v22 = vpop.f32.mrb[60].mxu0 }
 0x2e1   : > { %10815 = vst [vmem:[#allocation65_spill] sm:$0xff] %v9962_v22  ;;  %v9964_v41 = vpop.f32.mrb[61].mxu0 }
 0x2e2   : > { %10816 = vst [vmem:[#allocation59_spill] sm:$0xff] %v9964_v41  ;;  %v9966_v8 = vpop.f32.mrb[62].mxu0 }
 0x2e3   : > { %10817 = vst [vmem:[#allocation3_spill] sm:$0xff] %v9966_v8  ;;  %v9968_v35 = vpop.f32.mrb[63].mxu0 }
 0x2e4   : > { %10818 = vst [vmem:[#allocation7_spill] sm:$0xff] %v9968_v35 }
 0x2e6   : > { %7650 = vmatmul.mubr.bf16.gmra.mrb[36].mxu1 %v4534_v59  ;;  %v5013_v59 = vor.u32 %v5012_v29, %v5009_v45  ;;  %v8285_v29 = vld [vmem:[%s10427_s7 + $0x38] sm:$0xff]  }
 0x2e7   : > { %7653 = vmatprep.mubr.bf16.mxu1 %v4536_v30 }
 0x2e8   : > { %v9974_v33 = vpop.f32.mrb[64].mxu0 }
 0x2e9   : > { %10821 = vst [vmem:[#allocation8_spill] sm:$0xff] %v9974_v33  ;;  %v9976_v49 = vpop.f32.mrb[65].mxu0 }
 0x2ea   : > { %10822 = vst [vmem:[#allocation4_spill] sm:$0xff] %v9976_v49  ;;  %v9978_v60 = vpop.f32.mrb[66].mxu0 }
 0x2eb   : > { %10823 = vst [vmem:[#allocation9_spill] sm:$0xff] %v9978_v60  ;;  %v9981_v48 = vpop.f32.mrb[67].mxu0 }
 0x2ec   : > { %10824 = vst [vmem:[#allocation68_spill] sm:$0xff] %v9981_v48 }
 0x2ee   : > { %7654 = vmatmul.mubr.bf16.gmra.mrb[40].mxu1 %v10825_v37 }
 0x2ef   : > { %7657 = vmatprep.mubr.bf16.mxu1 %v4540_v62 }
 0x2f0   : > { %v9988_v36 = vpop.f32.mrb[68].mxu0 }
 0x2f1   : > { %10828 = vst [vmem:[#allocation62_spill] sm:$0xff] %v9988_v36  ;;  %v9990_v10 = vpop.f32.mrb[69].mxu0 }
 0x2f2   : > { %10829 = vst [vmem:[#allocation18_spill] sm:$0xff] %v9990_v10  ;;  %v9992_v31 = vpop.f32.mrb[70].mxu0 }
 0x2f3   : > { %10830 = vst [vmem:[#allocation69_spill] sm:$0xff] %v9992_v31  ;;  %v9995_v32 = vpop.f32.mrb[71].mxu0 }
 0x2f4   : > { %10831 = vst [vmem:[#allocation70_spill] sm:$0xff] %v9995_v32 }
 0x2f6   : > { %7658 = vmatmul.mubr.bf16.gmra.mrb[44].mxu1 %v4542_v5  ;;  %v8284_v5 = vld [vmem:[%s10427_s7 + $0x30] sm:$0xff]  }
 0x2f7   : > { %7717 = vmatprep.mubr.bf16.mxu1 %v9605_v63  ;;  %v8280_v63 = vld [vmem:[%s10427_s7 + $0x10] sm:$0xff]  }
 0x2f8   : > { %v9998_v42 = vpop.f32.mrb[72].mxu0  ;;  %7729 = vmatprep.subr.bf16.mxu0 %v8280_v63 }
 0x2f9   : > { %10832 = vst [vmem:[#allocation12_spill] sm:$0xff] %v9998_v42  ;;  %v10000_v55 = vpop.f32.mrb[73].mxu0  ;;  %7730 = vmatpush3.bf16.msra.mxu0 %v8280_v63 }
 0x2fa   : > { %10833 = vst [vmem:[#allocation13_spill] sm:$0xff] %v10000_v55  ;;  %v10002_v47 = vpop.f32.mrb[74].mxu0  ;;  %7731 = vmatprep.subr.bf16.mxu0 %v8281_v24 }
 0x2fb   : > { %10834 = vst [vmem:[#allocation14_spill] sm:$0xff] %v10002_v47  ;;  %v10004_v17 = vpop.f32.mrb[75].mxu0 }
 0x2fc   : > { %10835 = vst [vmem:[#allocation15_spill] sm:$0xff] %v10004_v17 }
 0x2fd   : > { %7732 = vmatpush3.bf16.msra.mxu0 %v8281_v24 }
 0x2fe   : > { %7718 = vmatmul.mubr.bf16.vlgmr.msra.gmra.mrb[40].mxu1 %v9609_v23  ;;  %v5014_v23 = vsel %vm1879_vm3, %v9599_v1, %v5013_v59  ;;  %v8283_v1 = vld [vmem:[%s10427_s7 + $0x28] sm:$0xff]   ;;  %7733 = vmatprep.subr.bf16.mxu0 %v8282_v56 }
 0x2ff   : > { %7721 = vmatprep.mubr.bf16.mxu1 %v9613_v57 }
 0x300   : > { %v10008_v26 = vpop.f32.mrb[76].mxu0 }
 0x301   : > { %10836 = vst [vmem:[#allocation72_spill] sm:$0xff] %v10008_v26  ;;  %v10016_v30 = vpop.f32.mrb[77].mxu0  ;;  %7734 = vmatpush3.bf16.msra.mxu0 %v8282_v56 }
 0x302   : > { %10837 = vst [vmem:[#allocation20_spill] sm:$0xff] %v10016_v30  ;;  %v10018_v0 = vpop.f32.mrb[78].mxu0  ;;  %7735 = vmatprep.subr.bf16.mxu0 %v8283_v1 }
 0x303   : > { %10838 = vst [vmem:[#allocation71_spill] sm:$0xff] %v10018_v0  ;;  %v10022_v57 = vpop.f32.mrb[79].mxu0 }
 0x304   : > { %10839 = vst [vmem:[#allocation73_spill] sm:$0xff] %v10022_v57 }
 0x305   : > { %7736 = vmatpush3.bf16.msra.mxu0 %v8283_v1 }
 0x306   : > { %7722 = vmatmul.mubr.bf16.gmra.mrb[44].mxu1 %v5014_v23  ;;  %7737 = vmatprep.subr.bf16.mxu0 %v8284_v5 }
 0x308   : > { %v7679_v37 = vpop.f32.mrb[80].mxu0 }
 0x309   : > { %v5121_v3 = vpop.f32.mrb[81].mxu0  ;;  %7738 = vmatpush3.bf16.msra.mxu0 %v8284_v5 }
 0x30a   : > { %v10024_v53 = vpop.f32.mrb[82].mxu0  ;;  %7739 = vmatprep.subr.bf16.mxu0 %v8285_v29 }
 0x30b   : > { %v10026_v62 = vpop.f32.mrb[83].mxu0 }
 0x30d   : > { %7740 = vmatpush3.bf16.msra.mxu0 %v8285_v29 }
 0x310   : > { %v10037_v39 = vpop.f32.mrb[84].mxu0 }
 0x311   : > { %v10039_v46 = vpop.f32.mrb[85].mxu0 }
 0x312   : > { %v10041_v50 = vpop.f32.mrb[86].mxu0 }
 0x313   : > { %v10043_v45 = vpop.f32.mrb[87].mxu0 }
 0x318   : > { %v10048_v59 = vpop.f32.mrb[88].mxu0 }
 0x319   : > { %v10050_v63 = vpop.f32.mrb[89].mxu0 }
 0x31a   : > { %v10052_v24 = vpop.f32.mrb[90].mxu0 }
 0x31b   : > { %v10054_v23 = vpop.f32.mrb[91].mxu0 }
 0x320   : > { %v10056_v56 = vpop.f32.mrb[92].mxu0 }
 0x321   : > { %v10058_v1 = vpop.f32.mrb[93].mxu0 }
 0x322   : > { %v10060_v57 = vpop.f32.mrb[94].mxu0 }
 0x323   : > { %v10062_v0 = vpop.f32.mrb[95].mxu0 }
 0x328   : > { %v10064_v30 = vpop.f32.mrb[96].mxu0 }
 0x329   : > { %v10066_v5 = vpop.f32.mrb[97].mxu0 }
 0x32a   : > { %v10068_v26 = vpop.f32.mrb[98].mxu0 }
 0x32b   : > { %v10070_v17 = vpop.f32.mrb[99].mxu0 }
 0x330   : > { %v10072_v47 = vpop.f32.mrb[100].mxu0 }
 0x331   : > { %v10074_v29 = vpop.f32.mrb[101].mxu0 }
 0x332   : > { %v10076_v55 = vpop.f32.mrb[102].mxu0 }
 0x333   : > { %v10078_v42 = vpop.f32.mrb[103].mxu0 }
 0x338   : > { %v10080_v32 = vpop.f32.mrb[104].mxu0 }
 0x339   : > { %v10082_v31 = vpop.f32.mrb[105].mxu0 }
 0x33a   : > { %10840 = vst [vmem:[#allocation17_spill] sm:$0xff] %v10082_v31  ;;  %v10084_v10 = vpop.f32.mrb[106].mxu0 }
 0x33b   : > { %10841 = vst [vmem:[#allocation19_spill] sm:$0xff] %v10084_v10  ;;  %v10086_v36 = vpop.f32.mrb[107].mxu0 }
 0x33c   : > { %10842 = vst [vmem:[#allocation21_spill] sm:$0xff] %v10086_v36 }
 0x340   : > { %v10088_v48 = vpop.f32.mrb[108].mxu0 }
 0x341   : > { %10843 = vst [vmem:[#allocation23_spill] sm:$0xff] %v10088_v48  ;;  %v10090_v60 = vpop.f32.mrb[109].mxu0 }
 0x342   : > { %10844 = vst [vmem:[#allocation22_spill] sm:$0xff] %v10090_v60  ;;  %v10092_v49 = vpop.f32.mrb[110].mxu0 }
 0x343   : > { %10845 = vst [vmem:[#allocation25_spill] sm:$0xff] %v10092_v49  ;;  %v10094_v33 = vpop.f32.mrb[111].mxu0 }
 0x344   : > { %10846 = vst [vmem:[#allocation27_spill] sm:$0xff] %v10094_v33 }
 0x348   : > { %v10096_v35 = vpop.f32.mrb[112].mxu0 }
 0x349   : > { %10847 = vst [vmem:[#allocation29_spill] sm:$0xff] %v10096_v35  ;;  %v10098_v8 = vpop.f32.mrb[113].mxu0 }
 0x34a   : > { %10848 = vst [vmem:[#allocation28_spill] sm:$0xff] %v10098_v8  ;;  %v10100_v41 = vpop.f32.mrb[114].mxu0  ;;  %v10116_v8 = vld [vmem:[%s10425_s5] ss:$0 sm:$0xff] }
 0x34b   : > { %10849 = vst [vmem:[#allocation30_spill] sm:$0xff] %v10100_v41  ;;  %v10102_v22 = vpop.f32.mrb[115].mxu0 }
 0x34c   : > { %10850 = vst [vmem:[#allocation32_spill] sm:$0xff] %v10102_v22 }
 0x350   : > { %v10104_v11 = vpop.f32.mrb[116].mxu0 }
 0x351   : > { %10851 = vst [vmem:[#allocation35_spill] sm:$0xff] %v10104_v11  ;;  %v10106_v10 = vpop.f32.mrb[117].mxu0 }
 0x352   : > { %10852 = vst [vmem:[#allocation33_spill] sm:$0xff] %v10106_v10  ;;  %v10108_v36 = vpop.f32.mrb[118].mxu0 }
 0x353   : > { %10853 = vst [vmem:[#allocation36_spill] sm:$0xff] %v10108_v36  ;;  %v10110_v48 = vpop.f32.mrb[119].mxu0 }
 0x354   : > { %10854 = vst [vmem:[#allocation39_spill] sm:$0xff] %v10110_v48  ;;  %v10123_v48 = vld [vmem:[%s10426_s6] ss:$0 sm:$0xff] }
 0x371   : > { %v7615_v60 = vpop.f32.mrb[0].mxu1 }
 0x372   : > { %v7789_v49 = vadd.f32 %v7615_v60, %v9876_v18  ;;  %v4649_v33 = vpop.f32.mrb[1].mxu1 }
 0x373   : > { %v7791_v41 = vadd.f32 %v4649_v33, %v9879_v2  ;;  %v7616_v22 = vpop.f32.mrb[2].mxu1 }
 0x374   : > { %v7790_v35 = vadd.f32 %v7789_v49, %v7679_v37  ;;  %v7793_v11 = vadd.f32 %v7616_v22, %v9881_v44  ;;  %v4652_v10 = vpop.f32.mrb[3].mxu1 }
 0x375   : > { %v7792_v36 = vadd.f32 %v7791_v41, %v5121_v3  ;;  %v7795_v18 = vadd.f32 %v4652_v10, %v9883_v61 }
 0x376   : > { %v5369_v60 = vmul.f32 %v7790_v35, %v10116_v8  ;;  %v7794_v31 = vadd.f32 %v7793_v11, %v10024_v53 }
 0x377   : > { %v5367_v27 = vmul.f32 %v7792_v36, %v10116_v8  ;;  %v7796_v2 = vadd.f32 %v7795_v18, %v10026_v62 }
 0x378   : > { %v5424_v33 = vadd.f32 %v10123_v48, %v5369_v60  ;;  %v5370_v44 = vmul.f32 %v7794_v31, %v10116_v8 }
 0x379   : > { %v5368_v22 = vmul.f32 %v7796_v2, %v10116_v8  ;;  %v7619_v49 = vpop.f32.mrb[4].mxu1  ;;  %v5422_v37 = vadd.f32 %v10123_v48, %v5367_v27 }
 0x37a   : > { %v5425_v41 = vadd.f32 %v10123_v48, %v5370_v44  ;;  %v7797_v61 = vadd.f32 %v7619_v49, %v9890_v9  ;;  %v4665_v35 = vpop.f32.mrb[5].mxu1  ;;  %v5472_v3 = vmax.f32 %v5424_v33, 0.0 }
 0x37b   : > { %v7799_v11 = vadd.f32 %v4665_v35, %v9893_v25  ;;  %v7620_v10 = vpop.f32.mrb[6].mxu1  ;;  %v5423_v36 = vadd.f32 %v10123_v48, %v5368_v22  ;;  %v5470_v2 = vmax.f32 %v5422_v37, 0.0 }
 0x37c   : > { %v5473_v53 = vmax.f32 %v5425_v41, 0.0  ;;  %v7798_v62 = vadd.f32 %v7797_v61, %v10037_v39  ;;  %v7801_v31 = vadd.f32 %v7620_v10, %v9895_v20  ;;  %v4668_v18 = vpop.f32.mrb[7].mxu1 }
 0x37d   : > { %v7800_v60 = vadd.f32 %v7799_v11, %v10039_v46  ;;  %v7803_v27 = vadd.f32 %v4668_v18, %v9897_v52  ;;  %v5471_v44 = vmax.f32 %v5423_v36, 0.0 }
 0x37e   : > { %v5519_v9 = vpack.c.bf16 %v5473_v53, %v5472_v3  ;;  %v5373_v49 = vmul.f32 %v7798_v62, %v10116_v8  ;;  %v7802_v25 = vadd.f32 %v7801_v31, %v10041_v50 }
 0x37f   : > { %v5371_v22 = vmul.f32 %v7800_v60, %v10116_v8  ;;  %v7804_v33 = vadd.f32 %v7803_v27, %v10043_v45  ;;  %v5518_v41 = vpack.c.bf16 %v5471_v44, %v5470_v2 }
 0x380   : > { %v5374_v39 = vmul.f32 %v7802_v25, %v10116_v8  ;;  %v5428_v20 = vadd.f32 %v10123_v48, %v5373_v49 }
 0x381   : > { %v5426_v46 = vadd.f32 %v10123_v48, %v5371_v22  ;;  %v5372_v52 = vmul.f32 %v7804_v33, %v10116_v8  ;;  %v7623_v37 = vpop.f32.mrb[8].mxu1  ;;  %7741 = vmatprep.mubr.bf16.mxu0 %v5518_v41  ;;  %v5568_v33 = vunpack.c.h.b16 %v5519_v9 }
 0x382   : > { %v7805_v61 = vadd.f32 %v7623_v37, %v9904_v7  ;;  %v4681_v35 = vpop.f32.mrb[9].mxu1  ;;  %v5429_v50 = vadd.f32 %v10123_v48, %v5374_v39  ;;  %v5476_v62 = vmax.f32 %v5428_v20, 0.0 }
 0x383   : > { %v5427_v11 = vadd.f32 %v10123_v48, %v5372_v52  ;;  %v7807_v45 = vadd.f32 %v4681_v35, %v9907_v58  ;;  %v7624_v10 = vpop.f32.mrb[10].mxu1  ;;  %v5474_v18 = vmax.f32 %v5426_v46, 0.0 }
 0x384   : > { %v7806_v36 = vadd.f32 %v7805_v61, %v10048_v59  ;;  %v7809_v3 = vadd.f32 %v7624_v10, %v9909_v28  ;;  %v4684_v53 = vpop.f32.mrb[11].mxu1  ;;  %v5477_v31 = vmax.f32 %v5429_v50, 0.0 }
 0x385   : > { %v5475_v60 = vmax.f32 %v5427_v11, 0.0  ;;  %v7808_v27 = vadd.f32 %v7807_v45, %v10050_v63  ;;  %v7811_v7 = vadd.f32 %v4684_v53, %v9911_v51 }
 0x386   : > { %v5377_v2 = vmul.f32 %v7806_v36, %v10116_v8  ;;  %v7810_v44 = vadd.f32 %v7809_v3, %v10052_v24  ;;  %v5521_v49 = vpack.c.bf16 %v5477_v31, %v5476_v62 }
 0x387   : > { %v5520_v58 = vpack.c.bf16 %v5475_v60, %v5474_v18  ;;  %v5375_v25 = vmul.f32 %v7808_v27, %v10116_v8  ;;  %v7812_v59 = vadd.f32 %v7811_v7, %v10054_v23 }
 0x388   : > { %v5432_v28 = vadd.f32 %v10123_v48, %v5377_v2  ;;  %v5378_v22 = vmul.f32 %v7810_v44, %v10116_v8 }
 0x389   : > { %v5569_v41 = vunpack.c.l.b16 %v5520_v58  ;;  %v5430_v63 = vadd.f32 %v10123_v48, %v5375_v25  ;;  %v5376_v51 = vmul.f32 %v7812_v59, %v10116_v8  ;;  %v7627_v39 = vpop.f32.mrb[12].mxu1 }
 0x38a   : > { %v5433_v20 = vadd.f32 %v10123_v48, %v5378_v22  ;;  %v7813_v24 = vadd.f32 %v7627_v39, %v9916_v14  ;;  %v4697_v46 = vpop.f32.mrb[13].mxu1  ;;  %v5480_v35 = vmax.f32 %v5432_v28, 0.0 }
 0x38b   : > { %v5615_v52 = vpack.c.b16 %v5569_v41, %v5568_v33  ;;  %v5431_v37 = vadd.f32 %v10123_v48, %v5376_v51  ;;  %v7815_v23 = vadd.f32 %v4697_v46, %v9918_v21  ;;  %v7628_v61 = vpop.f32.mrb[14].mxu1  ;;  %v5478_v10 = vmax.f32 %v5430_v63, 0.0 }
 0x38c   : > { %v5481_v50 = vmax.f32 %v5433_v20, 0.0  ;;  %v7814_v9 = vadd.f32 %v7813_v24, %v10056_v56  ;;  %v7817_v11 = vadd.f32 %v7628_v61, %v9920_v19  ;;  %v4700_v45 = vpop.f32.mrb[15].mxu1 }
 0x38d   : > { %v5479_v36 = vmax.f32 %v5431_v37, 0.0  ;;  %v7816_v3 = vadd.f32 %v7815_v23, %v10058_v1  ;;  %v7819_v14 = vadd.f32 %v4700_v45, %v9922_v4  ;;  %7742 = vmatmul.mubr.bf16.vlgmr.msra.gmra.mrb[120].mxu0 %v5615_v52 }
 0x38e   : > { %v5381_v53 = vmul.f32 %v7814_v9, %v10116_v8  ;;  %v7818_v62 = vadd.f32 %v7817_v11, %v10060_v57  ;;  %7745 = vmatprep.mubr.bf16.mxu0 %v5521_v49  ;;  %v5523_v21 = vpack.c.bf16 %v5481_v50, %v5480_v35 }
 0x38f   : > { %v5379_v31 = vmul.f32 %v7816_v3, %v10116_v8  ;;  %v7820_v56 = vadd.f32 %v7819_v14, %v10062_v0  ;;  %v5522_v18 = vpack.c.bf16 %v5479_v36, %v5478_v10 }
 0x390   : > { %v5436_v19 = vadd.f32 %v10123_v48, %v5381_v53  ;;  %v5382_v60 = vmul.f32 %v7818_v62, %v10116_v8  ;;  %v5573_v27 = vunpack.c.l.b16 %v5523_v21 }
 0x391   : > { %v5380_v1 = vmul.f32 %v7820_v56, %v10116_v8  ;;  %v7631_v4 = vpop.f32.mrb[16].mxu1  ;;  %v5572_v7 = vunpack.c.h.b16 %v5522_v18  ;;  %v5434_v2 = vadd.f32 %v10123_v48, %v5379_v31 }
 0x392   : > { %v5437_v57 = vadd.f32 %v10123_v48, %v5382_v60  ;;  %v7821_v44 = vadd.f32 %v7631_v4, %v9926_v16  ;;  %v4713_v49 = vpop.f32.mrb[17].mxu1  ;;  %v5484_v28 = vmax.f32 %v5436_v19, 0.0 }
 0x393   : > { %v7823_v58 = vadd.f32 %v4713_v49, %v9928_v6  ;;  %v7632_v0 = vpop.f32.mrb[18].mxu1  ;;  %v5617_v25 = vpack.c.b16 %v5573_v27, %v5572_v7  ;;  %v5435_v59 = vadd.f32 %v10123_v48, %v5380_v1  ;;  %v5482_v16 = vmax.f32 %v5434_v2, 0.0 }
 0x394   : > { %v5485_v22 = vmax.f32 %v5437_v57, 0.0  ;;  %v7822_v33 = vadd.f32 %v7821_v44, %v10064_v30  ;;  %v7825_v41 = vadd.f32 %v7632_v0, %v9930_v38  ;;  %v4716_v63 = vpop.f32.mrb[19].mxu1 }
 0x395   : > { %v7824_v51 = vadd.f32 %v7823_v58, %v10066_v5  ;;  %v7827_v39 = vadd.f32 %v4716_v63, %v9932_v40  ;;  %7746 = vmatmul.mubr.bf16.gmra.mrb[124].mxu0 %v5617_v25  ;;  %v5483_v20 = vmax.f32 %v5435_v59, 0.0  ;;  %v10855_v59 = vld [vmem:[#allocation5_spill] sm:$0xff] }
 0x396   : > { %v5385_v6 = vmul.f32 %v7822_v33, %v10116_v8  ;;  %v7826_v24 = vadd.f32 %v7825_v41, %v10068_v26  ;;  %v5525_v46 = vpack.c.bf16 %v5485_v22, %v5484_v28  ;;  %v10856_v63 = vld [vmem:[#allocation17_spill] sm:$0xff] }
 0x397   : > { %v5383_v52 = vmul.f32 %v7824_v51, %v10116_v8  ;;  %v7828_v37 = vadd.f32 %v7827_v39, %v10070_v17  ;;  %v5524_v30 = vpack.c.bf16 %v5483_v20, %v5482_v16  ;;  %v10857_v39 = vld [vmem:[#allocation6_spill] sm:$0xff]  ;;  %v10858_v20 = vld [vmem:[#allocation19_spill] sm:$0xff] }
 0x398   : > { %v5386_v38 = vmul.f32 %v7826_v24, %v10116_v8  ;;  %v5440_v23 = vadd.f32 %v10123_v48, %v5385_v6 }
 0x399   : > { %v5438_v5 = vadd.f32 %v10123_v48, %v5383_v52  ;;  %v5384_v40 = vmul.f32 %v7828_v37, %v10116_v8  ;;  %v7635_v61 = vpop.f32.mrb[20].mxu1  ;;  %7749 = vmatprep.mubr.bf16.mxu0 %v5524_v30 }
 0x39a   : > { %v7829_v35 = vadd.f32 %v7635_v61, %v9936_v43  ;;  %v4729_v50 = vpop.f32.mrb[21].mxu1  ;;  %v5441_v26 = vadd.f32 %v10123_v48, %v5386_v38  ;;  %v5488_v3 = vmax.f32 %v5440_v23, 0.0 }
 0x39b   : > { %v5439_v9 = vadd.f32 %v10123_v48, %v5384_v40  ;;  %v7831_v17 = vadd.f32 %v4729_v50, %v9938_v54  ;;  %v7636_v11 = vpop.f32.mrb[22].mxu1  ;;  %v5486_v53 = vmax.f32 %v5438_v5, 0.0  ;;  %v10860_v50 = vld [vmem:[#allocation65_spill] sm:$0xff] }
 0x39c   : > { %v7830_v45 = vadd.f32 %v7829_v35, %v10072_v47  ;;  %v7833_v10 = vadd.f32 %v7636_v11, %v9940_v34  ;;  %v4732_v36 = vpop.f32.mrb[23].mxu1  ;;  %v5489_v14 = vmax.f32 %v5441_v26, 0.0 }
 0x39d   : > { %v5487_v62 = vmax.f32 %v5439_v9, 0.0  ;;  %v7832_v21 = vadd.f32 %v7831_v17, %v10074_v29  ;;  %v7835_v43 = vadd.f32 %v4732_v36, %v9942_v15  ;;  %v5576_v15 = vunpack.c.h.b16 %v5525_v46  ;;  %v10859_v46 = vld [vmem:[#allocation21_spill] sm:$0xff]  ;;  %v10861_v17 = vld [vmem:[#allocation59_spill] sm:$0xff] }
 0x39e   : > { %v5389_v31 = vmul.f32 %v7830_v45, %v10116_v8  ;;  %v7834_v56 = vadd.f32 %v7833_v10, %v10076_v55  ;;  %v5527_v18 = vpack.c.bf16 %v5489_v14, %v5488_v3 }
 0x39f   : > { %v5387_v54 = vmul.f32 %v7832_v21, %v10116_v8  ;;  %v7836_v47 = vadd.f32 %v7835_v43, %v10078_v42  ;;  %v5526_v19 = vpack.c.bf16 %v5487_v62, %v5486_v53  ;;  %v10862_v53 = vld [vmem:[#allocation23_spill] sm:$0xff] }
 0x3a0   : > { %v5444_v34 = vadd.f32 %v10123_v48, %v5389_v31  ;;  %v5390_v60 = vmul.f32 %v7834_v56, %v10116_v8  ;;  %v10863_v21 = vld [vmem:[#allocation3_spill] sm:$0xff]  ;;  %v10864_v56 = vld [vmem:[#allocation22_spill] sm:$0xff] }
 0x3a1   : > { %v5442_v27 = vadd.f32 %v10123_v48, %v5387_v54  ;;  %v5388_v29 = vmul.f32 %v7836_v47, %v10116_v8  ;;  %v7639_v1 = vpop.f32.mrb[24].mxu1  ;;  %v5577_v4 = vunpack.c.l.b16 %v5526_v19  ;;  %v10865_v54 = vld [vmem:[#allocation7_spill] sm:$0xff] }
 0x3a2   : > { %v5445_v7 = vadd.f32 %v10123_v48, %v5390_v60  ;;  %v7837_v55 = vadd.f32 %v7639_v1, %v9952_v13  ;;  %v4745_v2 = vpop.f32.mrb[25].mxu1  ;;  %v5492_v58 = vmax.f32 %v5444_v34, 0.0 }
 0x3a3   : > { %v5443_v57 = vadd.f32 %v10123_v48, %v5388_v29  ;;  %v7839_v42 = vadd.f32 %v4745_v2, %v9954_v12  ;;  %v7640_v44 = vpop.f32.mrb[26].mxu1  ;;  %v5619_v49 = vpack.c.b16 %v5577_v4, %v5576_v15  ;;  %v5490_v33 = vmax.f32 %v5442_v27, 0.0  ;;  %v10866_v27 = vld [vmem:[#allocation25_spill] sm:$0xff]  ;;  %v10867_v4 = vld [vmem:[#allocation27_spill] sm:$0xff] }
 0x3a4   : > { %v5493_v0 = vmax.f32 %v5445_v7, 0.0  ;;  %v7838_v25 = vadd.f32 %v7837_v55, %v10080_v32  ;;  %v7841_v28 = vadd.f32 %v7640_v44, %v10855_v59  ;;  %v4748_v22 = vpop.f32.mrb[27].mxu1 }
 0x3a5   : > { %v5491_v41 = vmax.f32 %v5443_v57, 0.0  ;;  %v7840_v51 = vadd.f32 %v7839_v42, %v10856_v63  ;;  %v7843_v13 = vadd.f32 %v4748_v22, %v10857_v39  ;;  %7750 = vmatmul.mubr.bf16.gmra.mrb[128].mxu0 %v5619_v49  ;;  %v10869_v22 = vld [vmem:[#allocation4_spill] sm:$0xff]  ;;  %v10870_v63 = vld [vmem:[#allocation29_spill] sm:$0xff] }
 0x3a6   : > { %v5393_v16 = vmul.f32 %v7838_v25, %v10116_v8  ;;  %v7842_v12 = vadd.f32 %v7841_v28, %v10858_v20  ;;  %7753 = vmatprep.mubr.bf16.mxu0 %v5527_v18  ;;  %v5529_v6 = vpack.c.bf16 %v5493_v0, %v5492_v58  ;;  %v10868_v58 = vld [vmem:[#allocation8_spill] sm:$0xff]  ;;  %v10871_v39 = vld [vmem:[#allocation9_spill] sm:$0xff] }
 0x3a7   : > { %v5391_v24 = vmul.f32 %v7840_v51, %v10116_v8  ;;  %v7844_v32 = vadd.f32 %v7843_v13, %v10859_v46  ;;  %v5528_v52 = vpack.c.bf16 %v5491_v41, %v5490_v33  ;;  %v10872_v46 = vld [vmem:[#allocation28_spill] sm:$0xff] }
 0x3a8   : > { %v5448_v37 = vadd.f32 %v10123_v48, %v5393_v16  ;;  %v5394_v30 = vmul.f32 %v7842_v12, %v10116_v8  ;;  %v5581_v38 = vunpack.c.l.b16 %v5529_v6 }
 0x3a9   : > { %v5392_v23 = vmul.f32 %v7844_v32, %v10116_v8  ;;  %v7643_v5 = vpop.f32.mrb[28].mxu1  ;;  %v5580_v40 = vunpack.c.h.b16 %v5528_v52  ;;  %v5446_v61 = vadd.f32 %v10123_v48, %v5391_v24  ;;  %v10873_v52 = vld [vmem:[#allocation68_spill] sm:$0xff] }
 0x3aa   : > { %v5449_v35 = vadd.f32 %v10123_v48, %v5394_v30  ;;  %v7845_v26 = vadd.f32 %v7643_v5, %v10860_v50  ;;  %v4761_v9 = vpop.f32.mrb[29].mxu1  ;;  %v5496_v3 = vmax.f32 %v5448_v37, 0.0 }
 0x3ab   : > { %v7847_v11 = vadd.f32 %v4761_v9, %v10861_v17  ;;  %v7644_v45 = vpop.f32.mrb[30].mxu1  ;;  %v5621_v10 = vpack.c.b16 %v5581_v38, %v5580_v40  ;;  %v5447_v36 = vadd.f32 %v10123_v48, %v5392_v23  ;;  %v5494_v19 = vmax.f32 %v5446_v61, 0.0  ;;  %v10874_v38 = vld [vmem:[#allocation30_spill] sm:$0xff]  ;;  %v10875_v61 = vld [vmem:[#allocation32_spill] sm:$0xff] }
 0x3ac   : > { %v5497_v14 = vmax.f32 %v5449_v35, 0.0  ;;  %v7846_v62 = vadd.f32 %v7845_v26, %v10862_v53  ;;  %v7849_v43 = vadd.f32 %v7644_v45, %v10863_v21  ;;  %v4764_v31 = vpop.f32.mrb[31].mxu1 }
 0x3ad   : > { %v7848_v18 = vadd.f32 %v7847_v11, %v10864_v56  ;;  %v7851_v47 = vadd.f32 %v4764_v31, %v10865_v54  ;;  %7754 = vmatmul.mubr.bf16.gmra.mrb[132].mxu0 %v5621_v10  ;;  %v5495_v34 = vmax.f32 %v5447_v36, 0.0 }
 0x3ae   : > { %v5397_v60 = vmul.f32 %v7846_v62, %v10116_v8  ;;  %v7850_v29 = vadd.f32 %v7849_v43, %v10866_v27  ;;  %v5531_v1 = vpack.c.bf16 %v5497_v14, %v5496_v3  ;;  %v10876_v14 = vld [vmem:[#allocation62_spill] sm:$0xff] }
 0x3af   : > { %v5395_v15 = vmul.f32 %v7848_v18, %v10116_v8  ;;  %v7852_v7 = vadd.f32 %v7851_v47, %v10867_v4  ;;  %v5530_v55 = vpack.c.bf16 %v5495_v34, %v5494_v19  ;;  %v10877_v43 = vld [vmem:[#allocation18_spill] sm:$0xff]  ;;  %v10878_v19 = vld [vmem:[#allocation35_spill] sm:$0xff]  ;;  %v10880_v4 = vld [vmem:[#allocation33_spill] sm:$0xff] }
 0x3b0   : > { %v5398_v2 = vmul.f32 %v7850_v29, %v10116_v8  ;;  %v5452_v57 = vadd.f32 %v10123_v48, %v5397_v60  ;;  %v5584_v10 = vunpack.c.h.b16 %v5531_v1  ;;  %v10879_v60 = vld [vmem:[#allocation69_spill] sm:$0xff] }
 0x3b1   : > { %v5450_v42 = vadd.f32 %v10123_v48, %v5395_v15  ;;  %v5396_v44 = vmul.f32 %v7852_v7, %v10116_v8  ;;  %v7647_v49 = vpop.f32.mrb[32].mxu1  ;;  %7757 = vmatprep.mubr.bf16.mxu0 %v5530_v55  ;;  %v10881_v55 = vld [vmem:[#allocation70_spill] sm:$0xff] }
 0x3b2   : > { %v7853_v0 = vadd.f32 %v7647_v49, %v10868_v58  ;;  %v4777_v25 = vpop.f32.mrb[33].mxu1  ;;  %v5453_v59 = vadd.f32 %v10123_v48, %v5398_v2  ;;  %v5500_v20 = vmax.f32 %v5452_v57, 0.0 }
 0x3b3   : > { %v5451_v28 = vadd.f32 %v10123_v48, %v5396_v44  ;;  %v7855_v33 = vadd.f32 %v4777_v25, %v10869_v22  ;;  %v7648_v41 = vpop.f32.mrb[34].mxu1  ;;  %v5498_v6 = vmax.f32 %v5450_v42, 0.0  ;;  %v10882_v42 = vld [vmem:[#allocation36_spill] sm:$0xff] }
 0x3b4   : > { %v7854_v51 = vadd.f32 %v7853_v0, %v10870_v63  ;;  %v7857_v13 = vadd.f32 %v7648_v41, %v10871_v39  ;;  %v4780_v16 = vpop.f32.mrb[35].mxu1  ;;  %v5501_v12 = vmax.f32 %v5453_v59, 0.0  ;;  %v10883_v0 = vld [vmem:[#allocation39_spill] sm:$0xff] }
 0x3b5   : > { %v5499_v24 = vmax.f32 %v5451_v28, 0.0  ;;  %v7856_v32 = vadd.f32 %v7855_v33, %v10872_v46  ;;  %v7859_v37 = vadd.f32 %v4780_v16, %v10873_v52 }
 0x3b6   : > { %v5401_v30 = vmul.f32 %v7854_v51, %v10116_v8  ;;  %v7858_v23 = vadd.f32 %v7857_v13, %v10874_v38  ;;  %v5533_v5 = vpack.c.bf16 %v5501_v12, %v5500_v20 }
 0x3b7   : > { %v5399_v40 = vmul.f32 %v7856_v32, %v10116_v8  ;;  %v7860_v35 = vadd.f32 %v7859_v37, %v10875_v61  ;;  %v5532_v50 = vpack.c.bf16 %v5499_v24, %v5498_v6  ;;  %v10884_v37 = vld [vmem:[#allocation12_spill] sm:$0xff] }
 0x3b8   : > { %v5456_v26 = vadd.f32 %v10123_v48, %v5401_v30  ;;  %v5402_v9 = vmul.f32 %v7858_v23, %v10116_v8  ;;  %v10885_v23 = vld [vmem:[#allocation13_spill] sm:$0xff] }
 0x3b9   : > { %v5454_v17 = vadd.f32 %v10123_v48, %v5399_v40  ;;  %v5400_v11 = vmul.f32 %v7860_v35, %v10116_v8  ;;  %v7651_v45 = vpop.f32.mrb[36].mxu1  ;;  %v5585_v36 = vunpack.c.l.b16 %v5532_v50  ;;  %v10886_v35 = vld [vmem:[#allocation14_spill] sm:$0xff] }
 0x3ba   : > { %v5457_v3 = vadd.f32 %v10123_v48, %v5402_v9  ;;  %v7861_v53 = vadd.f32 %v7651_v45, %v10876_v14  ;;  %v4793_v62 = vpop.f32.mrb[37].mxu1  ;;  %v5504_v54 = vmax.f32 %v5456_v26, 0.0 }
 0x3bb   : > { %v5455_v21 = vadd.f32 %v10123_v48, %v5400_v11  ;;  %v7863_v31 = vadd.f32 %v4793_v62, %v10877_v43  ;;  %v7652_v56 = vpop.f32.mrb[38].mxu1  ;;  %v5623_v18 = vpack.c.b16 %v5585_v36, %v5584_v10  ;;  %v5502_v1 = vmax.f32 %v5454_v17, 0.0  ;;  %v10887_v17 = vld [vmem:[#allocation15_spill] sm:$0xff] }
 0x3bc   : > { %v5505_v47 = vmax.f32 %v5457_v3, 0.0  ;;  %v7862_v34 = vadd.f32 %v7861_v53, %v10878_v19  ;;  %v7865_v27 = vadd.f32 %v7652_v56, %v10879_v60  ;;  %v4796_v29 = vpop.f32.mrb[39].mxu1  ;;  %v10889_v19 = vld [vmem:[#allocation20_spill] sm:$0xff] }
 0x3bd   : > { %v5503_v15 = vmax.f32 %v5455_v21, 0.0  ;;  %v7864_v7 = vadd.f32 %v7863_v31, %v10880_v4  ;;  %v7867_v2 = vadd.f32 %v4796_v29, %v10881_v55  ;;  %7758 = vmatmul.mubr.bf16.gmra.mrb[136].mxu0 %v5623_v18  ;;  %v10888_v31 = vld [vmem:[#allocation72_spill] sm:$0xff]  ;;  %v10890_v29 = vld [vmem:[#allocation71_spill] sm:$0xff]  ;;  %v10891_v55 = vld [vmem:[#allocation73_spill] sm:$0xff] }
 0x3be   : > { %v5405_v57 = vmul.f32 %v7862_v34, %v10116_v8  ;;  %v7866_v44 = vadd.f32 %v7865_v27, %v10882_v42  ;;  %7761 = vmatprep.mubr.bf16.mxu0 %v5533_v5  ;;  %v5535_v49 = vpack.c.bf16 %v5505_v47, %v5504_v54 }
 0x3bf   : > { %v5403_v58 = vmul.f32 %v7864_v7, %v10116_v8  ;;  %v7868_v25 = vadd.f32 %v7867_v2, %v10883_v0  ;;  %v5534_v59 = vpack.c.bf16 %v5503_v15, %v5502_v1 }
 0x3c0   : > { %v5460_v28 = vadd.f32 %v10123_v48, %v5405_v57  ;;  %v5406_v22 = vmul.f32 %v7866_v44, %v10116_v8  ;;  %v5589_v33 = vunpack.c.l.b16 %v5535_v49 }
 0x3c1   : > { %v5404_v41 = vmul.f32 %v7868_v25, %v10116_v8  ;;  %v5588_v63 = vunpack.c.h.b16 %v5534_v59  ;;  %v5458_v51 = vadd.f32 %v10123_v48, %v5403_v58 }
 0x3c2   : > { %v5461_v39 = vadd.f32 %v10123_v48, %v5406_v22  ;;  %v5508_v20 = vmax.f32 %v5460_v28, 0.0 }
 0x3c3   : > { %v5625_v13 = vpack.c.b16 %v5589_v33, %v5588_v63  ;;  %v5459_v16 = vadd.f32 %v10123_v48, %v5404_v41  ;;  %v5506_v6 = vmax.f32 %v5458_v51, 0.0 }
 0x3c4   : > { %v5509_v12 = vmax.f32 %v5461_v39, 0.0 }
 0x3c5   : > { %7762 = vmatmul.mubr.bf16.gmra.mrb[140].mxu0 %v5625_v13  ;;  %v5507_v24 = vmax.f32 %v5459_v16, 0.0 }
 0x3c6   : > { %v5537_v46 = vpack.c.bf16 %v5509_v12, %v5508_v20  ;;  %v10307_v12 = vld [vmem:[%s10428_s8] ss:$0 sm:$0xff] }
 0x3c7   : > { %v5536_v32 = vpack.c.bf16 %v5507_v24, %v5506_v6  ;;  %v6592_v6 = vld [vmem:[%s8400_s24] sm:$0xff]  }
 0x3c8   : > { %v5592_v0 = vunpack.c.h.b16 %v5537_v46  ;;  %v10314_v46 = vld [vmem:[%s10429_s9] ss:$0 sm:$0xff] }
 0x3c9   : > { %7765 = vmatprep.mubr.bf16.mxu0 %v5536_v32 }
 0x3d1   : > { %v7719_v52 = vpop.f32.mrb[40].mxu1 }
 0x3d2   : > { %v7869_v30 = vadd.f32 %v7719_v52, %v10884_v37  ;;  %v5281_v38 = vpop.f32.mrb[41].mxu1 }
 0x3d3   : > { %v7870_v5 = vadd.f32 %v5281_v38, %v10885_v23  ;;  %v7720_v40 = vpop.f32.mrb[42].mxu1  ;;  %v6593_v38 = vunpack.c.l.bf16 %v6592_v6 }
 0x3d4   : > { %v5409_v61 = vmul.f32 %v7869_v30, %v10116_v8  ;;  %v7871_v50 = vadd.f32 %v7720_v40, %v10886_v35  ;;  %v5284_v26 = vpop.f32.mrb[43].mxu1 }
 0x3d5   : > { %v5407_v9 = vmul.f32 %v7870_v5, %v10116_v8  ;;  %v7872_v11 = vadd.f32 %v5284_v26, %v10887_v17 }
 0x3d6   : > { %v5464_v45 = vadd.f32 %v10123_v48, %v5409_v61  ;;  %v5410_v10 = vmul.f32 %v7871_v50, %v10116_v8 }
 0x3d7   : > { %v5462_v36 = vadd.f32 %v10123_v48, %v5407_v9  ;;  %v5408_v3 = vmul.f32 %v7872_v11, %v10116_v8  ;;  %v6594_v9 = vunpack.c.h.bf16 %v6592_v6 }
 0x3d8   : > { %v5465_v14 = vadd.f32 %v10123_v48, %v5410_v10  ;;  %v5512_v21 = vmax.f32 %v5464_v45, 0.0 }
 0x3d9   : > { %v5463_v53 = vadd.f32 %v10123_v48, %v5408_v3  ;;  %v7723_v62 = vpop.f32.mrb[44].mxu1  ;;  %v5510_v54 = vmax.f32 %v5462_v36, 0.0  ;;  %v6737_v36 = vld [vmem:[%s8400_s24 + $0x18] sm:$0xff]  }
 0x3da   : > { %v5513_v43 = vmax.f32 %v5465_v14, 0.0  ;;  %v7873_v56 = vadd.f32 %v7723_v62, %v10888_v31  ;;  %v5297_v18 = vpop.f32.mrb[45].mxu1  ;;  %v6736_v14 = vld [vmem:[%s8400_s24 + $0x10] sm:$0xff]  }
 0x3db   : > { %v5511_v47 = vmax.f32 %v5463_v53, 0.0  ;;  %v7874_v34 = vadd.f32 %v5297_v18, %v10889_v19  ;;  %v7724_v60 = vpop.f32.mrb[46].mxu1 }
 0x3dc   : > { %v5413_v27 = vmul.f32 %v7873_v56, %v10116_v8  ;;  %v7875_v1 = vadd.f32 %v7724_v60, %v10890_v29  ;;  %v5300_v15 = vpop.f32.mrb[47].mxu1  ;;  %v5539_v4 = vpack.c.bf16 %v5513_v43, %v5512_v21  ;;  %v6605_v56 = vunpack.c.l.bf16 %v6737_v36 }
 0x3dd   : > { %v5411_v7 = vmul.f32 %v7874_v34, %v10116_v8  ;;  %v7876_v2 = vadd.f32 %v5300_v15, %v10891_v55  ;;  %v5538_v57 = vpack.c.bf16 %v5511_v47, %v5510_v54  ;;  %v6601_v34 = vunpack.c.l.bf16 %v6736_v14 }
 0x3de   : > { %v5468_v42 = vadd.f32 %v10123_v48, %v5413_v27  ;;  %v5414_v44 = vmul.f32 %v7875_v1, %v10116_v8  ;;  %v6606_v15 = vunpack.c.h.bf16 %v6737_v36 }
 0x3df   : > { %v5466_v49 = vadd.f32 %v10123_v48, %v5411_v7  ;;  %v5412_v58 = vmul.f32 %v7876_v2, %v10116_v8  ;;  %v5593_v25 = vunpack.c.l.b16 %v5538_v57  ;;  %v6602_v57 = vunpack.c.h.bf16 %v6736_v14 }
 0x3e0   : > { %v5469_v59 = vadd.f32 %v10123_v48, %v5414_v44  ;;  %v5516_v33 = vmax.f32 %v5468_v42, 0.0 }
 0x3e1   : > { %v5467_v28 = vadd.f32 %v10123_v48, %v5412_v58  ;;  %v5627_v22 = vpack.c.b16 %v5593_v25, %v5592_v0  ;;  %v5514_v63 = vmax.f32 %v5466_v49, 0.0  ;;  %v6735_v48 = vld [vmem:[%s8400_s24 + $0x8] sm:$0xff]  }
 0x3e2   : > { %v5517_v41 = vmax.f32 %v5469_v59, 0.0  ;;  %v6597_v52 = vunpack.c.l.bf16 %v6735_v48  ;;  %v6598_v61 = vunpack.c.h.bf16 %v6735_v48 }
 0x3e3   : > { %v5515_v51 = vmax.f32 %v5467_v28, 0.0  ;;  %7766 = vmatmul.mubr.bf16.gmra.mrb[144].mxu0 %v5627_v22 }
 0x3e4   : > { %7769 = vmatprep.mubr.bf16.mxu0 %v5539_v4  ;;  %v5541_v39 = vpack.c.bf16 %v5517_v41, %v5516_v33 }
 0x3e5   : > { %v5540_v13 = vpack.c.bf16 %v5515_v51, %v5514_v63  ;;  %v6739_v51 = vld [vmem:[%s8400_s24 + $0x28] sm:$0xff]  }
 0x3e6   : > { %v5597_v16 = vunpack.c.l.b16 %v5541_v39  ;;  %v6738_v39 = vld [vmem:[%s8400_s24 + $0x20] sm:$0xff]  }
 0x3e7   : > { %v5596_v20 = vunpack.c.h.b16 %v5540_v13  ;;  %v6609_v6 = vunpack.c.l.bf16 %v6738_v39 }
 0x3e9   : > { %v5629_v8 = vpack.c.b16 %v5597_v16, %v5596_v20  ;;  %v6613_v20 = vunpack.c.l.bf16 %v6739_v51 }
 0x3eb   : > { %7770 = vmatmul.mubr.bf16.gmra.mrb[148].mxu0 %v5629_v8 }
 0x460   : > { %v7743_v24 = vpop.f32.mrb[120].mxu0 }
 0x461   : > { %v5864_v32 = vmul.f32 %v7743_v24, %v10307_v12  ;;  %v5728_v37 = vpop.f32.mrb[121].mxu0 }
 0x462   : > { %v5862_v30 = vmul.f32 %v10307_v12, %v5728_v37  ;;  %v7744_v23 = vpop.f32.mrb[122].mxu0  ;;  %v6614_v37 = vunpack.c.h.bf16 %v6739_v51 }
 0x463   : > { %v5903_v5 = vadd.f32 %v10314_v46, %v5864_v32  ;;  %v5865_v40 = vmul.f32 %v7744_v23, %v10307_v12  ;;  %v5731_v35 = vpop.f32.mrb[123].mxu0 }
 0x464   : > { %v5901_v50 = vadd.f32 %v10314_v46, %v5862_v30  ;;  %v5863_v26 = vmul.f32 %v10307_v12, %v5731_v35 }
 0x465   : > { %v5999_v17 = vadd.f32 %v6597_v52, %v5903_v5  ;;  %v5904_v11 = vadd.f32 %v10314_v46, %v5865_v40  ;;  %v6610_v5 = vunpack.c.h.bf16 %v6738_v39 }
 0x466   : > { %v5997_v45 = vadd.f32 %v6593_v38, %v5901_v50  ;;  %v5902_v10 = vadd.f32 %v10314_v46, %v5863_v26  ;;  %v6741_v26 = vld [vmem:[%s8400_s24 + $0x38] sm:$0xff]  }
 0x467   : > { %v6000_v3 = vadd.f32 %v6598_v61, %v5904_v11  ;;  %v6031_v21 = vmax.f32 %v5999_v17, 0.0  ;;  %v6740_v17 = vld [vmem:[%s8400_s24 + $0x30] sm:$0xff]   ;;  %v6621_v14 = vunpack.c.l.bf16 %v6741_v26 }
 0x468   : > { %v5998_v53 = vadd.f32 %v6594_v9, %v5902_v10  ;;  %v7747_v62 = vpop.f32.mrb[124].mxu0  ;;  %v6029_v54 = vmax.f32 %v5997_v45, 0.0 }
 0x469   : > { %v6032_v43 = vmax.f32 %v6000_v3, 0.0  ;;  %v5868_v31 = vmul.f32 %v7747_v62, %v10307_v12  ;;  %v5744_v18 = vpop.f32.mrb[125].mxu0 }
 0x46a   : > { %v6030_v47 = vmax.f32 %v5998_v53, 0.0  ;;  %v5866_v19 = vmul.f32 %v10307_v12, %v5744_v18  ;;  %v7748_v60 = vpop.f32.mrb[126].mxu0 }
 0x46b   : > { %v6663_v27 = vpack.c.bf16 %v6032_v43, %v6031_v21  ;;  %v5907_v29 = vadd.f32 %v10314_v46, %v5868_v31  ;;  %v5869_v1 = vmul.f32 %v7748_v60, %v10307_v12  ;;  %v5747_v4 = vpop.f32.mrb[127].mxu0  ;;  %v6617_v31 = vunpack.c.l.bf16 %v6740_v17 }
 0x46c   : > { %v6658_v7 = vpack.c.bf16 %v6030_v47, %v6029_v54  ;;  %v5905_v55 = vadd.f32 %v10314_v46, %v5866_v19  ;;  %v5867_v2 = vmul.f32 %v10307_v12, %v5747_v4  ;;  %v6622_v19 = vunpack.c.h.bf16 %v6741_v26 }
 0x46d   : > { %6750 = vst [vmem:[%s10332_s17 + $0x8] sm:$0xff] %v6663_v27   ;;  %v6003_v42 = vadd.f32 %v6605_v56, %v5907_v29  ;;  %v5908_v44 = vadd.f32 %v10314_v46, %v5869_v1  ;;  %v6618_v1 = vunpack.c.h.bf16 %v6740_v17 }
 0x46e   : > { %6659 = vst [vmem:[%s10332_s17] sm:$0xff] %v6658_v7   ;;  %v6001_v49 = vadd.f32 %v6601_v34, %v5905_v55  ;;  %v5906_v58 = vadd.f32 %v10314_v46, %v5867_v2 }
 0x46f   : > { %v6004_v0 = vadd.f32 %v6606_v15, %v5908_v44  ;;  %v6035_v59 = vmax.f32 %v6003_v42, 0.0 }
 0x470   : > { %v6002_v25 = vadd.f32 %v6602_v57, %v5906_v58  ;;  %v6033_v22 = vmax.f32 %v6001_v49, 0.0 }
 0x471   : > { %v6036_v28 = vmax.f32 %v6004_v0, 0.0 }
 0x472   : > { %v6034_v33 = vmax.f32 %v6002_v25, 0.0 }
 0x473   : > { %v6673_v41 = vpack.c.bf16 %v6036_v28, %v6035_v59  ;;  %v6743_v59 = vld [vmem:[%s8400_s24 + $0x48] sm:$0xff]   ;;  %v6742_v28 = vld [vmem:[%s8400_s24 + $0x40] sm:$0xff]  }
 0x474   : > { %v6668_v63 = vpack.c.bf16 %v6034_v33, %v6033_v22  ;;  %v6625_v39 = vunpack.c.l.bf16 %v6742_v28 }
 0x475   : > { %6752 = vst [vmem:[%s10332_s17 + $0x18] sm:$0xff] %v6673_v41   ;;  %v6629_v41 = vunpack.c.l.bf16 %v6743_v59 }
 0x476   : > { %6751 = vst [vmem:[%s10332_s17 + $0x10] sm:$0xff] %v6668_v63  }
 0x478   : > { %v7751_v13 = vpop.f32.mrb[128].mxu0 }
 0x479   : > { %v5872_v16 = vmul.f32 %v7751_v13, %v10307_v12  ;;  %v5760_v8 = vpop.f32.mrb[129].mxu0 }
 0x47a   : > { %v5870_v48 = vmul.f32 %v10307_v12, %v5760_v8  ;;  %v7752_v24 = vpop.f32.mrb[130].mxu0  ;;  %v6630_v8 = vunpack.c.h.bf16 %v6743_v59 }
 0x47b   : > { %v5911_v32 = vadd.f32 %v10314_v46, %v5872_v16  ;;  %v5873_v52 = vmul.f32 %v7752_v24, %v10307_v12  ;;  %v5763_v30 = vpop.f32.mrb[131].mxu0 }
 0x47c   : > { %v5909_v38 = vadd.f32 %v10314_v46, %v5870_v48  ;;  %v5871_v23 = vmul.f32 %v10307_v12, %v5763_v30 }
 0x47d   : > { %v6007_v40 = vadd.f32 %v6613_v20, %v5911_v32  ;;  %v5912_v61 = vadd.f32 %v10314_v46, %v5873_v52  ;;  %v6626_v32 = vunpack.c.h.bf16 %v6742_v28 }
 0x47e   : > { %v6005_v35 = vadd.f32 %v6609_v6, %v5909_v38  ;;  %v5910_v50 = vadd.f32 %v10314_v46, %v5871_v23  ;;  %v6745_v23 = vld [vmem:[%s8400_s24 + $0x58] sm:$0xff]  }
 0x47f   : > { %v6008_v9 = vadd.f32 %v6614_v37, %v5912_v61  ;;  %v6039_v10 = vmax.f32 %v6007_v40, 0.0  ;;  %v6744_v40 = vld [vmem:[%s8400_s24 + $0x50] sm:$0xff]   ;;  %v6637_v17 = vunpack.c.l.bf16 %v6745_v23 }
 0x480   : > { %v6006_v11 = vadd.f32 %v6610_v5, %v5910_v50  ;;  %v7755_v45 = vpop.f32.mrb[132].mxu0  ;;  %v6037_v62 = vmax.f32 %v6005_v35, 0.0 }
 0x481   : > { %v6040_v36 = vmax.f32 %v6008_v9, 0.0  ;;  %v5876_v3 = vmul.f32 %v7755_v45, %v10307_v12  ;;  %v5776_v53 = vpop.f32.mrb[133].mxu0 }
 0x482   : > { %v6038_v21 = vmax.f32 %v6006_v11, 0.0  ;;  %v5874_v43 = vmul.f32 %v10307_v12, %v5776_v53  ;;  %v7756_v56 = vpop.f32.mrb[134].mxu0 }
 0x483   : > { %v6683_v18 = vpack.c.bf16 %v6040_v36, %v6039_v10  ;;  %v5915_v54 = vadd.f32 %v10314_v46, %v5876_v3  ;;  %v5877_v47 = vmul.f32 %v7756_v56, %v10307_v12  ;;  %v5779_v34 = vpop.f32.mrb[135].mxu0  ;;  %v6633_v3 = vunpack.c.l.bf16 %v6744_v40 }
 0x484   : > { %v6678_v60 = vpack.c.bf16 %v6038_v21, %v6037_v62  ;;  %v5913_v27 = vadd.f32 %v10314_v46, %v5874_v43  ;;  %v5875_v29 = vmul.f32 %v10307_v12, %v5779_v34  ;;  %v6638_v43 = vunpack.c.h.bf16 %v6745_v23 }
 0x485   : > { %6754 = vst [vmem:[%s10332_s17 + $0x28] sm:$0xff] %v6683_v18   ;;  %v6011_v15 = vadd.f32 %v6621_v14, %v5915_v54  ;;  %v5916_v4 = vadd.f32 %v10314_v46, %v5877_v47  ;;  %v6634_v47 = vunpack.c.h.bf16 %v6744_v40 }
 0x486   : > { %6753 = vst [vmem:[%s10332_s17 + $0x20] sm:$0xff] %v6678_v60   ;;  %v6009_v7 = vadd.f32 %v6617_v31, %v5913_v27  ;;  %v5914_v55 = vadd.f32 %v10314_v46, %v5875_v29 }
 0x487   : > { %v6012_v2 = vadd.f32 %v6622_v19, %v5916_v4  ;;  %v6043_v42 = vmax.f32 %v6011_v15, 0.0 }
 0x488   : > { %v6010_v57 = vadd.f32 %v6618_v1, %v5914_v55  ;;  %v6041_v49 = vmax.f32 %v6009_v7, 0.0 }
 0x489   : > { %v6044_v44 = vmax.f32 %v6012_v2, 0.0 }
 0x48a   : > { %v6042_v58 = vmax.f32 %v6010_v57, 0.0 }
 0x48b   : > { %v6693_v0 = vpack.c.bf16 %v6044_v44, %v6043_v42  ;;  %v6747_v42 = vld [vmem:[%s8400_s24 + $0x68] sm:$0xff]   ;;  %v6746_v44 = vld [vmem:[%s8400_s24 + $0x60] sm:$0xff]  }
 0x48c   : > { %v6688_v25 = vpack.c.bf16 %v6042_v58, %v6041_v49  ;;  %v6641_v28 = vunpack.c.l.bf16 %v6746_v44 }
 0x48d   : > { %6756 = vst [vmem:[%s10332_s17 + $0x38] sm:$0xff] %v6693_v0   ;;  %v6645_v0 = vunpack.c.l.bf16 %v6747_v42 }
 0x48e   : > { %6755 = vst [vmem:[%s10332_s17 + $0x30] sm:$0xff] %v6688_v25  }
 0x490   : > { %v7759_v22 = vpop.f32.mrb[136].mxu0 }
 0x491   : > { %v5880_v33 = vmul.f32 %v7759_v22, %v10307_v12  ;;  %v5792_v63 = vpop.f32.mrb[137].mxu0 }
 0x492   : > { %v5878_v51 = vmul.f32 %v10307_v12, %v5792_v63  ;;  %v7760_v13 = vpop.f32.mrb[138].mxu0  ;;  %v6646_v63 = vunpack.c.h.bf16 %v6747_v42 }
 0x493   : > { %v5919_v16 = vadd.f32 %v10314_v46, %v5880_v33  ;;  %v5881_v20 = vmul.f32 %v7760_v13, %v10307_v12  ;;  %v5795_v48 = vpop.f32.mrb[139].mxu0 }
 0x494   : > { %v5917_v6 = vadd.f32 %v10314_v46, %v5878_v51  ;;  %v5879_v24 = vmul.f32 %v10307_v12, %v5795_v48 }
 0x495   : > { %v6015_v52 = vadd.f32 %v6629_v41, %v5919_v16  ;;  %v5920_v37 = vadd.f32 %v10314_v46, %v5881_v20  ;;  %v6642_v16 = vunpack.c.h.bf16 %v6746_v44 }
 0x496   : > { %v6013_v30 = vadd.f32 %v6625_v39, %v5917_v6  ;;  %v5918_v38 = vadd.f32 %v10314_v46, %v5879_v24  ;;  %v6749_v24 = vld [vmem:[%s8400_s24 + $0x78] sm:$0xff]  }
 0x497   : > { %v6016_v5 = vadd.f32 %v6630_v8, %v5920_v37  ;;  %v6047_v50 = vmax.f32 %v6015_v52, 0.0  ;;  %v6748_v52 = vld [vmem:[%s8400_s24 + $0x70] sm:$0xff]   ;;  %v6653_v40 = vunpack.c.l.bf16 %v6749_v24 }
 0x498   : > { %v6014_v61 = vadd.f32 %v6626_v32, %v5918_v38  ;;  %v7763_v35 = vpop.f32.mrb[140].mxu0  ;;  %v6045_v45 = vmax.f32 %v6013_v30, 0.0 }
 0x499   : > { %v6048_v26 = vmax.f32 %v6016_v5, 0.0  ;;  %v5884_v9 = vmul.f32 %v7763_v35, %v10307_v12  ;;  %v5808_v11 = vpop.f32.mrb[141].mxu0 }
 0x49a   : > { %v6046_v10 = vmax.f32 %v6014_v61, 0.0  ;;  %v5882_v36 = vmul.f32 %v10307_v12, %v5808_v11  ;;  %v7764_v14 = vpop.f32.mrb[142].mxu0 }
 0x49b   : > { %v6703_v53 = vpack.c.bf16 %v6048_v26, %v6047_v50  ;;  %v5923_v62 = vadd.f32 %v10314_v46, %v5884_v9  ;;  %v5885_v21 = vmul.f32 %v7764_v14, %v10307_v12  ;;  %v5811_v31 = vpop.f32.mrb[143].mxu0  ;;  %v6649_v9 = vunpack.c.l.bf16 %v6748_v52 }
 0x49c   : > { %v6698_v56 = vpack.c.bf16 %v6046_v10, %v6045_v45  ;;  %v5921_v18 = vadd.f32 %v10314_v46, %v5882_v36  ;;  %v5883_v54 = vmul.f32 %v10307_v12, %v5811_v31  ;;  %v6654_v36 = vunpack.c.h.bf16 %v6749_v24 }
 0x49d   : > { %6758 = vst [vmem:[%s10332_s17 + $0x48] sm:$0xff] %v6703_v53   ;;  %v6019_v19 = vadd.f32 %v6637_v17, %v5923_v62  ;;  %v5924_v34 = vadd.f32 %v10314_v46, %v5885_v21  ;;  %v6650_v21 = vunpack.c.h.bf16 %v6748_v52 }
 0x49e   : > { %6757 = vst [vmem:[%s10332_s17 + $0x40] sm:$0xff] %v6698_v56   ;;  %v6017_v60 = vadd.f32 %v6633_v3, %v5921_v18  ;;  %v5922_v27 = vadd.f32 %v10314_v46, %v5883_v54 }
 0x49f   : > { %v6020_v29 = vadd.f32 %v6638_v43, %v5924_v34  ;;  %v6051_v15 = vmax.f32 %v6019_v19, 0.0 }
 0x4a0   : > { %v6018_v1 = vadd.f32 %v6634_v47, %v5922_v27  ;;  %v6049_v7 = vmax.f32 %v6017_v60, 0.0 }
 0x4a1   : > { %v6052_v4 = vmax.f32 %v6020_v29, 0.0 }
 0x4a2   : > { %v6050_v55 = vmax.f32 %v6018_v1, 0.0 }
 0x4a3   : > { %v6713_v2 = vpack.c.bf16 %v6052_v4, %v6051_v15 }
 0x4a4   : > { %v6708_v57 = vpack.c.bf16 %v6050_v55, %v6049_v7 }
 0x4a5   : > { %6760 = vst [vmem:[%s10332_s17 + $0x58] sm:$0xff] %v6713_v2  }
 0x4a6   : > { %6759 = vst [vmem:[%s10332_s17 + $0x50] sm:$0xff] %v6708_v57  }
 0x4b6   : > { %v7767_v49 = vpop.f32.mrb[144].mxu0 }
 0x4b7   : > { %v5888_v58 = vmul.f32 %v7767_v49, %v10307_v12  ;;  %v5824_v25 = vpop.f32.mrb[145].mxu0 }
 0x4b8   : > { %v5886_v59 = vmul.f32 %v10307_v12, %v5824_v25  ;;  %v7768_v22 = vpop.f32.mrb[146].mxu0 }
 0x4b9   : > { %v5927_v33 = vadd.f32 %v10314_v46, %v5888_v58  ;;  %v5889_v41 = vmul.f32 %v7768_v22, %v10307_v12  ;;  %v5827_v51 = vpop.f32.mrb[147].mxu0 }
 0x4ba   : > { %v5925_v39 = vadd.f32 %v10314_v46, %v5886_v59  ;;  %v5887_v13 = vmul.f32 %v10307_v12, %v5827_v51 }
 0x4bb   : > { %v6023_v20 = vadd.f32 %v6645_v0, %v5927_v33  ;;  %v5928_v8 = vadd.f32 %v10314_v46, %v5889_v41 }
 0x4bc   : > { %v6021_v48 = vadd.f32 %v6641_v28, %v5925_v39  ;;  %v5926_v6 = vadd.f32 %v10314_v46, %v5887_v13 }
 0x4bd   : > { %v6024_v32 = vadd.f32 %v6646_v63, %v5928_v8  ;;  %v6055_v38 = vmax.f32 %v6023_v20, 0.0 }
 0x4be   : > { %v6022_v37 = vadd.f32 %v6642_v16, %v5926_v6  ;;  %v7771_v30 = vpop.f32.mrb[148].mxu0  ;;  %v6053_v35 = vmax.f32 %v6021_v48, 0.0 }
 0x4bf   : > { %v6056_v23 = vmax.f32 %v6024_v32, 0.0  ;;  %v5892_v5 = vmul.f32 %v7771_v30, %v10307_v12  ;;  %v5840_v61 = vpop.f32.mrb[149].mxu0 }
 0x4c0   : > { %v6054_v50 = vmax.f32 %v6022_v37, 0.0  ;;  %v5890_v26 = vmul.f32 %v10307_v12, %v5840_v61  ;;  %v7772_v17 = vpop.f32.mrb[150].mxu0 }
 0x4c1   : > { %v6723_v11 = vpack.c.bf16 %v6056_v23, %v6055_v38  ;;  %v5931_v45 = vadd.f32 %v10314_v46, %v5892_v5  ;;  %v5893_v10 = vmul.f32 %v7772_v17, %v10307_v12  ;;  %v5843_v3 = vpop.f32.mrb[151].mxu0 }
 0x4c2   : > { %v6718_v14 = vpack.c.bf16 %v6054_v50, %v6053_v35  ;;  %v5929_v53 = vadd.f32 %v10314_v46, %v5890_v26  ;;  %v5891_v62 = vmul.f32 %v10307_v12, %v5843_v3 }
 0x4c3   : > { %6762 = vst [vmem:[%s10332_s17 + $0x68] sm:$0xff] %v6723_v11   ;;  %v6027_v43 = vadd.f32 %v6653_v40, %v5931_v45  ;;  %v5932_v31 = vadd.f32 %v10314_v46, %v5893_v10 }
 0x4c4   : > { %6761 = vst [vmem:[%s10332_s17 + $0x60] sm:$0xff] %v6718_v14   ;;  %v6025_v56 = vadd.f32 %v6649_v9, %v5929_v53  ;;  %v5930_v18 = vadd.f32 %v10314_v46, %v5891_v62 }
 0x4c5   : > { %v6028_v54 = vadd.f32 %v6654_v36, %v5932_v31  ;;  %v6059_v19 = vmax.f32 %v6027_v43, 0.0 }
 0x4c6   : > { %v6026_v47 = vadd.f32 %v6650_v21, %v5930_v18  ;;  %v6057_v60 = vmax.f32 %v6025_v56, 0.0 }
 0x4c7   : > { %v6060_v34 = vmax.f32 %v6028_v54, 0.0 }
 0x4c8   : > { %v6058_v27 = vmax.f32 %v6026_v47, 0.0 }
 0x4c9   : > { %v6733_v29 = vpack.c.bf16 %v6060_v34, %v6059_v19 }
 0x4ca   : > { %v6728_v1 = vpack.c.bf16 %v6058_v27, %v6057_v60 }
 0x4cb   : > { %6764 = vst [vmem:[%s10332_s17 + $0x78] sm:$0xff] %v6733_v29  }
 0x4cc   : > { %6763 = vst [vmem:[%s10332_s17 + $0x70] sm:$0xff] %v6728_v1  }
 0x4cd PF: > { %s20_s13 = sadd.s32 1, %s8317_s13  }
 0x4ce   : > { %p17_p4 = scmp.ge.s32.totalorder %s20_s13, 4  }
 0x4d0   :  { %19 = sbr.rel (!%p17_p4) target bundleno = 1 (0x1), region = 98 }

</bundles_post_ra>
